<compile_context>
chip_gen: v7x
topology: tpu7x:2x2x1
jax: 0.10.0
libtpu: 0.0.40
codegen_flags: <defaults>
</compile_context>

<pallas_src>
import functools

import jax
import jax.numpy as jnp
from jax.experimental import pallas as pl
from jax.experimental.pallas import tpu as pltpu

NEG_SLOPE = 0.01  # PyTorch LeakyReLU default


def _lrelu(x):
    return jnp.where(x > 0, x, NEG_SLOPE * x)


def _round_up(x, m):
    return ((x + m - 1) // m) * m


def readout_kernel(node_ref,
                   w_gt_s_ref, w_gt_m_ref, b_gt_ref,
                   w_log_x_ref, w_log_g_ref, b_log_ref,
                   w_proj_ref, b_proj_ref,
                   w_ih_ref, w_hh_ref, b_ih_ref, b_hh_ref,
                   out_g_ref, out_w_ref,
                   *, dim, n_layers, n_nodes, block_b, compute_dtype):
    f32 = jnp.float32
    x = node_ref[...]                                       # [Bt, N, D] compute_dtype
    # Flat view for the big node matmuls -- layout-preserving when N % 8 == 0.
    flat_ok = (n_nodes % 8 == 0)
    x2 = x.reshape(block_b * n_nodes, dim) if flat_ok else None

    # g0 = Linear_2D->D([sum_nodes(x) || max_nodes(x)]) -- split weights, no concat.
    sum_x = jnp.sum(x.astype(f32), axis=1).astype(compute_dtype)   # pool in f32
    max_x = jnp.max(x, axis=1).astype(compute_dtype)
    g = (jnp.dot(sum_x, w_gt_s_ref[...], preferred_element_type=f32)
         + jnp.dot(max_x, w_gt_m_ref[...], preferred_element_type=f32)
         + b_gt_ref[...])                                   # [Bt, D] f32

    # Node-side attention logits for ALL layers: one big-M matmul, then one
    # transpose to lane-dense [Bt, L, N] (nodes on lanes).
    if flat_ok:
        zx = jnp.dot(x2, w_log_x_ref[...], preferred_element_type=f32)
        zx = zx.reshape(block_b, n_nodes, n_layers)
    else:
        zx = jnp.dot(x, w_log_x_ref[...], preferred_element_type=f32)
    zx_all = jnp.transpose(zx, (0, 2, 1))                   # [Bt, L, N]

    final = jnp.zeros((block_b, dim), f32)
    att_rows = []
    for l in range(n_layers):                               # static unroll (L small)
        gl = _lrelu(g)                                      # [Bt, D]

        # Graph-side logit contribution: VPU multiply + lane reduce (no N=1 matmul).
        c = jnp.sum(gl * w_log_g_ref[l], axis=-1, keepdims=True) + b_log_ref[l]  # [Bt,1]
        z = _lrelu(zx_all[:, l:l + 1, :] + c[:, :, None])   # [Bt, 1, N] lane-dense

        # softmax over the graph's nodes (lane-axis reductions)
        z = z - jnp.max(z, axis=-1, keepdims=True)
        e = jnp.exp(z)
        a = e / jnp.sum(e, axis=-1, keepdims=True)          # [Bt, 1, N] f32

        # project_nodes(x): one [Bt*N, D] x [D, D] matmul
        if flat_ok:
            hv = _lrelu(jnp.dot(x2, w_proj_ref[l], preferred_element_type=f32)
                        + b_proj_ref[l]).reshape(block_b, n_nodes, dim)
        else:
            hv = _lrelu(jnp.dot(x, w_proj_ref[l], preferred_element_type=f32)
                        + b_proj_ref[l])                    # [Bt, N, D]

        # Attention-weighted context (batched q=1 MXU contraction; low priority to
        # move to VPU per review -- projection / GRU matmuls dominate for real D).
        ctx = jnp.einsum('bqn,bnd->bqd', a.astype(compute_dtype),
                         hv.astype(compute_dtype), preferred_element_type=f32)
        ctx = _lrelu(ctx.reshape(block_b, dim))             # [Bt, D] f32

        # GRUCell(ctx, g): fused gate weights [D, 3D] -> 2 matmuls instead of 6.
        gi = (jnp.dot(ctx.astype(compute_dtype), w_ih_ref[l],
                      preferred_element_type=f32) + b_ih_ref[l])   # [Bt, 3D]
        gh = (jnp.dot(g.astype(compute_dtype), w_hh_ref[l],
                      preferred_element_type=f32) + b_hh_ref[l])   # [Bt, 3D]
        r = jax.nn.sigmoid(gi[:, :dim] + gh[:, :dim])
        u = jax.nn.sigmoid(gi[:, dim:2 * dim] + gh[:, dim:2 * dim])
        n = jnp.tanh(gi[:, 2 * dim:] + r * gh[:, 2 * dim:])
        g = _lrelu((1.0 - u) * n + u * g)

        final = final + g
        att_rows.append(a[:, 0, :])                         # [Bt, N]

    out_g_ref[...] = final
    # Single lane-dense store: (bt, L*N) slab, reshaped to (B, L, N) in the wrapper.
    out_w_ref[...] = jnp.concatenate(att_rows, axis=-1)


def dti_graph12_readout(node_feats, params, *, n_layers,
                        compute_dtype=jnp.bfloat16, block_b=None):
    B, N, D = node_feats.shape

    weight_names = ("w_gt_s", "w_gt_m", "b_gt",
                    "w_log_x", "w_log_g", "b_log",
                    "w_proj", "b_proj",
                    "w_ih", "w_hh", "b_ih", "b_hh")
    mxu_weights = {"w_gt_s", "w_gt_m", "w_log_x", "w_proj", "w_ih", "w_hh"}
    weights = [params[k].astype(compute_dtype) if k in mxu_weights
               else params[k].astype(jnp.float32) for k in weight_names]
    weight_bytes = int(sum(int(w.size) * w.dtype.itemsize for w in weights))
    in_item = jnp.dtype(compute_dtype).itemsize

    # Per-generation VMEM budget (~96 MiB v5e/v6e, ~48 MiB v7x) -> graph tile bt.
    try:
        vmem_cap = int(pltpu.get_tpu_info().vmem_capacity_bytes)
    except Exception:
        vmem_cap = 64 * 1024 * 1024      # conservative fallback (v7x-sized)
    vmem_budget = (vmem_cap * 3) // 4

    # Per-graph VMEM: double-buffered node tile + output tiles + f32 working set.
    per_graph = (2 * N * D * in_item
                 + 2 * (D + n_layers * N) * 4
                 + (6 * N * D + 10 * D + 2 * n_layers * N) * 4)
    avail = vmem_budget - 2 * weight_bytes - (4 << 20)       # weights + slack
    bt = max(8, avail // max(per_graph, 1))
    if block_b is not None:
        bt = min(bt, max(8, block_b))
    bt = min(bt, 512, _round_up(B, 8))
    if B >= 16:
        bt = min(bt, _round_up((B + 1) // 2, 8))             # keep >=2 grid steps (v7x)
    bt = int(max(8, (bt // 8) * 8))                          # always a multiple of 8
    B_pad = _round_up(B, bt)                                 # pad B instead of bt=divisor

    x = node_feats.astype(compute_dtype)
    if B_pad != B:
        x = jnp.pad(x, ((0, B_pad - B), (0, 0), (0, 0)))

    kernel = functools.partial(readout_kernel, dim=D, n_layers=n_layers,
                               n_nodes=N, block_b=bt, compute_dtype=compute_dtype)

    # Advisory cost estimate for XLA scheduling around the custom call.
    flops = int(4 * B_pad * D * D                            # init transform
                + 2 * B_pad * N * D * n_layers               # logit matmul
                + B_pad * n_layers * (2 * N * D * D          # project_nodes
                                      + 2 * N * D            # context
                                      + 12 * D * D))         # fused GRU
    transcendentals = int(B_pad * n_layers * (N + 3 * D))
    bytes_accessed = int(B_pad * N * D * in_item + weight_bytes
                         + B_pad * (D + n_layers * N) * 4)

    grid = (B_pad // bt,)
    out_shape = [jax.ShapeDtypeStruct((B_pad, D), jnp.float32),
                 jax.ShapeDtypeStruct((B_pad, n_layers * N), jnp.float32)]
    out_specs = [pl.BlockSpec((bt, D), lambda b: (b, 0)),
                 pl.BlockSpec((bt, n_layers * N), lambda b: (b, 0))]

    def _const_spec(arr, single_buffer):
        zeros = (0,) * arr.ndim
        idx = lambda b, _z=zeros: _z
        if single_buffer:
            # Weights never change across grid steps -> no double buffering.
            return pl.BlockSpec(arr.shape, idx, pipeline_mode=pl.Buffered(1))
        return pl.BlockSpec(arr.shape, idx)

    def _call(single_buffer_weights):
        in_specs = ([pl.BlockSpec((bt, N, D), lambda b: (b, 0, 0))]
                    + [_const_spec(w, single_buffer_weights) for w in weights])
        return pl.pallas_call(
            kernel,
            grid=grid,
            in_specs=in_specs,
            out_specs=out_specs,
            out_shape=out_shape,
            compiler_params=pltpu.CompilerParams(
                dimension_semantics=("parallel",),
                vmem_limit_bytes=int(vmem_budget)),
            cost_estimate=pl.CostEstimate(flops=flops,
                                          transcendentals=transcendentals,
                                          bytes_accessed=bytes_accessed),
        )(x, *weights)

    try:
        out_g, out_w = _call(True)
    except Exception:
        # TODO(synk): pl.Buffered(1) weight specs unsupported on this jax build;
        # fall back to default double-buffered weight pipelining.
        out_g, out_w = _call(False)

    out_g = out_g[:B]
    out_w = out_w[:B].reshape(B, n_layers, N)
    return out_g, out_w


def init_params(key, dim, n_layers):
    ks = jax.random.split(key, 12)
    s = 1.0 / jnp.sqrt(jnp.float32(dim))
    return {
        # graph_unit_transform Linear(2D -> D), split into sum- and max- halves.
        "w_gt_s": jax.random.normal(ks[0], (dim, dim), jnp.float32) * s,
        "w_gt_m": jax.random.normal(ks[1], (dim, dim), jnp.float32) * s,
        "b_gt":   jax.random.normal(ks[2], (1, dim), jnp.float32) * 0.1,
        # compute_logits Linear(2D -> 1): x-half as one (D, L) column block,
        # g-half as per-layer row vectors (used via VPU dot in-kernel).
        "w_log_x": jax.random.normal(ks[3], (dim, n_layers), jnp.float32) * s,
        "w_log_g": jax.random.normal(ks[4], (n_layers, 1, dim), jnp.float32) * s,
        "b_log":   jax.random.normal(ks[5], (n_layers, 1, 1), jnp.float32) * 0.1,
        # project_nodes Linear(D -> D)
        "w_proj":  jax.random.normal(ks[6], (n_layers, dim, dim), jnp.float32) * s,
        "b_proj":  jax.random.normal(ks[7], (n_layers, 1, dim), jnp.float32) * 0.1,
        # GRUCell, fused gate columns [r | z | n]: one (D, 3D) matmul per stream.
        "w_ih":    jax.random.normal(ks[8], (n_layers, dim, 3 * dim), jnp.float32) * s,
        "w_hh":    jax.random.normal(ks[9], (n_layers, dim, 3 * dim), jnp.float32) * s,
        "b_ih":    jax.random.normal(ks[10], (n_layers, 1, 3 * dim), jnp.float32) * 0.1,
        "b_hh":    jax.random.normal(ks[11], (n_layers, 1, 3 * dim), jnp.float32) * 0.1,
    }


def ref_forward(node_feats, p, n_layers):
    """Pure-JAX f32 reference using the original concatenated formulation."""
    x = node_feats.astype(jnp.float32)
    B, N, D = x.shape
    w_gt = jnp.concatenate([p["w_gt_s"], p["w_gt_m"]], axis=0)            # [2D, D]
    g = jnp.concatenate([x.sum(1), x.max(1)], axis=-1) @ w_gt + p["b_gt"]
    final = jnp.zeros((B, D), jnp.float32)
    ws = []
    for l in range(n_layers):
        w_log = jnp.concatenate([p["w_log_g"][l].reshape(D, 1),
                                 p["w_log_x"][:, l:l + 1]], axis=0)       # [2D, 1]
        gb = jnp.broadcast_to(_lrelu(g)[:, None, :], x.shape)
        cat = jnp.concatenate([gb, x], axis=-1)
        z = _lrelu(cat @ w_log + p["b_log"][l])                           # [B, N, 1]
        a = jax.nn.softmax(z, axis=1)
        hv = _lrelu(x @ p["w_proj"][l] + p["b_proj"][l])
        ctx = _lrelu((hv * a).sum(1))                                     # [B, D]
        gi = ctx @ p["w_ih"][l] + p["b_ih"][l]                            # [B, 3D]
        gh = g @ p["w_hh"][l] + p["b_hh"][l]                              # [B, 3D]
        r = jax.nn.sigmoid(gi[:, :D] + gh[:, :D])
        u = jax.nn.sigmoid(gi[:, D:2 * D] + gh[:, D:2 * D])
        n = jnp.tanh(gi[:, 2 * D:] + r * gh[:, 2 * D:])
        g = _lrelu((1.0 - u) * n + u * g)
        final = final + g
        ws.append(a[..., 0])
    return final, jnp.stack(ws, axis=1)                                   # [B,D],[B,L,N]


if __name__ == "__main__":
    B, N, D, L = 8, 8, 32, 2
    key = jax.random.PRNGKey(0)
    k_x, k_p = jax.random.split(key)
    node_feats = jax.random.normal(k_x, (B, N, D), jnp.float32)
    params = init_params(k_p, D, L)

    ref_g, ref_w = ref_forward(node_feats, params, L)

    # Exact f32 path: strict check against the pure-JAX reference.
    out_g, out_w = dti_graph12_readout(node_feats, params, n_layers=L,
                                       compute_dtype=jnp.float32)
    jax.block_until_ready((out_g, out_w))
    assert jnp.allclose(out_g, ref_g, atol=2e-5, rtol=2e-5), \
        float(jnp.max(jnp.abs(out_g - ref_g)))
    assert jnp.allclose(out_w, ref_w, atol=2e-5, rtol=2e-5), \
        float(jnp.max(jnp.abs(out_w - ref_w)))

    # bf16-MXU path (production default): loose tolerance vs the f32 reference.
    bg, bw = dti_graph12_readout(node_feats, params, n_layers=L)
    jax.block_until_ready((bg, bw))
    assert jnp.allclose(bg, ref_g, atol=2e-1, rtol=1e-1), \
        float(jnp.max(jnp.abs(bg - ref_g)))
    assert jnp.allclose(bw, ref_w, atol=2e-2, rtol=1e-1), \
        float(jnp.max(jnp.abs(bw - ref_w)))

    print("KERNEL_OK")
</pallas_src>

<mosaic_0001>
module attributes {stable_mosaic.version = 11 : i64} {
  func.func @readout_kernel(%arg0: i32, %arg1: memref<8x8x32xf32, #tpu.memory_space<vmem>>, %arg2: memref<32x32xf32, #tpu.memory_space<vmem>>, %arg3: memref<32x32xf32, #tpu.memory_space<vmem>>, %arg4: memref<1x32xf32, #tpu.memory_space<vmem>>, %arg5: memref<32x2xf32, #tpu.memory_space<vmem>>, %arg6: memref<2x1x32xf32, #tpu.memory_space<vmem>>, %arg7: memref<2x1x1xf32, #tpu.memory_space<vmem>>, %arg8: memref<2x32x32xf32, #tpu.memory_space<vmem>>, %arg9: memref<2x1x32xf32, #tpu.memory_space<vmem>>, %arg10: memref<2x32x96xf32, #tpu.memory_space<vmem>>, %arg11: memref<2x32x96xf32, #tpu.memory_space<vmem>>, %arg12: memref<2x1x96xf32, #tpu.memory_space<vmem>>, %arg13: memref<2x1x96xf32, #tpu.memory_space<vmem>>, %arg14: memref<8x32xf32, #tpu.memory_space<vmem>>, %arg15: memref<8x16xf32, #tpu.memory_space<vmem>>) attributes {dimension_semantics = [#tpu.dimension_semantics<parallel>], iteration_bounds = array<i64: 1>, scalar_prefetch = 0 : i64, scratch_operands = 0 : i64, tpu.core_type = #tpu.core_type<tc>, window_params = [{transform_indices = @transform_0, window_bounds = array<i64: 8, 8, 32>}, {pipeline_mode = #tpu.pipeline_mode<synchronous>, transform_indices = @transform_1, window_bounds = array<i64: 32, 32>}, {pipeline_mode = #tpu.pipeline_mode<synchronous>, transform_indices = @transform_2, window_bounds = array<i64: 32, 32>}, {pipeline_mode = #tpu.pipeline_mode<synchronous>, transform_indices = @transform_3, window_bounds = array<i64: 1, 32>}, {pipeline_mode = #tpu.pipeline_mode<synchronous>, transform_indices = @transform_4, window_bounds = array<i64: 32, 2>}, {pipeline_mode = #tpu.pipeline_mode<synchronous>, transform_indices = @transform_5, window_bounds = array<i64: 2, 1, 32>}, {pipeline_mode = #tpu.pipeline_mode<synchronous>, transform_indices = @transform_6, window_bounds = array<i64: 2, 1, 1>}, {pipeline_mode = #tpu.pipeline_mode<synchronous>, transform_indices = @transform_7, window_bounds = array<i64: 2, 32, 32>}, {pipeline_mode = #tpu.pipeline_mode<synchronous>, transform_indices = @transform_8, window_bounds = array<i64: 2, 1, 32>}, {pipeline_mode = #tpu.pipeline_mode<synchronous>, transform_indices = @transform_9, window_bounds = array<i64: 2, 32, 96>}, {pipeline_mode = #tpu.pipeline_mode<synchronous>, transform_indices = @transform_10, window_bounds = array<i64: 2, 32, 96>}, {pipeline_mode = #tpu.pipeline_mode<synchronous>, transform_indices = @transform_11, window_bounds = array<i64: 2, 1, 96>}, {pipeline_mode = #tpu.pipeline_mode<synchronous>, transform_indices = @transform_12, window_bounds = array<i64: 2, 1, 96>}, {transform_indices = @transform_13, window_bounds = array<i64: 8, 32>}, {transform_indices = @transform_14, window_bounds = array<i64: 8, 16>}]} {
    %c0 = arith.constant 0 : index
    %c0_0 = arith.constant 0 : index
    %c0_1 = arith.constant 0 : index
    %0 = vector.load %arg1[%c0, %c0_0, %c0_1] : memref<8x8x32xf32, #tpu.memory_space<vmem>>, vector<8x8x32xf32>
    %1 = vector.shape_cast %0 : vector<8x8x32xf32> to vector<64x32xf32>
    %cst = arith.constant dense<0.000000e+00> : vector<8x32xf32>
    %2 = vector.multi_reduction <add>, %0, %cst [1] : vector<8x8x32xf32> to vector<8x32xf32>
    %cst_2 = arith.constant dense<0xFF800000> : vector<8x32xf32>
    %3 = vector.multi_reduction <maximumf>, %0, %cst_2 [1] : vector<8x8x32xf32> to vector<8x32xf32>
    %c0_3 = arith.constant 0 : index
    %c0_4 = arith.constant 0 : index
    %4 = vector.load %arg2[%c0_3, %c0_4] : memref<32x32xf32, #tpu.memory_space<vmem>>, vector<32x32xf32>
    %cst_5 = arith.constant dense<0.000000e+00> : vector<8x32xf32>
    %5 = tpu.matmul %2, %4, %cst_5 {dimension_numbers = #tpu.dot_dimension_numbers<[1], [0], [0], [1], [0, 0, 1, 1], [], []>} : vector<8x32xf32>, vector<32x32xf32>, vector<8x32xf32> -> vector<8x32xf32>
    %c0_6 = arith.constant 0 : index
    %c0_7 = arith.constant 0 : index
    %6 = vector.load %arg3[%c0_6, %c0_7] : memref<32x32xf32, #tpu.memory_space<vmem>>, vector<32x32xf32>
    %cst_8 = arith.constant dense<0.000000e+00> : vector<8x32xf32>
    %7 = tpu.matmul %3, %6, %cst_8 {dimension_numbers = #tpu.dot_dimension_numbers<[1], [0], [0], [1], [0, 0, 1, 1], [], []>} : vector<8x32xf32>, vector<32x32xf32>, vector<8x32xf32> -> vector<8x32xf32>
    %8 = arith.addf %5, %7 : vector<8x32xf32>
    %c0_9 = arith.constant 0 : index
    %c0_10 = arith.constant 0 : index
    %9 = vector.load %arg4[%c0_9, %c0_10] : memref<1x32xf32, #tpu.memory_space<vmem>>, vector<1x32xf32>
    %10 = vector.broadcast %9 : vector<1x32xf32> to vector<8x32xf32>
    %11 = arith.addf %8, %10 : vector<8x32xf32>
    %c0_11 = arith.constant 0 : index
    %c0_12 = arith.constant 0 : index
    %12 = vector.load %arg5[%c0_11, %c0_12] : memref<32x2xf32, #tpu.memory_space<vmem>>, vector<32x2xf32>
    %cst_13 = arith.constant dense<0.000000e+00> : vector<64x2xf32>
    %13 = tpu.matmul %1, %12, %cst_13 {dimension_numbers = #tpu.dot_dimension_numbers<[1], [0], [0], [1], [0, 0, 1, 1], [], []>} : vector<64x32xf32>, vector<32x2xf32>, vector<64x2xf32> -> vector<64x2xf32>
    %14 = vector.shape_cast %13 : vector<64x2xf32> to vector<8x8x2xf32>
    %15 = tpu.transpose %14, [0, 2, 1] : vector<8x8x2xf32> -> vector<8x2x8xf32>
    %cst_14 = arith.constant 0.000000e+00 : f32
    %16 = vector.broadcast %cst_14 : f32 to vector<8x32xf32>
    %cst_15 = arith.constant 0.000000e+00 : f32
    %17 = vector.broadcast %cst_15 : f32 to vector<8x32xf32>
    %18 = arith.cmpf ogt, %11, %17 : vector<8x32xf32>
    %cst_16 = arith.constant 0.00999999977 : f32
    %19 = vector.broadcast %cst_16 : f32 to vector<8x32xf32>
    %20 = arith.mulf %19, %11 : vector<8x32xf32>
    %21 = arith.select %18, %11, %20 : vector<8x32xi1>, vector<8x32xf32>
    %c0_17 = arith.constant 0 : index
    %c0_18 = arith.constant 0 : index
    %c0_19 = arith.constant 0 : index
    %22 = vector.load %arg6[%c0_17, %c0_18, %c0_19] : memref<2x1x32xf32, #tpu.memory_space<vmem>>, vector<1x1x32xf32>
    %23 = vector.shape_cast %22 : vector<1x1x32xf32> to vector<1x32xf32>
    %24 = vector.broadcast %23 : vector<1x32xf32> to vector<8x32xf32>
    %25 = arith.mulf %21, %24 : vector<8x32xf32>
    %cst_20 = arith.constant dense<0.000000e+00> : vector<8xf32>
    %26 = vector.multi_reduction <add>, %25, %cst_20 [1] : vector<8x32xf32> to vector<8xf32>
    %27 = vector.shape_cast %26 : vector<8xf32> to vector<8x1xf32>
    %c0_21 = arith.constant 0 : index
    %c0_22 = arith.constant 0 : index
    %c0_23 = arith.constant 0 : index
    %28 = vector.load %arg7[%c0_21, %c0_22, %c0_23] : memref<2x1x1xf32, #tpu.memory_space<vmem>>, vector<1x1x1xf32>
    %29 = vector.shape_cast %28 : vector<1x1x1xf32> to vector<1x1xf32>
    %30 = vector.broadcast %29 : vector<1x1xf32> to vector<8x1xf32>
    %31 = arith.addf %27, %30 : vector<8x1xf32>
    %32 = vector.extract_strided_slice %15 {offsets = [0, 0, 0], sizes = [8, 1, 8], strides = [1, 1, 1]} : vector<8x2x8xf32> to vector<8x1x8xf32>
    %33 = vector.shape_cast %31 : vector<8x1xf32> to vector<8x1x1xf32>
    %34 = vector.broadcast %33 : vector<8x1x1xf32> to vector<8x1x8xf32>
    %35 = arith.addf %32, %34 : vector<8x1x8xf32>
    %cst_24 = arith.constant 0.000000e+00 : f32
    %36 = vector.broadcast %cst_24 : f32 to vector<8x1x8xf32>
    %37 = arith.cmpf ogt, %35, %36 : vector<8x1x8xf32>
    %cst_25 = arith.constant 0.00999999977 : f32
    %38 = vector.broadcast %cst_25 : f32 to vector<8x1x8xf32>
    %39 = arith.mulf %38, %35 : vector<8x1x8xf32>
    %40 = arith.select %37, %35, %39 : vector<8x1x8xi1>, vector<8x1x8xf32>
    %cst_26 = arith.constant dense<0xFF800000> : vector<8x1xf32>
    %41 = vector.multi_reduction <maximumf>, %40, %cst_26 [2] : vector<8x1x8xf32> to vector<8x1xf32>
    %42 = vector.shape_cast %41 : vector<8x1xf32> to vector<8x1x1xf32>
    %43 = vector.broadcast %42 : vector<8x1x1xf32> to vector<8x1x8xf32>
    %44 = arith.subf %40, %43 : vector<8x1x8xf32>
    %45 = math.exp %44 : vector<8x1x8xf32>
    %cst_27 = arith.constant dense<0.000000e+00> : vector<8x1xf32>
    %46 = vector.multi_reduction <add>, %45, %cst_27 [2] : vector<8x1x8xf32> to vector<8x1xf32>
    %47 = vector.shape_cast %46 : vector<8x1xf32> to vector<8x1x1xf32>
    %48 = vector.broadcast %47 : vector<8x1x1xf32> to vector<8x1x8xf32>
    %49 = arith.divf %45, %48 : vector<8x1x8xf32>
    %c0_28 = arith.constant 0 : index
    %c0_29 = arith.constant 0 : index
    %c0_30 = arith.constant 0 : index
    %50 = vector.load %arg8[%c0_28, %c0_29, %c0_30] : memref<2x32x32xf32, #tpu.memory_space<vmem>>, vector<1x32x32xf32>
    %51 = vector.shape_cast %50 : vector<1x32x32xf32> to vector<32x32xf32>
    %cst_31 = arith.constant dense<0.000000e+00> : vector<64x32xf32>
    %52 = tpu.matmul %1, %51, %cst_31 {dimension_numbers = #tpu.dot_dimension_numbers<[1], [0], [0], [1], [0, 0, 1, 1], [], []>} : vector<64x32xf32>, vector<32x32xf32>, vector<64x32xf32> -> vector<64x32xf32>
    %c0_32 = arith.constant 0 : index
    %c0_33 = arith.constant 0 : index
    %c0_34 = arith.constant 0 : index
    %53 = vector.load %arg9[%c0_32, %c0_33, %c0_34] : memref<2x1x32xf32, #tpu.memory_space<vmem>>, vector<1x1x32xf32>
    %54 = vector.shape_cast %53 : vector<1x1x32xf32> to vector<1x32xf32>
    %55 = vector.broadcast %54 : vector<1x32xf32> to vector<64x32xf32>
    %56 = arith.addf %52, %55 : vector<64x32xf32>
    %cst_35 = arith.constant 0.000000e+00 : f32
    %57 = vector.broadcast %cst_35 : f32 to vector<64x32xf32>
    %58 = arith.cmpf ogt, %56, %57 : vector<64x32xf32>
    %cst_36 = arith.constant 0.00999999977 : f32
    %59 = vector.broadcast %cst_36 : f32 to vector<64x32xf32>
    %60 = arith.mulf %59, %56 : vector<64x32xf32>
    %61 = arith.select %58, %56, %60 : vector<64x32xi1>, vector<64x32xf32>
    %62 = vector.shape_cast %61 : vector<64x32xf32> to vector<8x8x32xf32>
    "tpu.trace_start"() <{level = 10 : i32, message = "bqn,bnd->bqd"}> : () -> ()
    %cst_37 = arith.constant dense<0.000000e+00> : vector<8x1x32xf32>
    %63 = tpu.matmul %49, %62, %cst_37 {dimension_numbers = #tpu.dot_dimension_numbers<[2], [1], [1], [2], [0, 0, 0, 1, 1, 2], [0], [0]>} : vector<8x1x8xf32>, vector<8x8x32xf32>, vector<8x1x32xf32> -> vector<8x1x32xf32>
    "tpu.trace_stop"() : () -> ()
    %64 = vector.shape_cast %63 : vector<8x1x32xf32> to vector<8x32xf32>
    %cst_38 = arith.constant 0.000000e+00 : f32
    %65 = vector.broadcast %cst_38 : f32 to vector<8x32xf32>
    %66 = arith.cmpf ogt, %64, %65 : vector<8x32xf32>
    %cst_39 = arith.constant 0.00999999977 : f32
    %67 = vector.broadcast %cst_39 : f32 to vector<8x32xf32>
    %68 = arith.mulf %67, %64 : vector<8x32xf32>
    %69 = arith.select %66, %64, %68 : vector<8x32xi1>, vector<8x32xf32>
    %c0_40 = arith.constant 0 : index
    %c0_41 = arith.constant 0 : index
    %c0_42 = arith.constant 0 : index
    %70 = vector.load %arg10[%c0_40, %c0_41, %c0_42] : memref<2x32x96xf32, #tpu.memory_space<vmem>>, vector<1x32x96xf32>
    %71 = vector.shape_cast %70 : vector<1x32x96xf32> to vector<32x96xf32>
    %cst_43 = arith.constant dense<0.000000e+00> : vector<8x96xf32>
    %72 = tpu.matmul %69, %71, %cst_43 {dimension_numbers = #tpu.dot_dimension_numbers<[1], [0], [0], [1], [0, 0, 1, 1], [], []>} : vector<8x32xf32>, vector<32x96xf32>, vector<8x96xf32> -> vector<8x96xf32>
    %c0_44 = arith.constant 0 : index
    %c0_45 = arith.constant 0 : index
    %c0_46 = arith.constant 0 : index
    %73 = vector.load %arg12[%c0_44, %c0_45, %c0_46] : memref<2x1x96xf32, #tpu.memory_space<vmem>>, vector<1x1x96xf32>
    %74 = vector.shape_cast %73 : vector<1x1x96xf32> to vector<1x96xf32>
    %75 = vector.broadcast %74 : vector<1x96xf32> to vector<8x96xf32>
    %76 = arith.addf %72, %75 : vector<8x96xf32>
    %c0_47 = arith.constant 0 : index
    %c0_48 = arith.constant 0 : index
    %c0_49 = arith.constant 0 : index
    %77 = vector.load %arg11[%c0_47, %c0_48, %c0_49] : memref<2x32x96xf32, #tpu.memory_space<vmem>>, vector<1x32x96xf32>
    %78 = vector.shape_cast %77 : vector<1x32x96xf32> to vector<32x96xf32>
    %cst_50 = arith.constant dense<0.000000e+00> : vector<8x96xf32>
    %79 = tpu.matmul %11, %78, %cst_50 {dimension_numbers = #tpu.dot_dimension_numbers<[1], [0], [0], [1], [0, 0, 1, 1], [], []>} : vector<8x32xf32>, vector<32x96xf32>, vector<8x96xf32> -> vector<8x96xf32>
    %c0_51 = arith.constant 0 : index
    %c0_52 = arith.constant 0 : index
    %c0_53 = arith.constant 0 : index
    %80 = vector.load %arg13[%c0_51, %c0_52, %c0_53] : memref<2x1x96xf32, #tpu.memory_space<vmem>>, vector<1x1x96xf32>
    %81 = vector.shape_cast %80 : vector<1x1x96xf32> to vector<1x96xf32>
    %82 = vector.broadcast %81 : vector<1x96xf32> to vector<8x96xf32>
    %83 = arith.addf %79, %82 : vector<8x96xf32>
    %84 = vector.extract_strided_slice %76 {offsets = [0, 0], sizes = [8, 32], strides = [1, 1]} : vector<8x96xf32> to vector<8x32xf32>
    %85 = vector.extract_strided_slice %83 {offsets = [0, 0], sizes = [8, 32], strides = [1, 1]} : vector<8x96xf32> to vector<8x32xf32>
    %86 = arith.addf %84, %85 : vector<8x32xf32>
    %87 = arith.negf %86 : vector<8x32xf32>
    %88 = math.exp %87 : vector<8x32xf32>
    %cst_54 = arith.constant 1.000000e+00 : f32
    %89 = vector.broadcast %cst_54 : f32 to vector<8x32xf32>
    %90 = arith.addf %89, %88 : vector<8x32xf32>
    %91 = arith.divf %89, %90 : vector<8x32xf32>
    %92 = vector.extract_strided_slice %76 {offsets = [0, 32], sizes = [8, 32], strides = [1, 1]} : vector<8x96xf32> to vector<8x32xf32>
    %93 = vector.extract_strided_slice %83 {offsets = [0, 32], sizes = [8, 32], strides = [1, 1]} : vector<8x96xf32> to vector<8x32xf32>
    %94 = arith.addf %92, %93 : vector<8x32xf32>
    %95 = arith.negf %94 : vector<8x32xf32>
    %96 = math.exp %95 : vector<8x32xf32>
    %cst_55 = arith.constant 1.000000e+00 : f32
    %97 = vector.broadcast %cst_55 : f32 to vector<8x32xf32>
    %98 = arith.addf %97, %96 : vector<8x32xf32>
    %99 = arith.divf %97, %98 : vector<8x32xf32>
    %100 = vector.extract_strided_slice %76 {offsets = [0, 64], sizes = [8, 32], strides = [1, 1]} : vector<8x96xf32> to vector<8x32xf32>
    %101 = vector.extract_strided_slice %83 {offsets = [0, 64], sizes = [8, 32], strides = [1, 1]} : vector<8x96xf32> to vector<8x32xf32>
    %102 = arith.mulf %91, %101 : vector<8x32xf32>
    %103 = arith.addf %100, %102 : vector<8x32xf32>
    %104 = math.tanh %103 : vector<8x32xf32>
    %cst_56 = arith.constant 1.000000e+00 : f32
    %105 = vector.broadcast %cst_56 : f32 to vector<8x32xf32>
    %106 = arith.subf %105, %99 : vector<8x32xf32>
    %107 = arith.mulf %106, %104 : vector<8x32xf32>
    %108 = arith.mulf %99, %11 : vector<8x32xf32>
    %109 = arith.addf %107, %108 : vector<8x32xf32>
    %cst_57 = arith.constant 0.000000e+00 : f32
    %110 = vector.broadcast %cst_57 : f32 to vector<8x32xf32>
    %111 = arith.cmpf ogt, %109, %110 : vector<8x32xf32>
    %cst_58 = arith.constant 0.00999999977 : f32
    %112 = vector.broadcast %cst_58 : f32 to vector<8x32xf32>
    %113 = arith.mulf %112, %109 : vector<8x32xf32>
    %114 = arith.select %111, %109, %113 : vector<8x32xi1>, vector<8x32xf32>
    %115 = arith.addf %16, %114 : vector<8x32xf32>
    %116 = vector.shape_cast %49 : vector<8x1x8xf32> to vector<8x8xf32>
    %cst_59 = arith.constant 0.000000e+00 : f32
    %117 = vector.broadcast %cst_59 : f32 to vector<8x32xf32>
    %118 = arith.cmpf ogt, %114, %117 : vector<8x32xf32>
    %cst_60 = arith.constant 0.00999999977 : f32
    %119 = vector.broadcast %cst_60 : f32 to vector<8x32xf32>
    %120 = arith.mulf %119, %114 : vector<8x32xf32>
    %121 = arith.select %118, %114, %120 : vector<8x32xi1>, vector<8x32xf32>
    %c1 = arith.constant 1 : index
    %c0_61 = arith.constant 0 : index
    %c0_62 = arith.constant 0 : index
    %122 = vector.load %arg6[%c1, %c0_61, %c0_62] : memref<2x1x32xf32, #tpu.memory_space<vmem>>, vector<1x1x32xf32>
    %123 = vector.shape_cast %122 : vector<1x1x32xf32> to vector<1x32xf32>
    %124 = vector.broadcast %123 : vector<1x32xf32> to vector<8x32xf32>
    %125 = arith.mulf %121, %124 : vector<8x32xf32>
    %cst_63 = arith.constant dense<0.000000e+00> : vector<8xf32>
    %126 = vector.multi_reduction <add>, %125, %cst_63 [1] : vector<8x32xf32> to vector<8xf32>
    %127 = vector.shape_cast %126 : vector<8xf32> to vector<8x1xf32>
    %c1_64 = arith.constant 1 : index
    %c0_65 = arith.constant 0 : index
    %c0_66 = arith.constant 0 : index
    %128 = vector.load %arg7[%c1_64, %c0_65, %c0_66] : memref<2x1x1xf32, #tpu.memory_space<vmem>>, vector<1x1x1xf32>
    %129 = vector.shape_cast %128 : vector<1x1x1xf32> to vector<1x1xf32>
    %130 = vector.broadcast %129 : vector<1x1xf32> to vector<8x1xf32>
    %131 = arith.addf %127, %130 : vector<8x1xf32>
    %132 = vector.extract_strided_slice %15 {offsets = [0, 1, 0], sizes = [8, 1, 8], strides = [1, 1, 1]} : vector<8x2x8xf32> to vector<8x1x8xf32>
    %133 = vector.shape_cast %131 : vector<8x1xf32> to vector<8x1x1xf32>
    %134 = vector.broadcast %133 : vector<8x1x1xf32> to vector<8x1x8xf32>
    %135 = arith.addf %132, %134 : vector<8x1x8xf32>
    %cst_67 = arith.constant 0.000000e+00 : f32
    %136 = vector.broadcast %cst_67 : f32 to vector<8x1x8xf32>
    %137 = arith.cmpf ogt, %135, %136 : vector<8x1x8xf32>
    %cst_68 = arith.constant 0.00999999977 : f32
    %138 = vector.broadcast %cst_68 : f32 to vector<8x1x8xf32>
    %139 = arith.mulf %138, %135 : vector<8x1x8xf32>
    %140 = arith.select %137, %135, %139 : vector<8x1x8xi1>, vector<8x1x8xf32>
    %cst_69 = arith.constant dense<0xFF800000> : vector<8x1xf32>
    %141 = vector.multi_reduction <maximumf>, %140, %cst_69 [2] : vector<8x1x8xf32> to vector<8x1xf32>
    %142 = vector.shape_cast %141 : vector<8x1xf32> to vector<8x1x1xf32>
    %143 = vector.broadcast %142 : vector<8x1x1xf32> to vector<8x1x8xf32>
    %144 = arith.subf %140, %143 : vector<8x1x8xf32>
    %145 = math.exp %144 : vector<8x1x8xf32>
    %cst_70 = arith.constant dense<0.000000e+00> : vector<8x1xf32>
    %146 = vector.multi_reduction <add>, %145, %cst_70 [2] : vector<8x1x8xf32> to vector<8x1xf32>
    %147 = vector.shape_cast %146 : vector<8x1xf32> to vector<8x1x1xf32>
    %148 = vector.broadcast %147 : vector<8x1x1xf32> to vector<8x1x8xf32>
    %149 = arith.divf %145, %148 : vector<8x1x8xf32>
    %c1_71 = arith.constant 1 : index
    %c0_72 = arith.constant 0 : index
    %c0_73 = arith.constant 0 : index
    %150 = vector.load %arg8[%c1_71, %c0_72, %c0_73] : memref<2x32x32xf32, #tpu.memory_space<vmem>>, vector<1x32x32xf32>
    %151 = vector.shape_cast %150 : vector<1x32x32xf32> to vector<32x32xf32>
    %cst_74 = arith.constant dense<0.000000e+00> : vector<64x32xf32>
    %152 = tpu.matmul %1, %151, %cst_74 {dimension_numbers = #tpu.dot_dimension_numbers<[1], [0], [0], [1], [0, 0, 1, 1], [], []>} : vector<64x32xf32>, vector<32x32xf32>, vector<64x32xf32> -> vector<64x32xf32>
    %c1_75 = arith.constant 1 : index
    %c0_76 = arith.constant 0 : index
    %c0_77 = arith.constant 0 : index
    %153 = vector.load %arg9[%c1_75, %c0_76, %c0_77] : memref<2x1x32xf32, #tpu.memory_space<vmem>>, vector<1x1x32xf32>
    %154 = vector.shape_cast %153 : vector<1x1x32xf32> to vector<1x32xf32>
    %155 = vector.broadcast %154 : vector<1x32xf32> to vector<64x32xf32>
    %156 = arith.addf %152, %155 : vector<64x32xf32>
    %cst_78 = arith.constant 0.000000e+00 : f32
    %157 = vector.broadcast %cst_78 : f32 to vector<64x32xf32>
    %158 = arith.cmpf ogt, %156, %157 : vector<64x32xf32>
    %cst_79 = arith.constant 0.00999999977 : f32
    %159 = vector.broadcast %cst_79 : f32 to vector<64x32xf32>
    %160 = arith.mulf %159, %156 : vector<64x32xf32>
    %161 = arith.select %158, %156, %160 : vector<64x32xi1>, vector<64x32xf32>
    %162 = vector.shape_cast %161 : vector<64x32xf32> to vector<8x8x32xf32>
    "tpu.trace_start"() <{level = 10 : i32, message = "bqn,bnd->bqd"}> : () -> ()
    %cst_80 = arith.constant dense<0.000000e+00> : vector<8x1x32xf32>
    %163 = tpu.matmul %149, %162, %cst_80 {dimension_numbers = #tpu.dot_dimension_numbers<[2], [1], [1], [2], [0, 0, 0, 1, 1, 2], [0], [0]>} : vector<8x1x8xf32>, vector<8x8x32xf32>, vector<8x1x32xf32> -> vector<8x1x32xf32>
    "tpu.trace_stop"() : () -> ()
    %164 = vector.shape_cast %163 : vector<8x1x32xf32> to vector<8x32xf32>
    %cst_81 = arith.constant 0.000000e+00 : f32
    %165 = vector.broadcast %cst_81 : f32 to vector<8x32xf32>
    %166 = arith.cmpf ogt, %164, %165 : vector<8x32xf32>
    %cst_82 = arith.constant 0.00999999977 : f32
    %167 = vector.broadcast %cst_82 : f32 to vector<8x32xf32>
    %168 = arith.mulf %167, %164 : vector<8x32xf32>
    %169 = arith.select %166, %164, %168 : vector<8x32xi1>, vector<8x32xf32>
    %c1_83 = arith.constant 1 : index
    %c0_84 = arith.constant 0 : index
    %c0_85 = arith.constant 0 : index
    %170 = vector.load %arg10[%c1_83, %c0_84, %c0_85] : memref<2x32x96xf32, #tpu.memory_space<vmem>>, vector<1x32x96xf32>
    %171 = vector.shape_cast %170 : vector<1x32x96xf32> to vector<32x96xf32>
    %cst_86 = arith.constant dense<0.000000e+00> : vector<8x96xf32>
    %172 = tpu.matmul %169, %171, %cst_86 {dimension_numbers = #tpu.dot_dimension_numbers<[1], [0], [0], [1], [0, 0, 1, 1], [], []>} : vector<8x32xf32>, vector<32x96xf32>, vector<8x96xf32> -> vector<8x96xf32>
    %c1_87 = arith.constant 1 : index
    %c0_88 = arith.constant 0 : index
    %c0_89 = arith.constant 0 : index
    %173 = vector.load %arg12[%c1_87, %c0_88, %c0_89] : memref<2x1x96xf32, #tpu.memory_space<vmem>>, vector<1x1x96xf32>
    %174 = vector.shape_cast %173 : vector<1x1x96xf32> to vector<1x96xf32>
    %175 = vector.broadcast %174 : vector<1x96xf32> to vector<8x96xf32>
    %176 = arith.addf %172, %175 : vector<8x96xf32>
    %c1_90 = arith.constant 1 : index
    %c0_91 = arith.constant 0 : index
    %c0_92 = arith.constant 0 : index
    %177 = vector.load %arg11[%c1_90, %c0_91, %c0_92] : memref<2x32x96xf32, #tpu.memory_space<vmem>>, vector<1x32x96xf32>
    %178 = vector.shape_cast %177 : vector<1x32x96xf32> to vector<32x96xf32>
    %cst_93 = arith.constant dense<0.000000e+00> : vector<8x96xf32>
    %179 = tpu.matmul %114, %178, %cst_93 {dimension_numbers = #tpu.dot_dimension_numbers<[1], [0], [0], [1], [0, 0, 1, 1], [], []>} : vector<8x32xf32>, vector<32x96xf32>, vector<8x96xf32> -> vector<8x96xf32>
    %c1_94 = arith.constant 1 : index
    %c0_95 = arith.constant 0 : index
    %c0_96 = arith.constant 0 : index
    %180 = vector.load %arg13[%c1_94, %c0_95, %c0_96] : memref<2x1x96xf32, #tpu.memory_space<vmem>>, vector<1x1x96xf32>
    %181 = vector.shape_cast %180 : vector<1x1x96xf32> to vector<1x96xf32>
    %182 = vector.broadcast %181 : vector<1x96xf32> to vector<8x96xf32>
    %183 = arith.addf %179, %182 : vector<8x96xf32>
    %184 = vector.extract_strided_slice %176 {offsets = [0, 0], sizes = [8, 32], strides = [1, 1]} : vector<8x96xf32> to vector<8x32xf32>
    %185 = vector.extract_strided_slice %183 {offsets = [0, 0], sizes = [8, 32], strides = [1, 1]} : vector<8x96xf32> to vector<8x32xf32>
    %186 = arith.addf %184, %185 : vector<8x32xf32>
    %187 = arith.negf %186 : vector<8x32xf32>
    %188 = math.exp %187 : vector<8x32xf32>
    %cst_97 = arith.constant 1.000000e+00 : f32
    %189 = vector.broadcast %cst_97 : f32 to vector<8x32xf32>
    %190 = arith.addf %189, %188 : vector<8x32xf32>
    %191 = arith.divf %189, %190 : vector<8x32xf32>
    %192 = vector.extract_strided_slice %176 {offsets = [0, 32], sizes = [8, 32], strides = [1, 1]} : vector<8x96xf32> to vector<8x32xf32>
    %193 = vector.extract_strided_slice %183 {offsets = [0, 32], sizes = [8, 32], strides = [1, 1]} : vector<8x96xf32> to vector<8x32xf32>
    %194 = arith.addf %192, %193 : vector<8x32xf32>
    %195 = arith.negf %194 : vector<8x32xf32>
    %196 = math.exp %195 : vector<8x32xf32>
    %cst_98 = arith.constant 1.000000e+00 : f32
    %197 = vector.broadcast %cst_98 : f32 to vector<8x32xf32>
    %198 = arith.addf %197, %196 : vector<8x32xf32>
    %199 = arith.divf %197, %198 : vector<8x32xf32>
    %200 = vector.extract_strided_slice %176 {offsets = [0, 64], sizes = [8, 32], strides = [1, 1]} : vector<8x96xf32> to vector<8x32xf32>
    %201 = vector.extract_strided_slice %183 {offsets = [0, 64], sizes = [8, 32], strides = [1, 1]} : vector<8x96xf32> to vector<8x32xf32>
    %202 = arith.mulf %191, %201 : vector<8x32xf32>
    %203 = arith.addf %200, %202 : vector<8x32xf32>
    %204 = math.tanh %203 : vector<8x32xf32>
    %cst_99 = arith.constant 1.000000e+00 : f32
    %205 = vector.broadcast %cst_99 : f32 to vector<8x32xf32>
    %206 = arith.subf %205, %199 : vector<8x32xf32>
    %207 = arith.mulf %206, %204 : vector<8x32xf32>
    %208 = arith.mulf %199, %114 : vector<8x32xf32>
    %209 = arith.addf %207, %208 : vector<8x32xf32>
    %cst_100 = arith.constant 0.000000e+00 : f32
    %210 = vector.broadcast %cst_100 : f32 to vector<8x32xf32>
    %211 = arith.cmpf ogt, %209, %210 : vector<8x32xf32>
    %cst_101 = arith.constant 0.00999999977 : f32
    %212 = vector.broadcast %cst_101 : f32 to vector<8x32xf32>
    %213 = arith.mulf %212, %209 : vector<8x32xf32>
    %214 = arith.select %211, %209, %213 : vector<8x32xi1>, vector<8x32xf32>
    %215 = arith.addf %115, %214 : vector<8x32xf32>
    %216 = vector.shape_cast %149 : vector<8x1x8xf32> to vector<8x8xf32>
    %c0_102 = arith.constant 0 : index
    %c0_103 = arith.constant 0 : index
    %217 = vector.load %arg14[%c0_102, %c0_103] : memref<8x32xf32, #tpu.memory_space<vmem>>, vector<8x32xf32>
    tpu.vector_store %arg14[%c0_102, %c0_103], %215 {strides = array<i32>} : memref<8x32xf32, #tpu.memory_space<vmem>>, vector<8x32xf32>,
    %218 = tpu.concatenate %116, %216 in 1 : vector<8x8xf32>, vector<8x8xf32> -> vector<8x16xf32>
    %c0_104 = arith.constant 0 : index
    %c0_105 = arith.constant 0 : index
    %219 = vector.load %arg15[%c0_104, %c0_105] : memref<8x16xf32, #tpu.memory_space<vmem>>, vector<8x16xf32>
    tpu.vector_store %arg15[%c0_104, %c0_105], %218 {strides = array<i32>} : memref<8x16xf32, #tpu.memory_space<vmem>>, vector<8x16xf32>,
    return
  }
  func.func @transform_0(%arg0: i32) -> (i32, i32, i32) {
    %c0_i32 = arith.constant 0 : i32
    %c0_i32_0 = arith.constant 0 : i32
    %c0_i32_1 = arith.constant 0 : i32
    return %arg0, %c0_i32, %c0_i32_0 : i32, i32, i32
  }
  func.func @transform_1(%arg0: i32) -> (i32, i32) {
    %c0_i32 = arith.constant 0 : i32
    %c0_i32_0 = arith.constant 0 : i32
    %c0_i32_1 = arith.constant 0 : i32
    return %c0_i32, %c0_i32_0 : i32, i32
  }
  func.func @transform_2(%arg0: i32) -> (i32, i32) {
    %c0_i32 = arith.constant 0 : i32
    %c0_i32_0 = arith.constant 0 : i32
    %c0_i32_1 = arith.constant 0 : i32
    return %c0_i32, %c0_i32_0 : i32, i32
  }
  func.func @transform_3(%arg0: i32) -> (i32, i32) {
    %c0_i32 = arith.constant 0 : i32
    %c0_i32_0 = arith.constant 0 : i32
    %c0_i32_1 = arith.constant 0 : i32
    return %c0_i32, %c0_i32_0 : i32, i32
  }
  func.func @transform_4(%arg0: i32) -> (i32, i32) {
    %c0_i32 = arith.constant 0 : i32
    %c0_i32_0 = arith.constant 0 : i32
    %c0_i32_1 = arith.constant 0 : i32
    return %c0_i32, %c0_i32_0 : i32, i32
  }
  func.func @transform_5(%arg0: i32) -> (i32, i32, i32) {
    %c0_i32 = arith.constant 0 : i32
    %c0_i32_0 = arith.constant 0 : i32
    %c0_i32_1 = arith.constant 0 : i32
    %c0_i32_2 = arith.constant 0 : i32
    return %c0_i32, %c0_i32_0, %c0_i32_1 : i32, i32, i32
  }
  func.func @transform_6(%arg0: i32) -> (i32, i32, i32) {
    %c0_i32 = arith.constant 0 : i32
    %c0_i32_0 = arith.constant 0 : i32
    %c0_i32_1 = arith.constant 0 : i32
    %c0_i32_2 = arith.constant 0 : i32
    return %c0_i32, %c0_i32_0, %c0_i32_1 : i32, i32, i32
  }
  func.func @transform_7(%arg0: i32) -> (i32, i32, i32) {
    %c0_i32 = arith.constant 0 : i32
    %c0_i32_0 = arith.constant 0 : i32
    %c0_i32_1 = arith.constant 0 : i32
    %c0_i32_2 = arith.constant 0 : i32
    return %c0_i32, %c0_i32_0, %c0_i32_1 : i32, i32, i32
  }
  func.func @transform_8(%arg0: i32) -> (i32, i32, i32) {
    %c0_i32 = arith.constant 0 : i32
    %c0_i32_0 = arith.constant 0 : i32
    %c0_i32_1 = arith.constant 0 : i32
    %c0_i32_2 = arith.constant 0 : i32
    return %c0_i32, %c0_i32_0, %c0_i32_1 : i32, i32, i32
  }
  func.func @transform_9(%arg0: i32) -> (i32, i32, i32) {
    %c0_i32 = arith.constant 0 : i32
    %c0_i32_0 = arith.constant 0 : i32
    %c0_i32_1 = arith.constant 0 : i32
    %c0_i32_2 = arith.constant 0 : i32
    return %c0_i32, %c0_i32_0, %c0_i32_1 : i32, i32, i32
  }
  func.func @transform_10(%arg0: i32) -> (i32, i32, i32) {
    %c0_i32 = arith.constant 0 : i32
    %c0_i32_0 = arith.constant 0 : i32
    %c0_i32_1 = arith.constant 0 : i32
    %c0_i32_2 = arith.constant 0 : i32
    return %c0_i32, %c0_i32_0, %c0_i32_1 : i32, i32, i32
  }
  func.func @transform_11(%arg0: i32) -> (i32, i32, i32) {
    %c0_i32 = arith.constant 0 : i32
    %c0_i32_0 = arith.constant 0 : i32
    %c0_i32_1 = arith.constant 0 : i32
    %c0_i32_2 = arith.constant 0 : i32
    return %c0_i32, %c0_i32_0, %c0_i32_1 : i32, i32, i32
  }
  func.func @transform_12(%arg0: i32) -> (i32, i32, i32) {
    %c0_i32 = arith.constant 0 : i32
    %c0_i32_0 = arith.constant 0 : i32
    %c0_i32_1 = arith.constant 0 : i32
    %c0_i32_2 = arith.constant 0 : i32
    return %c0_i32, %c0_i32_0, %c0_i32_1 : i32, i32, i32
  }
  func.func @transform_13(%arg0: i32) -> (i32, i32) {
    %c0_i32 = arith.constant 0 : i32
    %c0_i32_0 = arith.constant 0 : i32
    return %arg0, %c0_i32 : i32, i32
  }
  func.func @transform_14(%arg0: i32) -> (i32, i32) {
    %c0_i32 = arith.constant 0 : i32
    %c0_i32_0 = arith.constant 0 : i32
    return %arg0, %c0_i32 : i32, i32
  }
}

module attributes {stable_mosaic.version = 11 : i64} {
  func.func @readout_kernel(%arg0: i32, %arg1: memref<8x8x32xf32, #tpu.memory_space<vmem>>, %arg2: memref<32x32xf32, #tpu.memory_space<vmem>>, %arg3: memref<32x32xf32, #tpu.memory_space<vmem>>, %arg4: memref<1x32xf32, #tpu.memory_space<vmem>>, %arg5: memref<32x2xf32, #tpu.memory_space<vmem>>, %arg6: memref<2x1x32xf32, #tpu.memory_space<vmem>>, %arg7: memref<2x1x1xf32, #tpu.memory_space<vmem>>, %arg8: memref<2x32x32xf32, #tpu.memory_space<vmem>>, %arg9: memref<2x1x32xf32, #tpu.memory_space<vmem>>, %arg10: memref<2x32x96xf32, #tpu.memory_space<vmem>>, %arg11: memref<2x32x96xf32, #tpu.memory_space<vmem>>, %arg12: memref<2x1x96xf32, #tpu.memory_space<vmem>>, %arg13: memref<2x1x96xf32, #tpu.memory_space<vmem>>, %arg14: memref<8x32xf32, #tpu.memory_space<vmem>>, %arg15: memref<8x16xf32, #tpu.memory_space<vmem>>) attributes {dimension_semantics = [#tpu.dimension_semantics<parallel>], iteration_bounds = array<i64: 1>, scalar_prefetch = 0 : i64, scratch_operands = 0 : i64, tpu.core_type = #tpu.core_type<tc>, window_params = [{transform_indices = @transform_0, window_bounds = array<i64: 8, 8, 32>}, {pipeline_mode = #tpu.pipeline_mode<synchronous>, transform_indices = @transform_1, window_bounds = array<i64: 32, 32>}, {pipeline_mode = #tpu.pipeline_mode<synchronous>, transform_indices = @transform_2, window_bounds = array<i64: 32, 32>}, {pipeline_mode = #tpu.pipeline_mode<synchronous>, transform_indices = @transform_3, window_bounds = array<i64: 1, 32>}, {pipeline_mode = #tpu.pipeline_mode<synchronous>, transform_indices = @transform_4, window_bounds = array<i64: 32, 2>}, {pipeline_mode = #tpu.pipeline_mode<synchronous>, transform_indices = @transform_5, window_bounds = array<i64: 2, 1, 32>}, {pipeline_mode = #tpu.pipeline_mode<synchronous>, transform_indices = @transform_6, window_bounds = array<i64: 2, 1, 1>}, {pipeline_mode = #tpu.pipeline_mode<synchronous>, transform_indices = @transform_7, window_bounds = array<i64: 2, 32, 32>}, {pipeline_mode = #tpu.pipeline_mode<synchronous>, transform_indices = @transform_8, window_bounds = array<i64: 2, 1, 32>}, {pipeline_mode = #tpu.pipeline_mode<synchronous>, transform_indices = @transform_9, window_bounds = array<i64: 2, 32, 96>}, {pipeline_mode = #tpu.pipeline_mode<synchronous>, transform_indices = @transform_10, window_bounds = array<i64: 2, 32, 96>}, {pipeline_mode = #tpu.pipeline_mode<synchronous>, transform_indices = @transform_11, window_bounds = array<i64: 2, 1, 96>}, {pipeline_mode = #tpu.pipeline_mode<synchronous>, transform_indices = @transform_12, window_bounds = array<i64: 2, 1, 96>}, {transform_indices = @transform_13, window_bounds = array<i64: 8, 32>}, {transform_indices = @transform_14, window_bounds = array<i64: 8, 16>}]} {
    %c0 = arith.constant 0 : index
    %c0_0 = arith.constant 0 : index
    %c0_1 = arith.constant 0 : index
    %0 = vector.load %arg1[%c0, %c0_0, %c0_1] : memref<8x8x32xf32, #tpu.memory_space<vmem>>, vector<8x8x32xf32>
    %1 = vector.shape_cast %0 : vector<8x8x32xf32> to vector<64x32xf32>
    %cst = arith.constant dense<0.000000e+00> : vector<8x32xf32>
    %2 = vector.multi_reduction <add>, %0, %cst [1] : vector<8x8x32xf32> to vector<8x32xf32>
    %cst_2 = arith.constant dense<0xFF800000> : vector<8x32xf32>
    %3 = vector.multi_reduction <maximumf>, %0, %cst_2 [1] : vector<8x8x32xf32> to vector<8x32xf32>
    %c0_3 = arith.constant 0 : index
    %c0_4 = arith.constant 0 : index
    %4 = vector.load %arg2[%c0_3, %c0_4] : memref<32x32xf32, #tpu.memory_space<vmem>>, vector<32x32xf32>
    %cst_5 = arith.constant dense<0.000000e+00> : vector<8x32xf32>
    %5 = tpu.matmul %2, %4, %cst_5 {dimension_numbers = #tpu.dot_dimension_numbers<[1], [0], [0], [1], [0, 0, 1, 1], [], []>} : vector<8x32xf32>, vector<32x32xf32>, vector<8x32xf32> -> vector<8x32xf32>
    %c0_6 = arith.constant 0 : index
    %c0_7 = arith.constant 0 : index
    %6 = vector.load %arg3[%c0_6, %c0_7] : memref<32x32xf32, #tpu.memory_space<vmem>>, vector<32x32xf32>
    %cst_8 = arith.constant dense<0.000000e+00> : vector<8x32xf32>
    %7 = tpu.matmul %3, %6, %cst_8 {dimension_numbers = #tpu.dot_dimension_numbers<[1], [0], [0], [1], [0, 0, 1, 1], [], []>} : vector<8x32xf32>, vector<32x32xf32>, vector<8x32xf32> -> vector<8x32xf32>
    %8 = arith.addf %5, %7 : vector<8x32xf32>
    %c0_9 = arith.constant 0 : index
    %c0_10 = arith.constant 0 : index
    %9 = vector.load %arg4[%c0_9, %c0_10] : memref<1x32xf32, #tpu.memory_space<vmem>>, vector<1x32xf32>
    %10 = vector.broadcast %9 : vector<1x32xf32> to vector<8x32xf32>
    %11 = arith.addf %8, %10 : vector<8x32xf32>
    %c0_11 = arith.constant 0 : index
    %c0_12 = arith.constant 0 : index
    %12 = vector.load %arg5[%c0_11, %c0_12] : memref<32x2xf32, #tpu.memory_space<vmem>>, vector<32x2xf32>
    %cst_13 = arith.constant dense<0.000000e+00> : vector<64x2xf32>
    %13 = tpu.matmul %1, %12, %cst_13 {dimension_numbers = #tpu.dot_dimension_numbers<[1], [0], [0], [1], [0, 0, 1, 1], [], []>} : vector<64x32xf32>, vector<32x2xf32>, vector<64x2xf32> -> vector<64x2xf32>
    %14 = vector.shape_cast %13 : vector<64x2xf32> to vector<8x8x2xf32>
    %15 = tpu.transpose %14, [0, 2, 1] : vector<8x8x2xf32> -> vector<8x2x8xf32>
    %cst_14 = arith.constant 0.000000e+00 : f32
    %16 = vector.broadcast %cst_14 : f32 to vector<8x32xf32>
    %cst_15 = arith.constant 0.000000e+00 : f32
    %17 = vector.broadcast %cst_15 : f32 to vector<8x32xf32>
    %18 = arith.cmpf ogt, %11, %17 : vector<8x32xf32>
    %cst_16 = arith.constant 0.00999999977 : f32
    %19 = vector.broadcast %cst_16 : f32 to vector<8x32xf32>
    %20 = arith.mulf %19, %11 : vector<8x32xf32>
    %21 = arith.select %18, %11, %20 : vector<8x32xi1>, vector<8x32xf32>
    %c0_17 = arith.constant 0 : index
    %c0_18 = arith.constant 0 : index
    %c0_19 = arith.constant 0 : index
    %22 = vector.load %arg6[%c0_17, %c0_18, %c0_19] : memref<2x1x32xf32, #tpu.memory_space<vmem>>, vector<1x1x32xf32>
    %23 = vector.shape_cast %22 : vector<1x1x32xf32> to vector<1x32xf32>
    %24 = vector.broadcast %23 : vector<1x32xf32> to vector<8x32xf32>
    %25 = arith.mulf %21, %24 : vector<8x32xf32>
    %cst_20 = arith.constant dense<0.000000e+00> : vector<8xf32>
    %26 = vector.multi_reduction <add>, %25, %cst_20 [1] : vector<8x32xf32> to vector<8xf32>
    %27 = vector.shape_cast %26 : vector<8xf32> to vector<8x1xf32>
    %c0_21 = arith.constant 0 : index
    %c0_22 = arith.constant 0 : index
    %c0_23 = arith.constant 0 : index
    %28 = vector.load %arg7[%c0_21, %c0_22, %c0_23] : memref<2x1x1xf32, #tpu.memory_space<vmem>>, vector<1x1x1xf32>
    %29 = vector.shape_cast %28 : vector<1x1x1xf32> to vector<1x1xf32>
    %30 = vector.broadcast %29 : vector<1x1xf32> to vector<8x1xf32>
    %31 = arith.addf %27, %30 : vector<8x1xf32>
    %32 = vector.extract_strided_slice %15 {offsets = [0, 0, 0], sizes = [8, 1, 8], strides = [1, 1, 1]} : vector<8x2x8xf32> to vector<8x1x8xf32>
    %33 = vector.shape_cast %31 : vector<8x1xf32> to vector<8x1x1xf32>
    %34 = vector.broadcast %33 : vector<8x1x1xf32> to vector<8x1x8xf32>
    %35 = arith.addf %32, %34 : vector<8x1x8xf32>
    %cst_24 = arith.constant 0.000000e+00 : f32
    %36 = vector.broadcast %cst_24 : f32 to vector<8x1x8xf32>
    %37 = arith.cmpf ogt, %35, %36 : vector<8x1x8xf32>
    %cst_25 = arith.constant 0.00999999977 : f32
    %38 = vector.broadcast %cst_25 : f32 to vector<8x1x8xf32>
    %39 = arith.mulf %38, %35 : vector<8x1x8xf32>
    %40 = arith.select %37, %35, %39 : vector<8x1x8xi1>, vector<8x1x8xf32>
    %cst_26 = arith.constant dense<0xFF800000> : vector<8x1xf32>
    %41 = vector.multi_reduction <maximumf>, %40, %cst_26 [2] : vector<8x1x8xf32> to vector<8x1xf32>
    %42 = vector.shape_cast %41 : vector<8x1xf32> to vector<8x1x1xf32>
    %43 = vector.broadcast %42 : vector<8x1x1xf32> to vector<8x1x8xf32>
    %44 = arith.subf %40, %43 : vector<8x1x8xf32>
    %45 = math.exp %44 : vector<8x1x8xf32>
    %cst_27 = arith.constant dense<0.000000e+00> : vector<8x1xf32>
    %46 = vector.multi_reduction <add>, %45, %cst_27 [2] : vector<8x1x8xf32> to vector<8x1xf32>
    %47 = vector.shape_cast %46 : vector<8x1xf32> to vector<8x1x1xf32>
    %48 = vector.broadcast %47 : vector<8x1x1xf32> to vector<8x1x8xf32>
    %49 = arith.divf %45, %48 : vector<8x1x8xf32>
    %c0_28 = arith.constant 0 : index
    %c0_29 = arith.constant 0 : index
    %c0_30 = arith.constant 0 : index
    %50 = vector.load %arg8[%c0_28, %c0_29, %c0_30] : memref<2x32x32xf32, #tpu.memory_space<vmem>>, vector<1x32x32xf32>
    %51 = vector.shape_cast %50 : vector<1x32x32xf32> to vector<32x32xf32>
    %cst_31 = arith.constant dense<0.000000e+00> : vector<64x32xf32>
    %52 = tpu.matmul %1, %51, %cst_31 {dimension_numbers = #tpu.dot_dimension_numbers<[1], [0], [0], [1], [0, 0, 1, 1], [], []>} : vector<64x32xf32>, vector<32x32xf32>, vector<64x32xf32> -> vector<64x32xf32>
    %c0_32 = arith.constant 0 : index
    %c0_33 = arith.constant 0 : index
    %c0_34 = arith.constant 0 : index
    %53 = vector.load %arg9[%c0_32, %c0_33, %c0_34] : memref<2x1x32xf32, #tpu.memory_space<vmem>>, vector<1x1x32xf32>
    %54 = vector.shape_cast %53 : vector<1x1x32xf32> to vector<1x32xf32>
    %55 = vector.broadcast %54 : vector<1x32xf32> to vector<64x32xf32>
    %56 = arith.addf %52, %55 : vector<64x32xf32>
    %cst_35 = arith.constant 0.000000e+00 : f32
    %57 = vector.broadcast %cst_35 : f32 to vector<64x32xf32>
    %58 = arith.cmpf ogt, %56, %57 : vector<64x32xf32>
    %cst_36 = arith.constant 0.00999999977 : f32
    %59 = vector.broadcast %cst_36 : f32 to vector<64x32xf32>
    %60 = arith.mulf %59, %56 : vector<64x32xf32>
    %61 = arith.select %58, %56, %60 : vector<64x32xi1>, vector<64x32xf32>
    %62 = vector.shape_cast %61 : vector<64x32xf32> to vector<8x8x32xf32>
    "tpu.trace_start"() <{level = 10 : i32, message = "bqn,bnd->bqd"}> : () -> ()
    %cst_37 = arith.constant dense<0.000000e+00> : vector<8x1x32xf32>
    %63 = tpu.matmul %49, %62, %cst_37 {dimension_numbers = #tpu.dot_dimension_numbers<[2], [1], [1], [2], [0, 0, 0, 1, 1, 2], [0], [0]>} : vector<8x1x8xf32>, vector<8x8x32xf32>, vector<8x1x32xf32> -> vector<8x1x32xf32>
    "tpu.trace_stop"() : () -> ()
    %64 = vector.shape_cast %63 : vector<8x1x32xf32> to vector<8x32xf32>
    %cst_38 = arith.constant 0.000000e+00 : f32
    %65 = vector.broadcast %cst_38 : f32 to vector<8x32xf32>
    %66 = arith.cmpf ogt, %64, %65 : vector<8x32xf32>
    %cst_39 = arith.constant 0.00999999977 : f32
    %67 = vector.broadcast %cst_39 : f32 to vector<8x32xf32>
    %68 = arith.mulf %67, %64 : vector<8x32xf32>
    %69 = arith.select %66, %64, %68 : vector<8x32xi1>, vector<8x32xf32>
    %c0_40 = arith.constant 0 : index
    %c0_41 = arith.constant 0 : index
    %c0_42 = arith.constant 0 : index
    %70 = vector.load %arg10[%c0_40, %c0_41, %c0_42] : memref<2x32x96xf32, #tpu.memory_space<vmem>>, vector<1x32x96xf32>
    %71 = vector.shape_cast %70 : vector<1x32x96xf32> to vector<32x96xf32>
    %cst_43 = arith.constant dense<0.000000e+00> : vector<8x96xf32>
    %72 = tpu.matmul %69, %71, %cst_43 {dimension_numbers = #tpu.dot_dimension_numbers<[1], [0], [0], [1], [0, 0, 1, 1], [], []>} : vector<8x32xf32>, vector<32x96xf32>, vector<8x96xf32> -> vector<8x96xf32>
    %c0_44 = arith.constant 0 : index
    %c0_45 = arith.constant 0 : index
    %c0_46 = arith.constant 0 : index
    %73 = vector.load %arg12[%c0_44, %c0_45, %c0_46] : memref<2x1x96xf32, #tpu.memory_space<vmem>>, vector<1x1x96xf32>
    %74 = vector.shape_cast %73 : vector<1x1x96xf32> to vector<1x96xf32>
    %75 = vector.broadcast %74 : vector<1x96xf32> to vector<8x96xf32>
    %76 = arith.addf %72, %75 : vector<8x96xf32>
    %c0_47 = arith.constant 0 : index
    %c0_48 = arith.constant 0 : index
    %c0_49 = arith.constant 0 : index
    %77 = vector.load %arg11[%c0_47, %c0_48, %c0_49] : memref<2x32x96xf32, #tpu.memory_space<vmem>>, vector<1x32x96xf32>
    %78 = vector.shape_cast %77 : vector<1x32x96xf32> to vector<32x96xf32>
    %cst_50 = arith.constant dense<0.000000e+00> : vector<8x96xf32>
    %79 = tpu.matmul %11, %78, %cst_50 {dimension_numbers = #tpu.dot_dimension_numbers<[1], [0], [0], [1], [0, 0, 1, 1], [], []>} : vector<8x32xf32>, vector<32x96xf32>, vector<8x96xf32> -> vector<8x96xf32>
    %c0_51 = arith.constant 0 : index
    %c0_52 = arith.constant 0 : index
    %c0_53 = arith.constant 0 : index
    %80 = vector.load %arg13[%c0_51, %c0_52, %c0_53] : memref<2x1x96xf32, #tpu.memory_space<vmem>>, vector<1x1x96xf32>
    %81 = vector.shape_cast %80 : vector<1x1x96xf32> to vector<1x96xf32>
    %82 = vector.broadcast %81 : vector<1x96xf32> to vector<8x96xf32>
    %83 = arith.addf %79, %82 : vector<8x96xf32>
    %84 = vector.extract_strided_slice %76 {offsets = [0, 0], sizes = [8, 32], strides = [1, 1]} : vector<8x96xf32> to vector<8x32xf32>
    %85 = vector.extract_strided_slice %83 {offsets = [0, 0], sizes = [8, 32], strides = [1, 1]} : vector<8x96xf32> to vector<8x32xf32>
    %86 = arith.addf %84, %85 : vector<8x32xf32>
    %87 = arith.negf %86 : vector<8x32xf32>
    %88 = math.exp %87 : vector<8x32xf32>
    %cst_54 = arith.constant 1.000000e+00 : f32
    %89 = vector.broadcast %cst_54 : f32 to vector<8x32xf32>
    %90 = arith.addf %89, %88 : vector<8x32xf32>
    %91 = arith.divf %89, %90 : vector<8x32xf32>
    %92 = vector.extract_strided_slice %76 {offsets = [0, 32], sizes = [8, 32], strides = [1, 1]} : vector<8x96xf32> to vector<8x32xf32>
    %93 = vector.extract_strided_slice %83 {offsets = [0, 32], sizes = [8, 32], strides = [1, 1]} : vector<8x96xf32> to vector<8x32xf32>
    %94 = arith.addf %92, %93 : vector<8x32xf32>
    %95 = arith.negf %94 : vector<8x32xf32>
    %96 = math.exp %95 : vector<8x32xf32>
    %cst_55 = arith.constant 1.000000e+00 : f32
    %97 = vector.broadcast %cst_55 : f32 to vector<8x32xf32>
    %98 = arith.addf %97, %96 : vector<8x32xf32>
    %99 = arith.divf %97, %98 : vector<8x32xf32>
    %100 = vector.extract_strided_slice %76 {offsets = [0, 64], sizes = [8, 32], strides = [1, 1]} : vector<8x96xf32> to vector<8x32xf32>
    %101 = vector.extract_strided_slice %83 {offsets = [0, 64], sizes = [8, 32], strides = [1, 1]} : vector<8x96xf32> to vector<8x32xf32>
    %102 = arith.mulf %91, %101 : vector<8x32xf32>
    %103 = arith.addf %100, %102 : vector<8x32xf32>
    %104 = math.tanh %103 : vector<8x32xf32>
    %cst_56 = arith.constant 1.000000e+00 : f32
    %105 = vector.broadcast %cst_56 : f32 to vector<8x32xf32>
    %106 = arith.subf %105, %99 : vector<8x32xf32>
    %107 = arith.mulf %106, %104 : vector<8x32xf32>
    %108 = arith.mulf %99, %11 : vector<8x32xf32>
    %109 = arith.addf %107, %108 : vector<8x32xf32>
    %cst_57 = arith.constant 0.000000e+00 : f32
    %110 = vector.broadcast %cst_57 : f32 to vector<8x32xf32>
    %111 = arith.cmpf ogt, %109, %110 : vector<8x32xf32>
    %cst_58 = arith.constant 0.00999999977 : f32
    %112 = vector.broadcast %cst_58 : f32 to vector<8x32xf32>
    %113 = arith.mulf %112, %109 : vector<8x32xf32>
    %114 = arith.select %111, %109, %113 : vector<8x32xi1>, vector<8x32xf32>
    %115 = arith.addf %16, %114 : vector<8x32xf32>
    %116 = vector.shape_cast %49 : vector<8x1x8xf32> to vector<8x8xf32>
    %cst_59 = arith.constant 0.000000e+00 : f32
    %117 = vector.broadcast %cst_59 : f32 to vector<8x32xf32>
    %118 = arith.cmpf ogt, %114, %117 : vector<8x32xf32>
    %cst_60 = arith.constant 0.00999999977 : f32
    %119 = vector.broadcast %cst_60 : f32 to vector<8x32xf32>
    %120 = arith.mulf %119, %114 : vector<8x32xf32>
    %121 = arith.select %118, %114, %120 : vector<8x32xi1>, vector<8x32xf32>
    %c1 = arith.constant 1 : index
    %c0_61 = arith.constant 0 : index
    %c0_62 = arith.constant 0 : index
    %122 = vector.load %arg6[%c1, %c0_61, %c0_62] : memref<2x1x32xf32, #tpu.memory_space<vmem>>, vector<1x1x32xf32>
    %123 = vector.shape_cast %122 : vector<1x1x32xf32> to vector<1x32xf32>
    %124 = vector.broadcast %123 : vector<1x32xf32> to vector<8x32xf32>
    %125 = arith.mulf %121, %124 : vector<8x32xf32>
    %cst_63 = arith.constant dense<0.000000e+00> : vector<8xf32>
    %126 = vector.multi_reduction <add>, %125, %cst_63 [1] : vector<8x32xf32> to vector<8xf32>
    %127 = vector.shape_cast %126 : vector<8xf32> to vector<8x1xf32>
    %c1_64 = arith.constant 1 : index
    %c0_65 = arith.constant 0 : index
    %c0_66 = arith.constant 0 : index
    %128 = vector.load %arg7[%c1_64, %c0_65, %c0_66] : memref<2x1x1xf32, #tpu.memory_space<vmem>>, vector<1x1x1xf32>
    %129 = vector.shape_cast %128 : vector<1x1x1xf32> to vector<1x1xf32>
    %130 = vector.broadcast %129 : vector<1x1xf32> to vector<8x1xf32>
    %131 = arith.addf %127, %130 : vector<8x1xf32>
    %132 = vector.extract_strided_slice %15 {offsets = [0, 1, 0], sizes = [8, 1, 8], strides = [1, 1, 1]} : vector<8x2x8xf32> to vector<8x1x8xf32>
    %133 = vector.shape_cast %131 : vector<8x1xf32> to vector<8x1x1xf32>
    %134 = vector.broadcast %133 : vector<8x1x1xf32> to vector<8x1x8xf32>
    %135 = arith.addf %132, %134 : vector<8x1x8xf32>
    %cst_67 = arith.constant 0.000000e+00 : f32
    %136 = vector.broadcast %cst_67 : f32 to vector<8x1x8xf32>
    %137 = arith.cmpf ogt, %135, %136 : vector<8x1x8xf32>
    %cst_68 = arith.constant 0.00999999977 : f32
    %138 = vector.broadcast %cst_68 : f32 to vector<8x1x8xf32>
    %139 = arith.mulf %138, %135 : vector<8x1x8xf32>
    %140 = arith.select %137, %135, %139 : vector<8x1x8xi1>, vector<8x1x8xf32>
    %cst_69 = arith.constant dense<0xFF800000> : vector<8x1xf32>
    %141 = vector.multi_reduction <maximumf>, %140, %cst_69 [2] : vector<8x1x8xf32> to vector<8x1xf32>
    %142 = vector.shape_cast %141 : vector<8x1xf32> to vector<8x1x1xf32>
    %143 = vector.broadcast %142 : vector<8x1x1xf32> to vector<8x1x8xf32>
    %144 = arith.subf %140, %143 : vector<8x1x8xf32>
    %145 = math.exp %144 : vector<8x1x8xf32>
    %cst_70 = arith.constant dense<0.000000e+00> : vector<8x1xf32>
    %146 = vector.multi_reduction <add>, %145, %cst_70 [2] : vector<8x1x8xf32> to vector<8x1xf32>
    %147 = vector.shape_cast %146 : vector<8x1xf32> to vector<8x1x1xf32>
    %148 = vector.broadcast %147 : vector<8x1x1xf32> to vector<8x1x8xf32>
    %149 = arith.divf %145, %148 : vector<8x1x8xf32>
    %c1_71 = arith.constant 1 : index
    %c0_72 = arith.constant 0 : index
    %c0_73 = arith.constant 0 : index
    %150 = vector.load %arg8[%c1_71, %c0_72, %c0_73] : memref<2x32x32xf32, #tpu.memory_space<vmem>>, vector<1x32x32xf32>
    %151 = vector.shape_cast %150 : vector<1x32x32xf32> to vector<32x32xf32>
    %cst_74 = arith.constant dense<0.000000e+00> : vector<64x32xf32>
    %152 = tpu.matmul %1, %151, %cst_74 {dimension_numbers = #tpu.dot_dimension_numbers<[1], [0], [0], [1], [0, 0, 1, 1], [], []>} : vector<64x32xf32>, vector<32x32xf32>, vector<64x32xf32> -> vector<64x32xf32>
    %c1_75 = arith.constant 1 : index
    %c0_76 = arith.constant 0 : index
    %c0_77 = arith.constant 0 : index
    %153 = vector.load %arg9[%c1_75, %c0_76, %c0_77] : memref<2x1x32xf32, #tpu.memory_space<vmem>>, vector<1x1x32xf32>
    %154 = vector.shape_cast %153 : vector<1x1x32xf32> to vector<1x32xf32>
    %155 = vector.broadcast %154 : vector<1x32xf32> to vector<64x32xf32>
    %156 = arith.addf %152, %155 : vector<64x32xf32>
    %cst_78 = arith.constant 0.000000e+00 : f32
    %157 = vector.broadcast %cst_78 : f32 to vector<64x32xf32>
    %158 = arith.cmpf ogt, %156, %157 : vector<64x32xf32>
    %cst_79 = arith.constant 0.00999999977 : f32
    %159 = vector.broadcast %cst_79 : f32 to vector<64x32xf32>
    %160 = arith.mulf %159, %156 : vector<64x32xf32>
    %161 = arith.select %158, %156, %160 : vector<64x32xi1>, vector<64x32xf32>
    %162 = vector.shape_cast %161 : vector<64x32xf32> to vector<8x8x32xf32>
    "tpu.trace_start"() <{level = 10 : i32, message = "bqn,bnd->bqd"}> : () -> ()
    %cst_80 = arith.constant dense<0.000000e+00> : vector<8x1x32xf32>
    %163 = tpu.matmul %149, %162, %cst_80 {dimension_numbers = #tpu.dot_dimension_numbers<[2], [1], [1], [2], [0, 0, 0, 1, 1, 2], [0], [0]>} : vector<8x1x8xf32>, vector<8x8x32xf32>, vector<8x1x32xf32> -> vector<8x1x32xf32>
    "tpu.trace_stop"() : () -> ()
    %164 = vector.shape_cast %163 : vector<8x1x32xf32> to vector<8x32xf32>
    %cst_81 = arith.constant 0.000000e+00 : f32
    %165 = vector.broadcast %cst_81 : f32 to vector<8x32xf32>
    %166 = arith.cmpf ogt, %164, %165 : vector<8x32xf32>
    %cst_82 = arith.constant 0.00999999977 : f32
    %167 = vector.broadcast %cst_82 : f32 to vector<8x32xf32>
    %168 = arith.mulf %167, %164 : vector<8x32xf32>
    %169 = arith.select %166, %164, %168 : vector<8x32xi1>, vector<8x32xf32>
    %c1_83 = arith.constant 1 : index
    %c0_84 = arith.constant 0 : index
    %c0_85 = arith.constant 0 : index
    %170 = vector.load %arg10[%c1_83, %c0_84, %c0_85] : memref<2x32x96xf32, #tpu.memory_space<vmem>>, vector<1x32x96xf32>
    %171 = vector.shape_cast %170 : vector<1x32x96xf32> to vector<32x96xf32>
    %cst_86 = arith.constant dense<0.000000e+00> : vector<8x96xf32>
    %172 = tpu.matmul %169, %171, %cst_86 {dimension_numbers = #tpu.dot_dimension_numbers<[1], [0], [0], [1], [0, 0, 1, 1], [], []>} : vector<8x32xf32>, vector<32x96xf32>, vector<8x96xf32> -> vector<8x96xf32>
    %c1_87 = arith.constant 1 : index
    %c0_88 = arith.constant 0 : index
    %c0_89 = arith.constant 0 : index
    %173 = vector.load %arg12[%c1_87, %c0_88, %c0_89] : memref<2x1x96xf32, #tpu.memory_space<vmem>>, vector<1x1x96xf32>
    %174 = vector.shape_cast %173 : vector<1x1x96xf32> to vector<1x96xf32>
    %175 = vector.broadcast %174 : vector<1x96xf32> to vector<8x96xf32>
    %176 = arith.addf %172, %175 : vector<8x96xf32>
    %c1_90 = arith.constant 1 : index
    %c0_91 = arith.constant 0 : index
    %c0_92 = arith.constant 0 : index
    %177 = vector.load %arg11[%c1_90, %c0_91, %c0_92] : memref<2x32x96xf32, #tpu.memory_space<vmem>>, vector<1x32x96xf32>
    %178 = vector.shape_cast %177 : vector<1x32x96xf32> to vector<32x96xf32>
    %cst_93 = arith.constant dense<0.000000e+00> : vector<8x96xf32>
    %179 = tpu.matmul %114, %178, %cst_93 {dimension_numbers = #tpu.dot_dimension_numbers<[1], [0], [0], [1], [0, 0, 1, 1], [], []>} : vector<8x32xf32>, vector<32x96xf32>, vector<8x96xf32> -> vector<8x96xf32>
    %c1_94 = arith.constant 1 : index
    %c0_95 = arith.constant 0 : index
    %c0_96 = arith.constant 0 : index
    %180 = vector.load %arg13[%c1_94, %c0_95, %c0_96] : memref<2x1x96xf32, #tpu.memory_space<vmem>>, vector<1x1x96xf32>
    %181 = vector.shape_cast %180 : vector<1x1x96xf32> to vector<1x96xf32>
    %182 = vector.broadcast %181 : vector<1x96xf32> to vector<8x96xf32>
    %183 = arith.addf %179, %182 : vector<8x96xf32>
    %184 = vector.extract_strided_slice %176 {offsets = [0, 0], sizes = [8, 32], strides = [1, 1]} : vector<8x96xf32> to vector<8x32xf32>
    %185 = vector.extract_strided_slice %183 {offsets = [0, 0], sizes = [8, 32], strides = [1, 1]} : vector<8x96xf32> to vector<8x32xf32>
    %186 = arith.addf %184, %185 : vector<8x32xf32>
    %187 = arith.negf %186 : vector<8x32xf32>
    %188 = math.exp %187 : vector<8x32xf32>
    %cst_97 = arith.constant 1.000000e+00 : f32
    %189 = vector.broadcast %cst_97 : f32 to vector<8x32xf32>
    %190 = arith.addf %189, %188 : vector<8x32xf32>
    %191 = arith.divf %189, %190 : vector<8x32xf32>
    %192 = vector.extract_strided_slice %176 {offsets = [0, 32], sizes = [8, 32], strides = [1, 1]} : vector<8x96xf32> to vector<8x32xf32>
    %193 = vector.extract_strided_slice %183 {offsets = [0, 32], sizes = [8, 32], strides = [1, 1]} : vector<8x96xf32> to vector<8x32xf32>
    %194 = arith.addf %192, %193 : vector<8x32xf32>
    %195 = arith.negf %194 : vector<8x32xf32>
    %196 = math.exp %195 : vector<8x32xf32>
    %cst_98 = arith.constant 1.000000e+00 : f32
    %197 = vector.broadcast %cst_98 : f32 to vector<8x32xf32>
    %198 = arith.addf %197, %196 : vector<8x32xf32>
    %199 = arith.divf %197, %198 : vector<8x32xf32>
    %200 = vector.extract_strided_slice %176 {offsets = [0, 64], sizes = [8, 32], strides = [1, 1]} : vector<8x96xf32> to vector<8x32xf32>
    %201 = vector.extract_strided_slice %183 {offsets = [0, 64], sizes = [8, 32], strides = [1, 1]} : vector<8x96xf32> to vector<8x32xf32>
    %202 = arith.mulf %191, %201 : vector<8x32xf32>
    %203 = arith.addf %200, %202 : vector<8x32xf32>
    %204 = math.tanh %203 : vector<8x32xf32>
    %cst_99 = arith.constant 1.000000e+00 : f32
    %205 = vector.broadcast %cst_99 : f32 to vector<8x32xf32>
    %206 = arith.subf %205, %199 : vector<8x32xf32>
    %207 = arith.mulf %206, %204 : vector<8x32xf32>
    %208 = arith.mulf %199, %114 : vector<8x32xf32>
    %209 = arith.addf %207, %208 : vector<8x32xf32>
    %cst_100 = arith.constant 0.000000e+00 : f32
    %210 = vector.broadcast %cst_100 : f32 to vector<8x32xf32>
    %211 = arith.cmpf ogt, %209, %210 : vector<8x32xf32>
    %cst_101 = arith.constant 0.00999999977 : f32
    %212 = vector.broadcast %cst_101 : f32 to vector<8x32xf32>
    %213 = arith.mulf %212, %209 : vector<8x32xf32>
    %214 = arith.select %211, %209, %213 : vector<8x32xi1>, vector<8x32xf32>
    %215 = arith.addf %115, %214 : vector<8x32xf32>
    %216 = vector.shape_cast %149 : vector<8x1x8xf32> to vector<8x8xf32>
    %c0_102 = arith.constant 0 : index
    %c0_103 = arith.constant 0 : index
    %217 = vector.load %arg14[%c0_102, %c0_103] : memref<8x32xf32, #tpu.memory_space<vmem>>, vector<8x32xf32>
    tpu.vector_store %arg14[%c0_102, %c0_103], %215 {strides = array<i32>} : memref<8x32xf32, #tpu.memory_space<vmem>>, vector<8x32xf32>,
    %218 = tpu.concatenate %116, %216 in 1 : vector<8x8xf32>, vector<8x8xf32> -> vector<8x16xf32>
    %c0_104 = arith.constant 0 : index
    %c0_105 = arith.constant 0 : index
    %219 = vector.load %arg15[%c0_104, %c0_105] : memref<8x16xf32, #tpu.memory_space<vmem>>, vector<8x16xf32>
    tpu.vector_store %arg15[%c0_104, %c0_105], %218 {strides = array<i32>} : memref<8x16xf32, #tpu.memory_space<vmem>>, vector<8x16xf32>,
    return
  }
  func.func @transform_0(%arg0: i32) -> (i32, i32, i32) {
    %c0_i32 = arith.constant 0 : i32
    %c0_i32_0 = arith.constant 0 : i32
    %c0_i32_1 = arith.constant 0 : i32
    return %arg0, %c0_i32, %c0_i32_0 : i32, i32, i32
  }
  func.func @transform_1(%arg0: i32) -> (i32, i32) {
    %c0_i32 = arith.constant 0 : i32
    %c0_i32_0 = arith.constant 0 : i32
    %c0_i32_1 = arith.constant 0 : i32
    return %c0_i32, %c0_i32_0 : i32, i32
  }
  func.func @transform_2(%arg0: i32) -> (i32, i32) {
    %c0_i32 = arith.constant 0 : i32
    %c0_i32_0 = arith.constant 0 : i32
    %c0_i32_1 = arith.constant 0 : i32
    return %c0_i32, %c0_i32_0 : i32, i32
  }
  func.func @transform_3(%arg0: i32) -> (i32, i32) {
    %c0_i32 = arith.constant 0 : i32
    %c0_i32_0 = arith.constant 0 : i32
    %c0_i32_1 = arith.constant 0 : i32
    return %c0_i32, %c0_i32_0 : i32, i32
  }
  func.func @transform_4(%arg0: i32) -> (i32, i32) {
    %c0_i32 = arith.constant 0 : i32
    %c0_i32_0 = arith.constant 0 : i32
    %c0_i32_1 = arith.constant 0 : i32
    return %c0_i32, %c0_i32_0 : i32, i32
  }
  func.func @transform_5(%arg0: i32) -> (i32, i32, i32) {
    %c0_i32 = arith.constant 0 : i32
    %c0_i32_0 = arith.constant 0 : i32
    %c0_i32_1 = arith.constant 0 : i32
    %c0_i32_2 = arith.constant 0 : i32
    return %c0_i32, %c0_i32_0, %c0_i32_1 : i32, i32, i32
  }
  func.func @transform_6(%arg0: i32) -> (i32, i32, i32) {
    %c0_i32 = arith.constant 0 : i32
    %c0_i32_0 = arith.constant 0 : i32
    %c0_i32_1 = arith.constant 0 : i32
    %c0_i32_2 = arith.constant 0 : i32
    return %c0_i32, %c0_i32_0, %c0_i32_1 : i32, i32, i32
  }
  func.func @transform_7(%arg0: i32) -> (i32, i32, i32) {
    %c0_i32 = arith.constant 0 : i32
    %c0_i32_0 = arith.constant 0 : i32
    %c0_i32_1 = arith.constant 0 : i32
    %c0_i32_2 = arith.constant 0 : i32
    return %c0_i32, %c0_i32_0, %c0_i32_1 : i32, i32, i32
  }
  func.func @transform_8(%arg0: i32) -> (i32, i32, i32) {
    %c0_i32 = arith.constant 0 : i32
    %c0_i32_0 = arith.constant 0 : i32
    %c0_i32_1 = arith.constant 0 : i32
    %c0_i32_2 = arith.constant 0 : i32
    return %c0_i32, %c0_i32_0, %c0_i32_1 : i32, i32, i32
  }
  func.func @transform_9(%arg0: i32) -> (i32, i32, i32) {
    %c0_i32 = arith.constant 0 : i32
    %c0_i32_0 = arith.constant 0 : i32
    %c0_i32_1 = arith.constant 0 : i32
    %c0_i32_2 = arith.constant 0 : i32
    return %c0_i32, %c0_i32_0, %c0_i32_1 : i32, i32, i32
  }
  func.func @transform_10(%arg0: i32) -> (i32, i32, i32) {
    %c0_i32 = arith.constant 0 : i32
    %c0_i32_0 = arith.constant 0 : i32
    %c0_i32_1 = arith.constant 0 : i32
    %c0_i32_2 = arith.constant 0 : i32
    return %c0_i32, %c0_i32_0, %c0_i32_1 : i32, i32, i32
  }
  func.func @transform_11(%arg0: i32) -> (i32, i32, i32) {
    %c0_i32 = arith.constant 0 : i32
    %c0_i32_0 = arith.constant 0 : i32
    %c0_i32_1 = arith.constant 0 : i32
    %c0_i32_2 = arith.constant 0 : i32
    return %c0_i32, %c0_i32_0, %c0_i32_1 : i32, i32, i32
  }
  func.func @transform_12(%arg0: i32) -> (i32, i32, i32) {
    %c0_i32 = arith.constant 0 : i32
    %c0_i32_0 = arith.constant 0 : i32
    %c0_i32_1 = arith.constant 0 : i32
    %c0_i32_2 = arith.constant 0 : i32
    return %c0_i32, %c0_i32_0, %c0_i32_1 : i32, i32, i32
  }
  func.func @transform_13(%arg0: i32) -> (i32, i32) {
    %c0_i32 = arith.constant 0 : i32
    %c0_i32_0 = arith.constant 0 : i32
    return %arg0, %c0_i32 : i32, i32
  }
  func.func @transform_14(%arg0: i32) -> (i32, i32) {
    %c0_i32 = arith.constant 0 : i32
    %c0_i32_0 = arith.constant 0 : i32
    return %arg0, %c0_i32 : i32, i32
  }
}

</mosaic_0001>

<bundles_post_ra>
// kernel: tpu_custom_call.1
= control target key start
LH: loop header
LB: loop body
LE: loop exit
PB: predicated region body
PF: predicated region fallthrough
CT: control target
= control target key end

     0   :  { %20 = vsyncpa [#allocation3], 0  ;;  %s4902_s0 = inlined_call_operand.hbm [shape: f32[8,8,32], index: 0, kind: input, shape index: {}]   ;;  %s4903_s1 = inlined_call_operand.hbm [shape: f32[32,32], index: 1, kind: input, shape index: {}]   ;;  %s4904_s2 = inlined_call_operand.hbm [shape: f32[32,32], index: 2, kind: input, shape index: {}]   ;;  %s4905_s3 = inlined_call_operand.hbm [shape: f32[1,32], index: 3, kind: input, shape index: {}]   ;;  %s4906_s4 = inlined_call_operand.vmem [shape: f32[32,2], index: 4, kind: input, shape index: {}]   ;;  %s4907_s5 = inlined_call_operand.hbm [shape: f32[2,1,32], index: 5, kind: input, shape index: {}]   ;;  %s4908_s6 = inlined_call_operand.vmem [shape: f32[2,1,1], index: 6, kind: input, shape index: {}]   ;;  %s4909_s7 = inlined_call_operand.vmem [shape: f32[2,32,32], index: 7, kind: input, shape index: {}]   ;;  %s4910_s8 = inlined_call_operand.vmem [shape: f32[2,1,32], index: 8, kind: input, shape index: {}]   ;;  %s4911_s9 = inlined_call_operand.hbm [shape: f32[2,32,96], index: 9, kind: input, shape index: {}]   ;;  %s4912_s10 = inlined_call_operand.hbm [shape: f32[2,32,96], index: 10, kind: input, shape index: {}]   ;;  %s4913_s11 = inlined_call_operand.vmem [shape: f32[2,1,96], index: 11, kind: input, shape index: {}]   ;;  %s4914_s12 = inlined_call_operand.vmem [shape: f32[2,1,96], index: 12, kind: input, shape index: {}]   ;;  %s4915_s13 = inlined_call_operand.hbm [shape: f32[8,32], index: 13, kind: output, shape index: {0}]   ;;  %s4916_s14 = inlined_call_operand.hbm [shape: f32[8,16], index: 14, kind: output, shape index: {1}]  }
   0x1   :  { %21 = vsyncpa [#allocation6], 0 }
   0x2   :  { %22 = vsyncpa [#allocation9], 0 }
   0x3   :  { %23 = vsyncpa [#allocation12], 0 }
   0x4   :  { %24 = vsyncpa [#allocation4], 0 }
   0x5   :  { %25 = vsyncpa [#allocation16], 0  ;;  %s4143_s29 = smov [#allocation5]   ;;  %s4144_s15 = smov [#allocation8]  }
   0x6   :  { %s43_s30 = sshll.u32 %s4143_s29, 4  ;;  %s68_s16 = sshll.u32 %s4144_s15, 4  ;;  %s44_s30 = int_to_ptr.vmem [resolvable:$true] %s43_s30  ;;  %s4239_s16 = int_to_ptr.vmem [resolvable:$true] %s68_s16 }
   0x7   :  { %s3933_s19 = scalar_lea.hbm %s4903_s1, 512 }
   0x8   :  { %p3934_p0 = scmp.ne.s32.totalorder %s4903_s1, %s3933_s19  ;;  %p3937_p1 = scmp.lt.u32.totalorder %s3933_s19, %s4903_s1 }
   0xa   :  { %p3939_p2 = pnand %p3937_p1, %p3934_p0 }
   0xc   :  { %3942 = shalt.err (!%p3939_p2)
}
   0xd   :  { %s3943_s24 = scalar_lea.vmem %s44_s30, 512  ;;  %p3948_p4 = scmp.lt.s32.totalorder %s44_s30, %s44_s30 }
   0xe   :  { %p3944_p3 = scmp.ne.s32.totalorder %s44_s30, %s3943_s24  ;;  %p3949_p5 = scmp.lt.s32.totalorder %s3943_s24, %s3943_s24 }
  0x10   :  { %p3950_p6 = por %p3949_p5, %p3948_p4 }
  0x12   :  { %p3951_p7 = pnand %p3950_p6, %p3944_p3 }
  0x14   :  { %3954 = shalt.err (!%p3951_p7)
}
  0x15   :  { %s4145_s25 = smov 128   ;;  %s4146_s26 = smov 8  }
  0x16   :  { %49 = dma.hbm_to_vmem [thread:$0]  %s4903_s1, 512, %s44_s30, [#allocation6], %s4145_s25, %s4145_s25, %s4146_s26  }
  0x17   :  { %s3955_s17 = scalar_lea.hbm %s4905_s3, 16 }
  0x18   :  { %p3956_p8 = scmp.ne.s32.totalorder %s4905_s3, %s3955_s17  ;;  %p3959_p9 = scmp.lt.u32.totalorder %s3955_s17, %s4905_s3 }
  0x1a   :  { %p3961_p10 = pnand %p3959_p9, %p3956_p8 }
  0x1c   :  { %3964 = shalt.err (!%p3961_p10)
}
  0x1d   :  { %s3965_s22 = scalar_lea.vmem %s4239_s16, 16  ;;  %s3969_s1 = scalar_lea.vmem %s4239_s16, 32 }
  0x1e   :  { %p3966_p11 = scmp.ne.s32.totalorder %s4239_s16, %s3965_s22  ;;  %p3970_p12 = scmp.lt.s32.totalorder %s4239_s16, %s4239_s16 }
  0x1f   :  { %p3971_p13 = scmp.lt.s32.totalorder %s3969_s1, %s3965_s22 }
  0x21   :  { %p3972_p0 = por %p3971_p13, %p3970_p12 }
  0x23   :  { %p3973_p1 = pnand %p3972_p0, %p3966_p11 }
  0x25   :  { %3976 = shalt.err (!%p3973_p1)
}
  0x26   :  { %71 = dma.hbm_to_vmem [thread:$0]  %s4905_s3, 16, %s4239_s16, [#allocation9]  }
  0x27   :  { %s4147_s24 = smov [#allocation11]   ;;  %s4148_s28 = smov [#allocation2]  }
  0x28   :  { %s97_s27 = sshll.u32 %s4147_s24, 4  ;;  %s31_s29 = sshll.u32 %s4148_s28, 4  ;;  %s98_s27 = int_to_ptr.vmem [resolvable:$true] %s97_s27  ;;  %s4274_s29 = int_to_ptr.vmem [resolvable:$true] %s31_s29 }
  0x29   :  { %s3977_s18 = scalar_lea.hbm %s4911_s9, 1024 }
  0x2a   :  { %p3978_p2 = scmp.ne.s32.totalorder %s4911_s9, %s3977_s18  ;;  %p3981_p3 = scmp.lt.u32.totalorder %s3977_s18, %s4911_s9 }
  0x2c   :  { %p3983_p4 = pnand %p3981_p3, %p3978_p2 }
  0x2e   :  { %3986 = shalt.err (!%p3983_p4)
}
  0x2f   :  { %s3987_s3 = scalar_lea.vmem %s98_s27, 1024  ;;  %p3992_p6 = scmp.lt.s32.totalorder %s98_s27, %s98_s27 }
  0x30   :  { %p3988_p5 = scmp.ne.s32.totalorder %s98_s27, %s3987_s3  ;;  %p3993_p7 = scmp.lt.s32.totalorder %s3987_s3, %s3987_s3 }
  0x32   :  { %p3994_p8 = por %p3993_p7, %p3992_p6 }
  0x34   :  { %p3995_p9 = pnand %p3994_p8, %p3988_p5 }
  0x36   :  { %3998 = shalt.err (!%p3995_p9)
}
  0x37   :  { %103 = dma.hbm_to_vmem [thread:$0]  %s4911_s9, 1024, %s98_s27, [#allocation12], %s4145_s25, %s4145_s25, %s4146_s26  }
  0x38   :  { %s3999_s24 = scalar_lea.hbm %s4902_s0, 1024 }
  0x39   :  { %p4000_p10 = scmp.ne.s32.totalorder %s4902_s0, %s3999_s24  ;;  %p4003_p11 = scmp.lt.u32.totalorder %s3999_s24, %s4902_s0 }
  0x3b   :  { %p4005_p12 = pnand %p4003_p11, %p4000_p10 }
  0x3d   :  { %4008 = shalt.err (!%p4005_p12)
}
  0x3e   :  { %s4009_s19 = scalar_lea.vmem %s4274_s29, 1024  ;;  %p4014_p0 = scmp.lt.s32.totalorder %s4274_s29, %s4274_s29 }
  0x3f   :  { %p4010_p13 = scmp.ne.s32.totalorder %s4274_s29, %s4009_s19  ;;  %p4015_p1 = scmp.lt.s32.totalorder %s4009_s19, %s4009_s19 }
  0x41   :  { %p4016_p2 = por %p4015_p1, %p4014_p0 }
  0x43   :  { %p4017_p3 = pnand %p4016_p2, %p4010_p13 }
  0x45   :  { %4020 = shalt.err (!%p4017_p3)
}
  0x46   :  { %37 = dma.hbm_to_vmem [thread:$0]  %s4902_s0, 1024, %s4274_s29, [#allocation3], %s4145_s25, %s4145_s25, %s4146_s26  }
  0x47   :  { %s4149_s20 = smov [#allocation7]   ;;  %s4150_s22 = smov [#allocation10]  }
  0x48   :  { %s55_s21 = sshll.u32 %s4149_s20, 4  ;;  %s79_s3 = sshll.u32 %s4150_s22, 4  ;;  %s56_s21 = int_to_ptr.vmem [resolvable:$true] %s55_s21  ;;  %s4311_s3 = int_to_ptr.vmem [resolvable:$true] %s79_s3 }
  0x49   :  { %s4021_s30 = scalar_lea.hbm %s4904_s2, 512 }
  0x4a   :  { %p4022_p4 = scmp.ne.s32.totalorder %s4904_s2, %s4021_s30  ;;  %p4025_p5 = scmp.lt.u32.totalorder %s4021_s30, %s4904_s2 }
  0x4c   :  { %p4027_p6 = pnand %p4025_p5, %p4022_p4 }
  0x4e   :  { %4030 = shalt.err (!%p4027_p6)
}
  0x4f   :  { %s4031_s0 = scalar_lea.vmem %s56_s21, 512  ;;  %p4036_p8 = scmp.lt.s32.totalorder %s56_s21, %s56_s21 }
  0x50   :  { %p4032_p7 = scmp.ne.s32.totalorder %s56_s21, %s4031_s0  ;;  %p4037_p9 = scmp.lt.s32.totalorder %s4031_s0, %s4031_s0 }
  0x52   :  { %p4038_p10 = por %p4037_p9, %p4036_p8 }
  0x54   :  { %p4039_p11 = pnand %p4038_p10, %p4032_p7 }
  0x56   :  { %4042 = shalt.err (!%p4039_p11)
}
  0x57   :  { %61 = dma.hbm_to_vmem [thread:$0]  %s4904_s2, 512, %s56_s21, [#allocation6], %s4145_s25, %s4145_s25, %s4146_s26  }
  0x58   :  { %s4043_s9 = scalar_lea.hbm %s4907_s5, 32 }
  0x59   :  { %p4044_p12 = scmp.ne.s32.totalorder %s4907_s5, %s4043_s9  ;;  %p4047_p13 = scmp.lt.u32.totalorder %s4043_s9, %s4907_s5 }
  0x5b   :  { %p4049_p0 = pnand %p4047_p13, %p4044_p12 }
  0x5d   :  { %4052 = shalt.err (!%p4049_p0)
}
  0x5e   :  { %s4053_s1 = scalar_lea.vmem %s4311_s3, 32  ;;  %p4058_p2 = scmp.lt.s32.totalorder %s4311_s3, %s4311_s3 }
  0x5f   :  { %p4054_p1 = scmp.ne.s32.totalorder %s4311_s3, %s4053_s1  ;;  %p4059_p3 = scmp.lt.s32.totalorder %s4053_s1, %s4053_s1 }
  0x61   :  { %p4060_p4 = por %p4059_p3, %p4058_p2 }
  0x63   :  { %p4061_p5 = pnand %p4060_p4, %p4054_p1 }
  0x65   :  { %4064 = shalt.err (!%p4061_p5)
}
  0x66   :  { %s4151_s2 = smov 16   ;;  %s4152_s21 = smov 1  }
  0x67   :  { %85 = dma.hbm_to_vmem [thread:$0]  %s4907_s5, 32, %s4311_s3, [#allocation9], %s4151_s2, %s4151_s2, %s4152_s21  }
  0x68   :  { %s4153_s24 = smov [#allocation13]   ;;  %s4065_s29 = scalar_lea.hbm %s4912_s10, 1024 }
  0x69   :  { %s109_s28 = sshll.u32 %s4153_s24, 4  ;;  %p4066_p6 = scmp.ne.s32.totalorder %s4912_s10, %s4065_s29  ;;  %s110_s28 = int_to_ptr.vmem [resolvable:$true] %s109_s28 }
  0x6a   :  { %p4069_p7 = scmp.lt.u32.totalorder %s4065_s29, %s4912_s10 }
  0x6c   :  { %p4071_p8 = pnand %p4069_p7, %p4066_p6 }
  0x6e   :  { %4074 = shalt.err (!%p4071_p8)
}
  0x6f   :  { %s4075_s27 = scalar_lea.vmem %s110_s28, 1024  ;;  %p4080_p10 = scmp.lt.s32.totalorder %s110_s28, %s110_s28 }
  0x70   :  { %p4076_p9 = scmp.ne.s32.totalorder %s110_s28, %s4075_s27  ;;  %p4081_p11 = scmp.lt.s32.totalorder %s4075_s27, %s4075_s27 }
  0x72   :  { %p4082_p12 = por %p4081_p11, %p4080_p10 }
  0x74   :  { %p4083_p13 = pnand %p4082_p12, %p4076_p9 }
  0x76   :  { %4086 = shalt.err (!%p4083_p13)
}
  0x77   :  { %115 = dma.hbm_to_vmem [thread:$0]  %s4912_s10, 1024, %s110_s28, [#allocation12], %s4145_s25, %s4145_s25, %s4146_s26  }
  0x78   :  { %4131 = dma.done.wait [#allocation3], 1024  }
  0x79   :  { %4132 = vsyncadd [#allocation3], 4294966272 }
  0x7a   :  { %4133 = dma.done.wait [#allocation6], 1024  }
  0x7b   :  { %4134 = vsyncadd [#allocation6], 4294966272 }
  0x7c   :  { %4135 = dma.done.wait [#allocation9], 48  }
  0x7d   :  { %4136 = vsyncadd [#allocation9], 4294967248 }
  0x7e   :  { %4137 = dma.done.wait [#allocation12], 2048  }
  0x7f   :  { %4138 = vsyncadd [#allocation12], 4294965248  ;;  %v4154_v0 = vmov 0.0|0.0   ;;  %vm4155_vm0 = vmmov 0   ;;  %v4156_v1 = vmov 0.0   ;;  %v266_v2 = vld [vmem:[#allocation7] sm:$0xff] }
  0x80   :  { %3766 = vmatprep.subr.bf16.mxu0 %v4154_v0  ;;  %3772 = vmatprep.subr.bf16.mxu1 %v4154_v0  ;;  %v267_v3 = vld [vmem:[#allocation7 + $0x8] sm:$0xff]  ;;  %v262_v4 = vld [vmem:[#allocation5] sm:$0xff]  ;;  %v268_v7 = vld [vmem:[#allocation7 + $0x10] sm:$0xff]  ;;  %vm149_vm1 = vcmask 261120   ;;  %vm278_vm2 = vcmask 1041409   ;;  %vm280_vm3 = vcmask 1042434  }
  0x81   :  { %3568 = vmatprep.mubr.msk.f32.mxu0 %vm4155_vm0, %v4156_v1  ;;  %3579 = vmatprep.mubr.msk.f32.mxu1 %vm4155_vm0, %v4156_v1  ;;  %v3767_v5 = vpack.c.bf16 %v267_v3, %v266_v2  ;;  %v263_v6 = vld [vmem:[#allocation5 + $0x8] sm:$0xff]  ;;  %v269_v8 = vld [vmem:[#allocation7 + $0x18] sm:$0xff]  ;;  %v264_v10 = vld [vmem:[#allocation5 + $0x10] sm:$0xff]  ;;  %vm282_vm4 = vcmask 1043459   ;;  %vm284_vm5 = vcmask 1044484   ;;  %vm286_vm6 = vcmask 1045509  }
  0x82   :  { %v3773_v9 = vpack.c.bf16 %v263_v6, %v262_v4  ;;  %v265_v11 = vld [vmem:[#allocation5 + $0x18] sm:$0xff]  ;;  %v459_v12 = vld [vmem:[%s4906_s4] sm:$0xff]  ;;  %v3770_v13 = vpack.c.bf16 %v269_v8, %v268_v7  ;;  %v460_v15 = vld [vmem:[%s4906_s4 + $0x8] sm:$0xff]  ;;  %vm288_vm7 = vcmask 1046534   ;;  %vm290_vm8 = vcmask 1047559   ;;  %s4159_s3 = smov 64  }
  0x83   :  { %3768 = vmatpush3.bf16.msra.mxu0 %v3767_v5  ;;  %v3776_v14 = vpack.c.bf16 %v265_v11, %v264_v10  ;;  %v4372_v16 = vld [vmem:[#allocation2] sm:$0xff]  ;;  %v4374_v17 = vld [vmem:[#allocation2 + $0x8] sm:$0xff]  ;;  %v4377_v18 = vpack.c.bf16 %v460_v15, %v459_v12  ;;  %v4379_v19 = vld [vmem:[#allocation2 + $0x10] sm:$0xff]  ;;  %vm1016_vm11 = vcmask 57344   ;;  %s4160_s10 = smov 32   ;;  %s4161_s22 = smov 96  }
  0x84   :  { %3774 = vmatpush3.bf16.msra.mxu1 %v3773_v9  ;;  %3769 = vmatprep.subr.bf16.mxu0 %v4154_v0  ;;  %v4381_v20 = vld [vmem:[#allocation2 + $0x18] sm:$0xff]  ;;  %v4383_v21 = vld [vmem:[#allocation2 + $0x20] sm:$0xff]  ;;  %v206_v22 = vsel %vm149_vm1, %v4372_v16, -inf  ;;  %v213_v23 = vsel %vm149_vm1, %v4374_v17, -inf  ;;  %v4391_v24 = vsel %vm149_vm1, %v4372_v16, 0.0  ;;  %v4394_v25 = vld [vmem:[#allocation2 + $0x28] sm:$0xff] }
  0x85   :  { %3775 = vmatprep.subr.bf16.mxu1 %v4154_v0  ;;  %v4396_v26 = vld [vmem:[#allocation2 + $0x30] sm:$0xff]  ;;  %v4398_v27 = vld [vmem:[#allocation2 + $0x38] sm:$0xff]  ;;  %v207_v28 = vrot.slane %v206_v22, 4  ;;  %v214_v29 = vrot.slane %v213_v23, 4  ;;  %v220_v30 = vsel %vm149_vm1, %v4379_v19, -inf  ;;  %v227_v32 = vsel %vm149_vm1, %v4381_v20, -inf }
  0x86   :  { %v221_v31 = vrot.slane %v220_v30, 4  ;;  %v234_v33 = vsel %vm149_vm1, %v4383_v21, -inf  ;;  %v241_v34 = vsel %vm149_vm1, %v4394_v25, -inf  ;;  %v228_v37 = vrot.slane %v227_v32, 4 }
  0x87   :  { %3771 = vmatpush3.bf16.msra.mxu0 %v3770_v13  ;;  %v208_v35 = vmax.f32 %v206_v22, %v207_v28  ;;  %v215_v36 = vmax.f32 %v213_v23, %v214_v29  ;;  %v235_v38 = vrot.slane %v234_v33, 4  ;;  %v242_v40 = vrot.slane %v241_v34, 4 }
  0x88   :  { %3777 = vmatpush3.bf16.msra.mxu1 %v3776_v14  ;;  %3779 = vmatprep.subr.bf16.mxu0 %v4377_v18  ;;  %v222_v39 = vmax.f32 %v220_v30, %v221_v31  ;;  %v248_v41 = vsel %vm149_vm1, %v4396_v26, -inf  ;;  %v255_v42 = vsel %vm149_vm1, %v4398_v27, -inf  ;;  %v229_v45 = vmax.f32 %v227_v32, %v228_v37 }
  0x89   :  { %v209_v43 = vrot.slane %v208_v35, 2  ;;  %v216_v44 = vrot.slane %v215_v36, 2  ;;  %v236_v46 = vmax.f32 %v234_v33, %v235_v38  ;;  %v243_v48 = vmax.f32 %v241_v34, %v242_v40 }
  0x8a   :  { %v223_v47 = vrot.slane %v222_v39, 2  ;;  %v249_v49 = vrot.slane %v248_v41, 4  ;;  %v256_v50 = vrot.slane %v255_v42, 4  ;;  %v230_v53 = vrot.slane %v229_v45, 2 }
  0x8b   :  { %v210_v51 = vmax.f32 %v208_v35, %v209_v43  ;;  %v217_v52 = vmax.f32 %v215_v36, %v216_v44  ;;  %v237_v54 = vrot.slane %v236_v46, 2  ;;  %v244_v56 = vrot.slane %v243_v48, 2 }
  0x8c   :  { %v224_v55 = vmax.f32 %v222_v39, %v223_v47  ;;  %v250_v57 = vmax.f32 %v248_v41, %v249_v49  ;;  %v257_v58 = vmax.f32 %v255_v42, %v256_v50  ;;  %v231_v61 = vmax.f32 %v229_v45, %v230_v53 }
  0x8d   :  { %v211_v59 = vrot.slane %v210_v51, 1  ;;  %v218_v60 = vrot.slane %v217_v52, 1  ;;  %v238_v62 = vmax.f32 %v236_v46, %v237_v54  ;;  %v245_v2 = vmax.f32 %v243_v48, %v244_v56 }
  0x8e   :  { %v225_v63 = vrot.slane %v224_v55, 1  ;;  %v251_v3 = vrot.slane %v250_v57, 2  ;;  %v258_v4 = vrot.slane %v257_v58, 2  ;;  %v232_v7 = vrot.slane %v231_v61, 1 }
  0x8f   :  { %v212_v5 = vmax.f32 %v210_v51, %v211_v59  ;;  %v219_v6 = vmax.f32 %v217_v52, %v218_v60  ;;  %v239_v8 = vrot.slane %v238_v62, 1  ;;  %v246_v10 = vrot.slane %v245_v2, 1 }
  0x90   :  { %v226_v9 = vmax.f32 %v224_v55, %v225_v63  ;;  %v252_v11 = vmax.f32 %v250_v57, %v251_v3  ;;  %v259_v12 = vmax.f32 %v257_v58, %v258_v4  ;;  %v233_v13 = vmax.f32 %v231_v61, %v232_v7  ;;  %v462_v63 = vld [vmem:[%s4906_s4 + $0x18] sm:$0xff] }
  0x91   :  { %v240_v14 = vmax.f32 %v238_v62, %v239_v8  ;;  %v279_v15 = vsel %vm278_vm2, %v219_v6, %v212_v5  ;;  %v151_v22 = vrot.slane %v4391_v24, 4  ;;  %v247_v23 = vmax.f32 %v245_v2, %v246_v10  ;;  %v461_v62 = vld [vmem:[%s4906_s4 + $0x10] sm:$0xff] }
  0x92   :  { %v253_v28 = vrot.slane %v252_v11, 1  ;;  %v260_v29 = vrot.slane %v259_v12, 1  ;;  %v281_v30 = vsel %vm280_vm3, %v226_v9, %v279_v15  ;;  %v157_v33 = vsel %vm149_vm1, %v4374_v17, 0.0 }
  0x93   :  { %v283_v31 = vsel %vm282_vm4, %v233_v13, %v281_v30  ;;  %v152_v32 = vadd.f32 %v151_v22, %v4391_v24  ;;  %v164_v34 = vsel %vm149_vm1, %v4379_v19, 0.0  ;;  %v158_v38 = vrot.slane %v157_v33, 4 }
  0x94   :  { %v254_v35 = vmax.f32 %v252_v11, %v253_v28  ;;  %v261_v36 = vmax.f32 %v259_v12, %v260_v29  ;;  %v285_v37 = vsel %vm284_vm5, %v240_v14, %v283_v31  ;;  %v165_v41 = vrot.slane %v164_v34, 4 }
  0x95   :  { %v287_v39 = vsel %vm286_vm6, %v247_v23, %v285_v37  ;;  %v153_v40 = vrot.slane %v152_v32, 2  ;;  %v171_v42 = vsel %vm149_vm1, %v4381_v20, 0.0  ;;  %v159_v43 = vadd.f32 %v158_v38, %v157_v33 }
  0x96   :  { %v289_v24 = vsel %vm288_vm7, %v254_v35, %v287_v39  ;;  %v172_v44 = vrot.slane %v171_v42, 4  ;;  %v178_v45 = vsel %vm149_vm1, %v4383_v21, 0.0  ;;  %v166_v48 = vadd.f32 %v165_v41, %v164_v34 }
  0x97   :  { %v291_v46 = vsel %vm290_vm8, %v261_v36, %v289_v24  ;;  %v154_v47 = vadd.f32 %v153_v40, %v152_v32  ;;  %v179_v49 = vrot.slane %v178_v45, 4  ;;  %v160_v50 = vrot.slane %v159_v43, 2 }
  0x98   :  { %3569 = vmatmul.mubr.msk.f32.vlgmr.msra.gmra.mrb[0].mxu0 %vm149_vm1, %v291_v46  ;;  %v173_v51 = vadd.f32 %v172_v44, %v171_v42  ;;  %v185_v52 = vsel %vm149_vm1, %v4394_v25, 0.0  ;;  %v192_v53 = vsel %vm149_vm1, %v4396_v26, 0.0  ;;  %v167_v55 = vrot.slane %v166_v48, 2 }
  0x99   :  { %v155_v54 = vrot.slane %v154_v47, 1  ;;  %v180_v56 = vadd.f32 %v179_v49, %v178_v45  ;;  %v186_v57 = vrot.slane %v185_v52, 4  ;;  %3781 = vmatpush3.bf16.msra.mxu0 %v4377_v18  ;;  %3590 = vmatprep.mubr.msk.f32.mxu0 %vm149_vm1, %v4372_v16  ;;  %v161_v58 = vadd.f32 %v160_v50, %v159_v43 }
  0x9a   :  { %v174_v59 = vrot.slane %v173_v51, 2  ;;  %v193_v60 = vrot.slane %v192_v53, 4  ;;  %v199_v61 = vsel %vm149_vm1, %v4398_v27, 0.0  ;;  %v168_v3 = vadd.f32 %v167_v55, %v166_v48 }
  0x9b   :  { %v156_v2 = vadd.f32 %v155_v54, %v154_v47  ;;  %v181_v18 = vrot.slane %v180_v56, 2  ;;  %v187_v4 = vadd.f32 %v186_v57, %v185_v52  ;;  %v162_v5 = vrot.slane %v161_v58, 1  ;;  %v3397_v57 = vld [vmem:[#allocation8] ss:$0 sm:$0xff] }
  0x9c   :  { %v175_v6 = vadd.f32 %v174_v59, %v173_v51  ;;  %v194_v7 = vadd.f32 %v193_v60, %v192_v53  ;;  %v200_v8 = vrot.slane %v199_v61, 4  ;;  %v169_v9 = vrot.slane %v168_v3, 1 }
  0x9d   :  { %v182_v10 = vadd.f32 %v181_v18, %v180_v56  ;;  %v188_v11 = vrot.slane %v187_v4, 2  ;;  %v3782_v12 = vpack.c.bf16 %v462_v63, %v461_v62  ;;  %v163_v13 = vadd.f32 %v162_v5, %v161_v58 }
  0x9e   :  { %v176_v14 = vrot.slane %v175_v6, 1  ;;  %v195_v15 = vrot.slane %v194_v7, 2  ;;  %v201_v22 = vadd.f32 %v200_v8, %v199_v61  ;;  %v170_v23 = vadd.f32 %v169_v9, %v168_v3  ;;  %v3406_v61 = vld [vmem:[#allocation10] ss:$0 sm:$0xff] }
  0x9f   :  { %v183_v28 = vrot.slane %v182_v10, 1  ;;  %v189_v29 = vadd.f32 %v188_v11, %v187_v4  ;;  %3783 = vmatprep.subr.bf16.mxu0 %v3782_v12  ;;  %v372_v33 = vsel %vm278_vm2, %v163_v13, %v156_v2  ;;  %v4157_v2 = vmov 0  }
  0xa0   :  { %v177_v30 = vadd.f32 %v176_v14, %v175_v6  ;;  %v196_v31 = vadd.f32 %v195_v15, %v194_v7  ;;  %v202_v32 = vrot.slane %v201_v22, 2  ;;  %3785 = vmatpush3.bf16.msra.mxu0 %v3782_v12  ;;  %v373_v36 = vsel %vm280_vm3, %v170_v23, %v372_v33 }
  0xa1   :  { %v184_v34 = vadd.f32 %v183_v28, %v182_v10  ;;  %v190_v35 = vrot.slane %v189_v29, 1  ;;  %3622 = vmatprep.subr.mxu0 %v4156_v1  ;;  %v4158_v4 = vmov 1966171168   ;;  %v875_v6 = vlaneseq  ;;  %v3407_v10 = vld [vmem:[%s4908_s6] ss:$0 sm:$0xff] }
  0xa2   :  { %v197_v37 = vrot.slane %v196_v31, 1  ;;  %v203_v38 = vadd.f32 %v202_v32, %v201_v22  ;;  %v374_v39 = vsel %vm282_vm4, %v177_v30, %v373_v36  ;;  %v873_v5 = vunpack.c.l.s4 %v4158_v4 }
  0xa3   :  { %v191_v40 = vadd.f32 %v190_v35, %v189_v29  ;;  %v375_v41 = vsel %vm284_vm5, %v184_v34, %v374_v39  ;;  %3591 = vmatmul.mubr.msk.f32.vlgmr.msra.gmra.mrb[2].mxu0 %vm149_vm1, %v4374_v17  ;;  %v876_v9 = vshrl.u32 %v875_v6, 7  ;;  %v1107_v39 = vld [vmem:[%s4909_s7 + $0x10] sm:$0xff] }
  0xa4   :  { %v198_v42 = vadd.f32 %v197_v37, %v196_v31  ;;  %v204_v24 = vrot.slane %v203_v38, 1  ;;  %3593 = vmatprep.mubr.msk.f32.mxu0 %vm149_vm1, %v4379_v19  ;;  %v874_v8 = vunpack.c.0.s8 %v873_v5  ;;  %v1105_v37 = vld [vmem:[%s4909_s7] sm:$0xff] }
  0xa5   :  { %v376_v43 = vsel %vm286_vm6, %v191_v40, %v375_v41  ;;  %v1108_v41 = vld [vmem:[%s4909_s7 + $0x18] sm:$0xff] }
  0xa6   :  { %v205_v44 = vadd.f32 %v204_v24, %v203_v38  ;;  %v377_v45 = vsel %vm288_vm7, %v198_v42, %v376_v43  ;;  %v4484_v11 = vsub.s32 %v874_v8, %v876_v9  ;;  %v1106_v38 = vld [vmem:[%s4909_s7 + $0x8] sm:$0xff]  ;;  %v3790_v42 = vpack.c.bf16 %v1108_v41, %v1107_v39 }
  0xa7   :  { %3594 = vmatmul.mubr.msk.f32.gmra.mrb[4].mxu0 %vm149_vm1, %v4381_v20  ;;  %v3786_v40 = vpack.c.bf16 %v1106_v38, %v1105_v37 }
  0xa8   :  { %v378_v46 = vsel %vm290_vm8, %v205_v44, %v377_v45  ;;  %3596 = vmatprep.mubr.msk.f32.mxu0 %vm149_vm1, %v4383_v21 }
  0xa9   :  { %3580 = vmatmul.mubr.msk.f32.vlgmr.msra.gmra.mrb[0].mxu1 %vm149_vm1, %v378_v46  ;;  %3787 = vmatprep.subr.bf16.mxu1 %v3786_v40 }
  0xaa   :  { %3610 = vmatprep.mubr.msk.f32.mxu1 %vm149_vm1, %v4372_v16  ;;  %3789 = vmatpush3.bf16.msra.mxu1 %v3786_v40 }
  0xab   :  { %3597 = vmatmul.mubr.msk.f32.gmra.mrb[6].mxu0 %vm149_vm1, %v4394_v25  ;;  %3791 = vmatprep.subr.bf16.mxu1 %v3790_v42 }
  0xac   :  { %3599 = vmatprep.mubr.msk.f32.mxu0 %vm149_vm1, %v4396_v26 }
  0xae   :  { %3793 = vmatpush3.bf16.msra.mxu1 %v3790_v42 }
  0xaf   :  { %3600 = vmatmul.mubr.msk.f32.gmra.mrb[8].mxu0 %vm149_vm1, %v4398_v27  ;;  %3627 = vmatprep.subr.mxu1 %v4156_v1 }
  0xb0   :  { %3624 = vmatprep.mubr.msk.f32.mxu0 %vm4155_vm0, %v4156_v1 }
  0xb1   :  { %3611 = vmatmul.mubr.msk.f32.vlgmr.msra.gmra.mrb[2].mxu1 %vm149_vm1, %v4374_v17 }
  0xb2   :  { %3613 = vmatprep.mubr.msk.f32.mxu1 %vm149_vm1, %v4379_v19 }
  0xb5   :  { %3614 = vmatmul.mubr.msk.f32.gmra.mrb[4].mxu1 %vm149_vm1, %v4381_v20 }
  0xb6   :  { %3616 = vmatprep.mubr.msk.f32.mxu1 %vm149_vm1, %v4383_v21 }
  0xb9   :  { %3617 = vmatmul.mubr.msk.f32.gmra.mrb[6].mxu1 %vm149_vm1, %v4394_v25  ;;  %v4531_v25 = vsub.s32 0, %v876_v9 }
  0xba   :  { %3619 = vmatprep.mubr.msk.f32.mxu1 %vm149_vm1, %v4396_v26 }
  0xbd   :  { %3620 = vmatmul.mubr.msk.f32.gmra.mrb[8].mxu1 %vm149_vm1, %v4398_v27 }
  0xbe   :  { %3629 = vmatprep.mubr.msk.f32.mxu1 %vm4155_vm0, %v4156_v1 }
 0x16b   :  { %v360_v47 = vpop.f32.mrb[0].mxu0 }
 0x16c   :  { %v3570_v48 = vpop.f32.mrb[1].mxu0 }
 0x176   :  { %v3592_v49 = vpop.f32.mrb[2].mxu0 }
 0x177   :  { %624 = vxpose.xlu0.b32.start.end [1/1] (short) (narrow) %v3592_v49, 8  ;;  %v553_v50 = vpop.f32.mrb[3].mxu0 }
 0x178   :  { %592 = vxpose.xlu1.b32.start.end [1/1] (short) (narrow) %v553_v50, 8 }
 0x17a   :  { %v3595_v51 = vpop.f32.mrb[4].mxu0 }
 0x17b   :  { %v563_v16 = vpop.f32.mrb[5].mxu0 }
 0x17c   :  { %v447_v52 = vpop.f32.mrb[0].mxu1  ;;  %688 = vxpose.xlu1.b32.start.end [1/1] (short) (narrow) %v3595_v51, 8 }
 0x17d   :  { %v448_v53 = vadd.f32 %v447_v52, %v360_v47  ;;  %v3581_v54 = vpop.f32.mrb[1].mxu1 }
 0x17e   :  { %v3598_v55 = vpop.f32.mrb[6].mxu0 }
 0x17f   :  { %v573_v56 = vpop.f32.mrb[7].mxu0  ;;  %v4473_v58 = vadd.f32 %v3397_v57, %v448_v53 }
 0x180   :  { %656 = vxpose.xlu1.b32.start.end [1/1] (short) (narrow) %v563_v16, 8 }
 0x181   :  { %v849_v59 = vmul.f32 0.01, %v4473_v58  ;;  %vm848_vm9 = vcmp.gt.f32.partialorder %v4473_v58, 0.0 }
 0x182   :  { %v3601_v3 = vpop.f32.mrb[8].mxu0 }
 0x183   :  { %v850_v60 = vsel %vm848_vm9, %v4473_v58, %v849_v59  ;;  %v583_v18 = vpop.f32.mrb[9].mxu0 }
 0x184   :  { %720 = vxpose.xlu1.b32.start.end [1/1] (short) (narrow) %v573_v56, 8  ;;  %v858_v62 = vmul.f32 %v3406_v61, %v850_v60 }
 0x186   :  { %v859_v63 = vsel %vm149_vm1, %v858_v62, 0.0 }
 0x1a2   :  { %3848 = vset.pattern.permute.xlu1 %v4157_v2 }
 0x1a4   :  { %860 = vadd.xlane.f32.xlu0 %v859_v63 }
 0x1d1   :  { %752 = vxpose.xlu0.b32.start.end [1/1] (short) (narrow) %v3598_v55, 8 }
 0x1f7   :  { %v4479_v7 = vpop.trf.xlu0 }
 0x1f8   :  { %v4521_v17 = vpop.trf.xlu1 }
 0x1fa   :  { %3847 = vset.pattern.permute.xlu0 %v4157_v2 }
 0x1fc   :  { %v4523_v19 = vpop.trf.xlu1 }
 0x200   :  { %v4525_v20 = vpop.trf.xlu1 }
 0x204   :  { %v4529_v21 = vpop.trf.xlu1 }
 0x231   :  { %v861_v12 = vpop.xlane.xlu0 %860 }
 0x232   :  { %v869_v13 = vadd.f32 %v3407_v10, %v861_v12 }
 0x234   :  { %v878_v14 = vrot.slane %v869_v13, %v4484_v11  ;;  %v871_v23 = vcombine.high %v869_v13, %v869_v13 }
 0x236   :  { %v886_v15 = vcombine.high %v878_v14, %v878_v14  ;;  %v894_v22 = vrot.slane %v878_v14, %v4484_v11  ;;  %v885_v29 = vrot.slane %v871_v23, %v4484_v11 }
 0x238   :  { %921 = vperm.xlu0 %3847, %v894_v22   ;;  %v908_v28 = vrot.slane %v886_v15, %v4484_v11  ;;  %v916_v30 = vcombine.high %v894_v22, %v894_v22  ;;  %v901_v31 = vrot.slane %v885_v29, %v4484_v11  ;;  %v887_v33 = vcombine.high %v885_v29, %v885_v29 }
 0x23a   :  { %929 = vperm.xlu1 %3848, %v908_v28   ;;  %v918_v32 = vcombine.high %v908_v28, %v908_v28  ;;  %v915_v34 = vrot.slane %v887_v33, %v4484_v11  ;;  %v917_v35 = vcombine.high %v901_v31, %v901_v31 }
 0x23c   :  { %v919_v36 = vcombine.high %v915_v34, %v915_v34 }
 0x23e   :  { %937 = vperm.xlu1 %3848, %v916_v30  }
 0x242   :  { %953 = vperm.xlu1 %3848, %v901_v31  }
 0x246   :  { %945 = vperm.xlu1 %3848, %v918_v32  }
 0x24a   :  { %961 = vperm.xlu1 %3848, %v915_v34  }
 0x24e   :  { %969 = vperm.xlu1 %3848, %v917_v35  }
 0x251   :  { %v4527_v24 = vpop.trf.xlu0 }
 0x252   :  { %977 = vperm.xlu1 %3848, %v919_v36  }
 0x256   :  { %816 = vxpose.xlu0.b32.start.end [1/1] (short) (narrow) %v3601_v3, 8 }
 0x27b   :  { %784 = vxpose.xlu1.b32.start.end [1/1] (short) (narrow) %v583_v18, 8 }
 0x2b7   :  { %v922_v43 = vpop.permute.xlu0 %921 }
 0x2b8   :  { %v927_v26 = vrot.slane %v922_v43, %v4531_v25 }
 0x2b9   :  { %v930_v44 = vpop.permute.xlu1 %929 }
 0x2ba   :  { %v984_v27 = vadd.f32 %v927_v26, %v4521_v17  ;;  %v935_v45 = vrot.slane %v930_v44, %v4531_v25 }
 0x2bc   :  { %v985_v46 = vadd.f32 %v935_v45, %v4479_v7  ;;  %vm992_vm10 = vcmp.gt.f32.partialorder %v984_v27, 0.0  ;;  %v1000_v47 = vmul.f32 0.01, %v984_v27 }
 0x2bd   :  { %v938_v48 = vpop.permute.xlu1 %937 }
 0x2be   :  { %v943_v49 = vrot.slane %v938_v48, %v4531_v25  ;;  %v1008_v50 = vsel %vm992_vm10, %v984_v27, %v1000_v47  ;;  %vm993_vm12 = vcmp.gt.f32.partialorder %v985_v46, 0.0  ;;  %v1001_v51 = vmul.f32 0.01, %v985_v46 }
 0x2bf   :  { %v1017_v16 = vsel %vm1016_vm11, %v1008_v50, -inf }
 0x2c0   :  { %v986_v52 = vadd.f32 %v943_v49, %v4525_v20  ;;  %1018 = vmax.xlane.f32.xlu1 %v1017_v16  ;;  %v1009_v53 = vsel %vm993_vm12, %v985_v46, %v1001_v51 }
 0x2c1   :  { %v954_v54 = vpop.permute.xlu1 %953  ;;  %v1020_v55 = vsel %vm1016_vm11, %v1009_v53, -inf }
 0x2c2   :  { %v959_v56 = vrot.slane %v954_v54, %v4531_v25  ;;  %1021 = vmax.xlane.f32.xlu0 %v1020_v55  ;;  %vm994_vm13 = vcmp.gt.f32.partialorder %v986_v52, 0.0  ;;  %v1002_v57 = vmul.f32 0.01, %v986_v52 }
 0x2c4   :  { %v988_v59 = vadd.f32 %v959_v56, %v4529_v21  ;;  %v1010_v60 = vsel %vm994_vm13, %v986_v52, %v1002_v57 }
 0x2c5   :  { %v946_v61 = vpop.permute.xlu1 %945  ;;  %v1023_v62 = vsel %vm1016_vm11, %v1010_v60, -inf }
 0x2c6   :  { %v951_v63 = vrot.slane %v946_v61, %v4531_v25  ;;  %1024 = vmax.xlane.f32.xlu1 %v1023_v62  ;;  %vm996_vm14 = vcmp.gt.f32.partialorder %v988_v59, 0.0  ;;  %v1004_v2 = vmul.f32 0.01, %v988_v59 }
 0x2c8   :  { %v987_v3 = vadd.f32 %v951_v63, %v4523_v19  ;;  %v1012_v18 = vsel %vm996_vm14, %v988_v59, %v1004_v2 }
 0x2c9   :  { %v962_v4 = vpop.permute.xlu1 %961  ;;  %v1029_v5 = vsel %vm1016_vm11, %v1012_v18, -inf }
 0x2ca   :  { %v967_v6 = vrot.slane %v962_v4, %v4531_v25  ;;  %1030 = vmax.xlane.f32.xlu0 %v1029_v5  ;;  %vm995_vm15 = vcmp.gt.f32.partialorder %v987_v3, 0.0  ;;  %v1003_v8 = vmul.f32 0.01, %v987_v3 }
 0x2cc   :  { %v989_v9 = vadd.f32 %v967_v6, %v4527_v24  ;;  %v1011_v10 = vsel %vm995_vm15, %v987_v3, %v1003_v8 }
 0x2cd   :  { %v970_v12 = vpop.permute.xlu1 %969  ;;  %v1026_v13 = vsel %vm1016_vm11, %v1011_v10, -inf }
 0x2ce   :  { %1027 = vmax.xlane.f32.xlu1 %v1026_v13  ;;  %vm997_vm9 = vcmp.gt.f32.partialorder %v989_v9, 0.0  ;;  %v1005_v14 = vmul.f32 0.01, %v989_v9  ;;  %v975_v34 = vrot.slane %v970_v12, %v4531_v25  ;;  %v3612_v12 = vpop.f32.mrb[2].mxu1  ;;  %v3408_v13 = vld [vmem:[%s4910_s8] ss:$0 sm:$0xff] }
 0x2d0   :  { %v1013_v15 = vsel %vm997_vm9, %v989_v9, %v1005_v14  ;;  %v1182_v14 = vpop.f32.mrb[3].mxu1 }
 0x2d1   :  { %v1032_v22 = vsel %vm1016_vm11, %v1013_v15, -inf  ;;  %v978_v23 = vpop.permute.xlu1 %977 }
 0x2d2   :  { %1033 = vmax.xlane.f32.xlu1 %v1032_v22  ;;  %v983_v28 = vrot.slane %v978_v23, %v4531_v25  ;;  %v1183_v22 = vadd.f32 %v3408_v13, %v1182_v14 }
 0x2d4   :  { %vm1221_vm13 = vcmp.gt.f32.partialorder %v1183_v22, 0.0 }
 0x2d6   :  { %v4552_v29 = vpop.trf.xlu0 }
 0x2d7   :  { %v991_v30 = vadd.f32 %v983_v28, %v4552_v29  ;;  %v1229_v28 = vmul.f32 0.01, %v1183_v22 }
 0x2d9   :  { %vm999_vm10 = vcmp.gt.f32.partialorder %v991_v30, 0.0  ;;  %v1007_v31 = vmul.f32 0.01, %v991_v30 }
 0x2db   :  { %v1015_v32 = vsel %vm999_vm10, %v991_v30, %v1007_v31  ;;  %v3615_v30 = vpop.f32.mrb[4].mxu1  ;;  %vm1245_vm10 = vcmask 64512  }
 0x2dc   :  { %v1038_v33 = vsel %vm1016_vm11, %v1015_v32, -inf  ;;  %v1198_v31 = vadd.f32 %v3615_v30, %v3408_v13 }
 0x2dd   :  { %1039 = vmax.xlane.f32.xlu1 %v1038_v33  ;;  %v1237_v33 = vsel %vm1221_vm13, %v1183_v22, %v1229_v28 }
 0x2de   :  { %3623 = vmatpush3.msra.mxu0 %v1237_v33  ;;  %vm1224_vm9 = vcmp.gt.f32.partialorder %v1198_v31, 0.0 }
 0x2df   :  { %3632 = vmatprep.subr.mxu0 %v4156_v1 }
 0x2fb   :  { %v4557_v35 = vpop.trf.xlu1 }
 0x2fc   :  { %v990_v36 = vadd.f32 %v975_v34, %v4557_v35 }
 0x2fe   :  { %vm998_vm12 = vcmp.gt.f32.partialorder %v990_v36, 0.0  ;;  %v1006_v37 = vmul.f32 0.01, %v990_v36 }
 0x300   :  { %v4560_v38 = vsel %vm998_vm12, %v990_v36, %v1006_v37 }
 0x301   :  { %v1035_v39 = vsel %vm1016_vm11, %v4560_v38, -inf }
 0x302   :  { %1036 = vmax.xlane.f32.xlu0 %v1035_v39 }
 0x34d   :  { %v1019_v40 = vpop.xlane.xlu1 %1018 }
 0x34e   :  { %v1041_v41 = vsub.f32 %v1008_v50, %v1019_v40 }
 0x34f   :  { %v1022_v42 = vpop.xlane.xlu0 %1021 }
 0x350   :  { %v1049_v43 = vmul.f32 1.442695, %v1041_v41  ;;  %v1042_v26 = vsub.f32 %v1009_v53, %v1022_v42 }
 0x352   :  { %3849 = vpow2.f32 %v1049_v43  ;;  %v1051_v44 = vmul.f32 1.442695, %v1042_v26 }
 0x353   :  { %v1025_v27 = vpop.xlane.xlu1 %1024 }
 0x354   :  { %3851 = vpow2.f32 %v1051_v44  ;;  %v1043_v45 = vsub.f32 %v1010_v60, %v1025_v27 }
 0x356   :  { %v1053_v46 = vmul.f32 1.442695, %v1043_v45 }
 0x357   :  { %v1031_v47 = vpop.xlane.xlu0 %1030 }
 0x358   :  { %3853 = vpow2.f32 %v1053_v46  ;;  %v1045_v48 = vsub.f32 %v1012_v18, %v1031_v47 }
 0x35a   :  { %v1057_v49 = vmul.f32 1.442695, %v1045_v48 }
 0x35b   :  { %v1028_v51 = vpop.xlane.xlu1 %1027 }
 0x35c   :  { %v4564_v16 = vpop.eup %3849  ;;  %3855 = vpow2.f32 %v1057_v49  ;;  %v1044_v52 = vsub.f32 %v1011_v10, %v1028_v51 }
 0x35d   :  { %v1065_v50 = vsel %vm1016_vm11, %v4564_v16, 0.0 }
 0x35e   :  { %v4568_v54 = vpop.eup %3851  ;;  %v1055_v53 = vmul.f32 1.442695, %v1044_v52  ;;  %1066 = vadd.xlane.f32.xlu0 %v1065_v50 }
 0x35f   :  { %v1034_v55 = vpop.xlane.xlu1 %1033  ;;  %v1068_v56 = vsel %vm1016_vm11, %v4568_v54, 0.0 }
 0x360   :  { %3857 = vpow2.f32 %v1055_v53  ;;  %v1046_v57 = vsub.f32 %v1013_v15, %v1034_v55  ;;  %1069 = vadd.xlane.f32.xlu1 %v1068_v56  ;;  %v1188_v15 = vadd.f32 %v3612_v12, %v3408_v13  ;;  %v1232_v53 = vmul.f32 0.01, %v1198_v31 }
 0x362   :  { %v4572_v59 = vpop.eup %3853  ;;  %v1059_v60 = vmul.f32 1.442695, %v1046_v57  ;;  %v1230_v23 = vmul.f32 0.01, %v1188_v15  ;;  %vm1222_vm14 = vcmp.gt.f32.partialorder %v1188_v15, 0.0 }
 0x363   :  { %v1071_v61 = vsel %vm1016_vm11, %v4572_v59, 0.0 }
 0x364   :  { %3859 = vpow2.f32 %v1059_v60  ;;  %1072 = vadd.xlane.f32.xlu0 %v1071_v61  ;;  %v1238_v36 = vsel %vm1222_vm14, %v1188_v15, %v1230_v23 }
 0x365   :  { %3628 = vmatpush3.msra.mxu1 %v1238_v36 }
 0x366   :  { %v4576_v62 = vpop.eup %3855  ;;  %3637 = vmatprep.subr.mxu1 %v4156_v1 }
 0x367   :  { %v1077_v63 = vsel %vm1016_vm11, %v4576_v62, 0.0 }
 0x368   :  { %1078 = vadd.xlane.f32.xlu0 %v1077_v63 }
 0x36a   :  { %v4580_v2 = vpop.eup %3857  ;;  %v1040_v3 = vpop.xlane.xlu1 %1039 }
 0x36b   :  { %v1048_v18 = vsub.f32 %v1015_v32, %v1040_v3  ;;  %v1074_v4 = vsel %vm1016_vm11, %v4580_v2, 0.0  ;;  %v1192_v32 = vpop.f32.mrb[5].mxu1 }
 0x36c   :  { %1075 = vadd.xlane.f32.xlu1 %v1074_v4  ;;  %v1193_v34 = vadd.f32 %v3408_v13, %v1192_v32  ;;  %v3618_v37 = vpop.f32.mrb[6].mxu1 }
 0x36d   :  { %v1063_v5 = vmul.f32 1.442695, %v1048_v18  ;;  %v4596_v39 = vadd.f32 %v3618_v37, %v3408_v13  ;;  %v1202_v40 = vpop.f32.mrb[7].mxu1  ;;  %v1240_v18 = vsel %vm1224_vm9, %v1198_v31, %v1232_v53 }
 0x36e   :  { %v4584_v6 = vpop.eup %3859  ;;  %v1203_v41 = vadd.f32 %v3408_v13, %v1202_v40  ;;  %v3621_v44 = vpop.f32.mrb[8].mxu1  ;;  %vm1223_vm15 = vcmp.gt.f32.partialorder %v1193_v34, 0.0 }
 0x36f   :  { %3861 = vpow2.f32 %v1063_v5  ;;  %v1080_v8 = vsel %vm1016_vm11, %v4584_v6, 0.0  ;;  %v4600_v27 = vadd.f32 %v3621_v44, %v3408_v13  ;;  %v1212_v47 = vpop.f32.mrb[9].mxu1  ;;  %vm1226_vm13 = vcmp.gt.f32.partialorder %v4596_v39, 0.0 }
 0x370   :  { %1081 = vadd.xlane.f32.xlu1 %v1080_v8  ;;  %v1213_v48 = vadd.f32 %v3408_v13, %v1212_v47  ;;  %v1233_v3 = vmul.f32 0.01, %v1203_v41  ;;  %v1962_v47 = vld [vmem:[#allocation13 + $0x18] sm:$0xff] }
 0x371   :  { %v1236_v31 = vmul.f32 0.01, %v4600_v27  ;;  %vm1228_vm14 = vcmp.gt.f32.partialorder %v4600_v27, 0.0 }
 0x372   :  { %vm1227_vm12 = vcmp.gt.f32.partialorder %v1213_v48, 0.0 }
 0x373   :  { %v1244_v37 = vsel %vm1228_vm14, %v4600_v27, %v1236_v31 }
 0x379   :  { %v4588_v9 = vpop.eup %3861 }
 0x37a   :  { %v1086_v10 = vsel %vm1016_vm11, %v4588_v9, 0.0 }
 0x37b   :  { %1087 = vadd.xlane.f32.xlu1 %v1086_v10  ;;  %v1235_v10 = vmul.f32 0.01, %v1213_v48 }
 0x37d   :  { %v1243_v22 = vsel %vm1227_vm12, %v1213_v48, %v1235_v10 }
 0x38f   :  { %v1037_v42 = vpop.xlane.xlu0 %1036 }
 0x390   :  { %v1047_v43 = vsub.f32 %v4560_v38, %v1037_v42  ;;  %v1231_v38 = vmul.f32 0.01, %v1193_v34  ;;  %v1959_v42 = vld [vmem:[#allocation13] sm:$0xff] }
 0x392   :  { %v1061_v26 = vmul.f32 1.442695, %v1047_v43  ;;  %v1239_v57 = vsel %vm1223_vm15, %v1193_v34, %v1231_v38  ;;  %v1960_v43 = vld [vmem:[#allocation13 + $0x8] sm:$0xff] }
 0x393   :  { %v3801_v44 = vpack.c.bf16 %v1960_v43, %v1959_v42 }
 0x394   :  { %3863 = vpow2.f32 %v1061_v26 }
 0x39e   :  { %v4602_v45 = vpop.eup %3863 }
 0x39f   :  { %v1083_v46 = vsel %vm1016_vm11, %v4602_v45, 0.0  ;;  %vm1225_vm11 = vcmp.gt.f32.partialorder %v1203_v41, 0.0 }
 0x3a0   :  { %1084 = vadd.xlane.f32.xlu0 %v1083_v46  ;;  %v1241_v8 = vsel %vm1225_vm11, %v1203_v41, %v1233_v3  ;;  %v1961_v46 = vld [vmem:[#allocation13 + $0x10] sm:$0xff] }
 0x3a1   :  { %v3804_v48 = vpack.c.bf16 %v1962_v47, %v1961_v46  ;;  %v3427_v47 = vld [vmem:[%s4914_s12] ss:$0 sm:$0xff] }
 0x3eb   :  { %v1067_v49 = vpop.xlane.xlu0 %1066 }
 0x3ec   :  { %3865 = vrcp.f32 %v1067_v49 }
 0x3ed   :  { %v1070_v51 = vpop.xlane.xlu1 %1069 }
 0x3ee   :  { %3867 = vrcp.f32 %v1070_v51 }
 0x3f1   :  { %v1073_v52 = vpop.xlane.xlu0 %1072 }
 0x3f2   :  { %3869 = vrcp.f32 %v1073_v52 }
 0x3f5   :  { %v1079_v50 = vpop.xlane.xlu0 %1078 }
 0x3f6   :  { %v3866_v55 = vpop.eup %3865  ;;  %3871 = vrcp.f32 %v1079_v50 }
 0x3f7   :  { %v1090_v56 = vmul.f32 %v3866_v55, %v4564_v16  ;;  %v1854_v55 = vld [vmem:[#allocation11] sm:$0xff] }
 0x3f8   :  { %v3868_v60 = vpop.eup %3867 }
 0x3f9   :  { %v1092_v61 = vmul.f32 %v3868_v60, %v4568_v54  ;;  %v1076_v63 = vpop.xlane.xlu1 %1075  ;;  %3625 = vmatmul.mubr.msk.f32.vlgmr.msra.gmra.mrb[10].mxu0 %vm1245_vm10, %v1090_v56 }
 0x3fa   :  { %3873 = vrcp.f32 %v1076_v63  ;;  %3633 = vmatpush3.msra.mxu0 %v1239_v57  ;;  %3634 = vmatprep.mubr.msk.f32.mxu0 %vm4155_vm0, %v4156_v1  ;;  %v1856_v57 = vld [vmem:[#allocation11 + $0x10] sm:$0xff] }
 0x3fb   :  { %v3329_v4 = vrot.slane %v1092_v61, 7  ;;  %3630 = vmatmul.mubr.msk.f32.vlgmr.msra.gmra.mrb[10].mxu1 %vm1245_vm10, %v1092_v61  ;;  %3642 = vmatprep.subr.mxu0 %v4156_v1  ;;  %v1857_v61 = vld [vmem:[#allocation11 + $0x18] sm:$0xff] }
 0x3fc   :  { %v3870_v16 = vpop.eup %3869  ;;  %3638 = vmatpush3.msra.mxu1 %v1240_v18  ;;  %3639 = vmatprep.mubr.msk.f32.mxu1 %vm4155_vm0, %v4156_v1  ;;  %v3798_v63 = vpack.c.bf16 %v1857_v61, %v1856_v57 }
 0x3fd   :  { %v1094_v54 = vmul.f32 %v3870_v16, %v4572_v59  ;;  %v1082_v5 = vpop.xlane.xlu1 %1081  ;;  %3647 = vmatprep.subr.mxu1 %v4156_v1  ;;  %v3330_v12 = vsel %vm278_vm2, %v3329_v4, %v1090_v56  ;;  %v1234_v59 = vmul.f32 0.01, %v4596_v39  ;;  %v1855_v56 = vld [vmem:[#allocation11 + $0x8] sm:$0xff] }
 0x3fe   :  { %3875 = vrcp.f32 %v1082_v5  ;;  %v3795_v60 = vpack.c.bf16 %v1855_v56, %v1854_v55 }
 0x3ff   :  { %v3331_v13 = vrot.slane %v1094_v54, 6  ;;  %3635 = vmatmul.mubr.msk.f32.vlgmr.msra.gmra.mrb[12].mxu0 %vm1245_vm10, %v1094_v54 }
 0x400   :  { %v3872_v14 = vpop.eup %3871  ;;  %3643 = vmatpush3.msra.mxu0 %v1241_v8  ;;  %3644 = vmatprep.mubr.msk.f32.mxu0 %vm4155_vm0, %v4156_v1 }
 0x401   :  { %v1098_v15 = vmul.f32 %v3872_v14, %v4576_v62  ;;  %3652 = vmatprep.subr.mxu0 %v4156_v1  ;;  %v3332_v23 = vsel %vm280_vm3, %v3331_v13, %v3330_v12  ;;  %v1242_v62 = vsel %vm1226_vm13, %v4596_v39, %v1234_v59 }
 0x403   :  { %3645 = vmatmul.mubr.msk.f32.vlgmr.msra.gmra.mrb[14].mxu0 %vm1245_vm10, %v1098_v15  ;;  %v3335_v34 = vrot.slane %v1098_v15, 4 }
 0x404   :  { %v3874_v28 = vpop.eup %3873  ;;  %3653 = vmatpush3.msra.mxu0 %v1243_v22  ;;  %3654 = vmatprep.mubr.msk.f32.mxu0 %vm4155_vm0, %v4156_v1 }
 0x405   :  { %v1096_v30 = vmul.f32 %v3874_v28, %v4580_v2  ;;  %3794 = vmatprep.subr.bf16.mxu0 %v4154_v0 }
 0x407   :  { %v3333_v32 = vrot.slane %v1096_v30, 5  ;;  %3640 = vmatmul.mubr.msk.f32.vlgmr.msra.gmra.mrb[12].mxu1 %vm1245_vm10, %v1096_v30 }
 0x408   :  { %v3876_v33 = vpop.eup %3875  ;;  %v1088_v36 = vpop.xlane.xlu1 %1087  ;;  %3648 = vmatpush3.msra.mxu1 %v1242_v62  ;;  %3649 = vmatprep.mubr.msk.f32.mxu1 %vm4155_vm0, %v4156_v1 }
 0x409   :  { %v1100_v2 = vmul.f32 %v3876_v33, %v4584_v6  ;;  %3877 = vrcp.f32 %v1088_v36  ;;  %3657 = vmatprep.subr.mxu1 %v4156_v1  ;;  %v3334_v39 = vsel %vm282_vm4, %v3333_v32, %v3332_v23 }
 0x40a   :  { %v3336_v40 = vsel %vm284_vm5, %v3335_v34, %v3334_v39 }
 0x40b   :  { %3650 = vmatmul.mubr.msk.f32.vlgmr.msra.gmra.mrb[14].mxu1 %vm1245_vm10, %v1100_v2  ;;  %v3337_v41 = vrot.slane %v1100_v2, 3 }
 0x40c   :  { %3658 = vmatpush3.msra.mxu1 %v1244_v37  ;;  %3659 = vmatprep.mubr.msk.f32.mxu1 %vm4155_vm0, %v4156_v1 }
 0x40d   :  { %3800 = vmatprep.subr.bf16.mxu1 %v4154_v0  ;;  %v3338_v6 = vsel %vm286_vm6, %v3337_v41, %v3336_v40 }
 0x413   :  { %v3878_v26 = vpop.eup %3877 }
 0x414   :  { %v1104_v27 = vmul.f32 %v3878_v26, %v4588_v9 }
 0x416   :  { %3660 = vmatmul.mubr.msk.f32.vlgmr.msra.gmra.mrb[16].mxu1 %vm1245_vm10, %v1104_v27  ;;  %v3341_v38 = vrot.slane %v1104_v27, 1 }
 0x417   :  { %3802 = vmatpush3.bf16.msra.mxu1 %v3801_v44  ;;  %3681 = vmatprep.mubr.msk.f32.mxu1 %vm4155_vm0, %v4156_v1 }
 0x418   :  { %3803 = vmatprep.subr.bf16.mxu1 %v4154_v0 }
 0x41b   :  { %3805 = vmatpush3.bf16.msra.mxu1 %v3804_v48 }
 0x41c   :  { %3704 = vmatprep.subr.mxu1 %v4156_v1 }
 0x41e   :  { %3682 = vmatmul.mubr.msk.f32.vlgmr.msra.gmra.mrb[18].mxu1 %vm149_vm1, %v4473_v58 }
 0x41f   :  { %3706 = vmatprep.mubr.msk.f32.mxu1 %vm4155_vm0, %v4156_v1 }
 0x42d   :  { %v1085_v9 = vpop.xlane.xlu0 %1084 }
 0x42e   :  { %3879 = vrcp.f32 %v1085_v9 }
 0x438   :  { %v3880_v49 = vpop.eup %3879 }
 0x439   :  { %v1102_v51 = vmul.f32 %v3880_v49, %v4602_v45 }
 0x43b   :  { %3655 = vmatmul.mubr.msk.f32.vlgmr.msra.gmra.mrb[16].mxu0 %vm1245_vm10, %v1102_v51  ;;  %v3339_v52 = vrot.slane %v1102_v51, 2 }
 0x43c   :  { %3670 = vmatprep.mubr.msk.f32.mxu0 %vm4155_vm0, %v4156_v1  ;;  %3796 = vmatpush3.bf16.msra.mxu0 %v3795_v60 }
 0x43d   :  { %v3340_v50 = vsel %vm288_vm7, %v3339_v52, %v3338_v6  ;;  %3797 = vmatprep.subr.bf16.mxu0 %v4154_v0 }
 0x43e   :  { %v4663_v53 = vsel %vm290_vm8, %v3341_v38, %v3340_v50 }
 0x440   :  { %3799 = vmatpush3.bf16.msra.mxu0 %v3798_v63 }
 0x4cc   :  { %v1315_v45 = vpop.f32.mrb[10].mxu0 }
 0x4cd   :  { %v3626_v3 = vpop.f32.mrb[11].mxu0  ;;  %v1838_v4 = vmul.f32 0.01, %v1315_v45  ;;  %vm1830_vm9 = vcmp.gt.f32.partialorder %v1315_v45, 0.0 }
 0x4ce   :  { %v1388_v18 = vpop.f32.mrb[10].mxu1 }
 0x4cf   :  { %vm1831_vm15 = vcmp.gt.f32.partialorder %v1388_v18, 0.0  ;;  %v1839_v16 = vmul.f32 0.01, %v1388_v18  ;;  %v3631_v54 = vpop.f32.mrb[11].mxu1  ;;  %v1846_v12 = vsel %vm1830_vm9, %v1315_v45, %v1838_v4  ;;  %v3925_v45 = vld [vmem:[#allocation2] sm:$0xff] }
 0x4d1   :  { %v1847_v5 = vsel %vm1831_vm15, %v1388_v18, %v1839_v16 }
 0x4d2   :  { %v1873_v8 = vrot.slane %v1847_v5, 7  ;;  %v1461_v10 = vpop.f32.mrb[12].mxu0 }
 0x4d3   :  { %vm1832_vm11 = vcmp.gt.f32.partialorder %v1461_v10, 0.0  ;;  %v1840_v13 = vmul.f32 0.01, %v1461_v10  ;;  %v3636_v14 = vpop.f32.mrb[13].mxu0 }
 0x4d4   :  { %v1874_v15 = vsel %vm278_vm2, %v1873_v8, %v1846_v12 }
 0x4d5   :  { %v1848_v59 = vsel %vm1832_vm11, %v1461_v10, %v1840_v13 }
 0x4d6   :  { %v1875_v22 = vrot.slane %v1848_v59, 6  ;;  %v1607_v23 = vpop.f32.mrb[14].mxu0 }
 0x4d7   :  { %v3646_v28 = vpop.f32.mrb[15].mxu0  ;;  %v1842_v62 = vmul.f32 0.01, %v1607_v23  ;;  %vm1834_vm12 = vcmp.gt.f32.partialorder %v1607_v23, 0.0 }
 0x4d8   :  { %v1876_v30 = vsel %vm280_vm3, %v1875_v22, %v1874_v15  ;;  %v3430_v22 = vld [vmem:[#allocation10 + $0x1] ss:$0 sm:$0xff] }
 0x4d9   :  { %v1850_v34 = vsel %vm1834_vm12, %v1607_v23, %v1842_v62 }
 0x4da   :  { %v1534_v31 = vpop.f32.mrb[12].mxu1  ;;  %v1879_v39 = vrot.slane %v1850_v34, 4 }
 0x4db   :  { %vm1833_vm13 = vcmp.gt.f32.partialorder %v1534_v31, 0.0  ;;  %v1841_v32 = vmul.f32 0.01, %v1534_v31  ;;  %v3641_v33 = vpop.f32.mrb[13].mxu1 }
 0x4dd   :  { %v1849_v36 = vsel %vm1833_vm13, %v1534_v31, %v1841_v32 }
 0x4de   :  { %v1877_v2 = vrot.slane %v1849_v36, 5  ;;  %v1680_v37 = vpop.f32.mrb[14].mxu1 }
 0x4df   :  { %vm1835_vm14 = vcmp.gt.f32.partialorder %v1680_v37, 0.0  ;;  %v1843_v40 = vmul.f32 0.01, %v1680_v37  ;;  %v3651_v41 = vpop.f32.mrb[15].mxu1 }
 0x4e0   :  { %v1878_v6 = vsel %vm282_vm4, %v1877_v2, %v1876_v30 }
 0x4e1   :  { %v1851_v42 = vsel %vm1835_vm14, %v1680_v37, %v1843_v40  ;;  %v1880_v43 = vsel %vm284_vm5, %v1879_v39, %v1878_v6  ;;  %v3432_v6 = vld [vmem:[%s4908_s6 + $0x1] ss:$0 sm:$0xff]  ;;  %vm2252_vm14 = vcmask 58369  }
 0x4e2   :  { %v1881_v26 = vrot.slane %v1851_v42, 3 }
 0x4e4   :  { %v1882_v44 = vsel %vm286_vm6, %v1881_v26, %v1880_v43 }
 0x4e9   :  { %v1826_v27 = vpop.f32.mrb[16].mxu1 }
 0x4ea   :  { %v3661_v46 = vpop.f32.mrb[17].mxu1  ;;  %v1845_v51 = vmul.f32 0.01, %v1826_v27  ;;  %vm1837_vm15 = vcmp.gt.f32.partialorder %v1826_v27, 0.0 }
 0x4ec   :  { %v1853_v55 = vsel %vm1837_vm15, %v1826_v27, %v1845_v51 }
 0x4ed   :  { %v1885_v60 = vrot.slane %v1853_v55, 1 }
 0x4f1   :  { %v2039_v48 = vpop.f32.mrb[18].mxu1 }
 0x4f2   :  { %v2040_v9 = vadd.f32 %v3427_v47, %v2039_v48  ;;  %v3683_v49 = vpop.f32.mrb[19].mxu1 }
 0x4f4   :  { %2051 = vrot.lane.b32.xlu0 %v2040_v9, %s4159_s3 }
 0x4f8   :  { %2067 = vrot.lane.b32.xlu0 %v4473_v58, %s4160_s10  ;;  %v3425_v58 = vld [vmem:[%s4913_s11] ss:$0 sm:$0xff] }
 0x50e   :  { %v1753_v52 = vpop.f32.mrb[16].mxu0 }
 0x50f   :  { %vm1836_vm9 = vcmp.gt.f32.partialorder %v1753_v52, 0.0  ;;  %v1844_v38 = vmul.f32 0.01, %v1753_v52  ;;  %v3656_v50 = vpop.f32.mrb[17].mxu0 }
 0x511   :  { %v1852_v56 = vsel %vm1836_vm9, %v1753_v52, %v1844_v38 }
 0x512   :  { %v1883_v57 = vrot.slane %v1852_v56, 2  ;;  %v3433_v56 = vld [vmem:[%s4909_s7 + $0x20] sm:$0xff] }
 0x514   :  { %v1884_v61 = vsel %vm288_vm7, %v1883_v57, %v1882_v44  ;;  %v3434_v57 = vld [vmem:[%s4909_s7 + $0x28] sm:$0xff] }
 0x515   :  { %v1886_v63 = vsel %vm290_vm8, %v1885_v60, %v1884_v61  ;;  %v3435_v60 = vld [vmem:[%s4909_s7 + $0x30] sm:$0xff]  ;;  %v3806_v61 = vpack.c.bf16 %v3434_v57, %v3433_v56 }
 0x516   :  { %3671 = vmatmul.mubr.msk.f32.vlgmr.msra.gmra.mrb[18].mxu0 %vm149_vm1, %v1886_v63 }
 0x517   :  { %3692 = vmatprep.mubr.msk.f32.mxu0 %vm149_vm1, %v3925_v45  ;;  %3807 = vmatprep.subr.bf16.mxu0 %v3806_v61  ;;  %v3926_v45 = vld [vmem:[#allocation2 + $0x8] sm:$0xff] }
 0x518   :  { %3809 = vmatpush3.bf16.msra.mxu0 %v3806_v61 }
 0x566   :  { %v2052_v12 = vpop.permute.xlu0 %2051 }
 0x56a   :  { %v2068_v28 = vpop.permute.xlu0 %2067 }
 0x5e9   :  { %v1955_v3 = vpop.f32.mrb[18].mxu0 }
 0x5ea   :  { %v1956_v18 = vadd.f32 %v3425_v58, %v1955_v3  ;;  %v3672_v4 = vpop.f32.mrb[19].mxu0  ;;  %v3927_v58 = vld [vmem:[#allocation2 + $0x10] sm:$0xff]  ;;  %v3928_v3 = vld [vmem:[#allocation2 + $0x18] sm:$0xff] }
 0x5eb   :  { %v3930_v4 = vld [vmem:[#allocation2 + $0x28] sm:$0xff] }
 0x5ec   :  { %v2043_v16 = vadd.f32 %v2040_v9, %v1956_v18 }
 0x5ee   :  { %v3429_v54 = vmul.f32 -1.442695, %v2043_v16  ;;  %v3931_v16 = vld [vmem:[#allocation2 + $0x30] sm:$0xff] }
 0x5f0   :  { %3881 = vpow2.f32 %v3429_v54  ;;  %v3932_v54 = vld [vmem:[#allocation2 + $0x38] sm:$0xff] }
 0x5fa   :  { %v3882_v5 = vpop.eup %3881 }
 0x5fb   :  { %v2047_v8 = vadd.f32 1.0, %v3882_v5 }
 0x5fd   :  { %3883 = vrcp.f32 %v2047_v8 }
 0x607   :  { %v3884_v10 = vpop.eup %3883 }
 0x608   :  { %v2054_v13 = vmul.f32 %v3884_v10, %v2052_v12  ;;  %v2061_v23 = vsub.f32 1.0, %v3884_v10  ;;  %v2070_v62 = vmul.f32 %v3884_v10, %v2068_v28 }
 0x60a   :  { %2056 = vrot.lane.b32.xlu1 %v2054_v13, %s4159_s3 }
 0x67c   :  { %v2057_v14 = vpop.permute.xlu1 %2056 }
 0x67d   :  { %v2059_v15 = vadd.f32 %v2057_v14, %v1956_v18  ;;  %v3929_v18 = vld [vmem:[#allocation2 + $0x20] sm:$0xff] }
 0x67f   :  { %3885 = vtanh.f32 %v2059_v15 }
 0x689   :  { %v3886_v59 = vpop.eup %3885 }
 0x68a   :  { %2063 = vrot.lane.b32.xlu1 %v3886_v59, %s4161_s22 }
 0x68e   :  { %2086 = vrot.lane.b32.xlu1 %v3430_v22, %s4160_s10 }
 0x6fc   :  { %v2064_v30 = vpop.permute.xlu1 %2063 }
 0x6fd   :  { %v2066_v31 = vmul.f32 %v2064_v30, %v2061_v23 }
 0x6ff   :  { %v2071_v32 = vadd.f32 %v2070_v62, %v2066_v31 }
 0x700   :  { %v2087_v2 = vpop.permute.xlu1 %2086 }
 0x701   :  { %vm2072_vm11 = vcmp.gt.f32.partialorder %v2071_v32, 0.0  ;;  %v2073_v33 = vmul.f32 0.01, %v2071_v32 }
 0x703   :  { %v4687_v34 = vsel %vm2072_vm11, %v2071_v32, %v2073_v33 }
 0x704   :  { %vm2076_vm12 = vcmp.gt.f32.partialorder %v4687_v34, 0.0  ;;  %v2077_v36 = vmul.f32 0.01, %v4687_v34 }
 0x706   :  { %v2078_v37 = vsel %vm2076_vm12, %v4687_v34, %v2077_v36 }
 0x707   :  { %v2089_v39 = vmul.f32 %v2087_v2, %v2078_v37 }
 0x709   :  { %2091 = vrot.lane.b32.xlu0 %v2089_v39, %s4161_s22 }
 0x77b   :  { %v2092_v40 = vpop.permute.xlu0 %2091 }
 0x77c   :  { %v2094_v41 = vsel %vm149_vm1, %v2092_v40, 0.0 }
 0x77d   :  { %2095 = vadd.xlane.f32.xlu1 %v2094_v41 }
 0x80a   :  { %v2096_v42 = vpop.xlane.xlu1 %2095 }
 0x80b   :  { %v2105_v43 = vadd.f32 %v3432_v6, %v2096_v42 }
 0x80d   :  { %v2114_v26 = vrot.slane %v2105_v43, %v4484_v11  ;;  %v2107_v46 = vcombine.high %v2105_v43, %v2105_v43 }
 0x80f   :  { %v2122_v44 = vcombine.high %v2114_v26, %v2114_v26  ;;  %v2130_v27 = vrot.slane %v2114_v26, %v4484_v11  ;;  %v2121_v48 = vrot.slane %v2107_v46, %v4484_v11 }
 0x811   :  { %2157 = vperm.xlu0 %3847, %v2130_v27   ;;  %v2144_v47 = vrot.slane %v2122_v44, %v4484_v11  ;;  %v2152_v9 = vcombine.high %v2130_v27, %v2130_v27  ;;  %v2137_v49 = vrot.slane %v2121_v48, %v4484_v11  ;;  %v2123_v52 = vcombine.high %v2121_v48, %v2121_v48 }
 0x813   :  { %v2154_v51 = vcombine.high %v2144_v47, %v2144_v47  ;;  %v2151_v38 = vrot.slane %v2123_v52, %v4484_v11  ;;  %v2153_v50 = vcombine.high %v2137_v49, %v2137_v49  ;;  %v3436_v11 = vld [vmem:[%s4909_s7 + $0x38] sm:$0xff] }
 0x814   :  { %v3810_v63 = vpack.c.bf16 %v3436_v11, %v3435_v60 }
 0x815   :  { %2165 = vperm.xlu0 %3847, %v2144_v47   ;;  %v2155_v55 = vcombine.high %v2151_v38, %v2151_v38 }
 0x816   :  { %3811 = vmatprep.subr.bf16.mxu0 %v3810_v63 }
 0x817   :  { %3813 = vmatpush3.bf16.msra.mxu0 %v3810_v63 }
 0x818   :  { %3729 = vmatprep.subr.mxu0 %v4156_v1 }
 0x819   :  { %2173 = vperm.xlu0 %3847, %v2152_v9  }
 0x81a   :  { %3693 = vmatmul.mubr.msk.f32.vlgmr.msra.gmra.mrb[20].mxu0 %vm149_vm1, %v3926_v45 }
 0x81b   :  { %3695 = vmatprep.mubr.msk.f32.mxu0 %vm149_vm1, %v3927_v58 }
 0x81d   :  { %2189 = vperm.xlu0 %3847, %v2137_v49  }
 0x81e   :  { %3696 = vmatmul.mubr.msk.f32.gmra.mrb[22].mxu0 %vm149_vm1, %v3928_v3 }
 0x81f   :  { %3698 = vmatprep.mubr.msk.f32.mxu0 %vm149_vm1, %v3929_v18 }
 0x821   :  { %2181 = vperm.xlu0 %3847, %v2154_v51  }
 0x822   :  { %3699 = vmatmul.mubr.msk.f32.gmra.mrb[24].mxu0 %vm149_vm1, %v3930_v4 }
 0x823   :  { %3701 = vmatprep.mubr.msk.f32.mxu0 %vm149_vm1, %v3931_v16 }
 0x825   :  { %2197 = vperm.xlu0 %3847, %v2151_v38  }
 0x826   :  { %3702 = vmatmul.mubr.msk.f32.gmra.mrb[26].mxu0 %vm149_vm1, %v3932_v54 }
 0x827   :  { %3731 = vmatprep.mubr.msk.f32.mxu0 %vm4155_vm0, %v4156_v1 }
 0x829   :  { %2205 = vperm.xlu0 %3847, %v2153_v50  }
 0x82d   :  { %2213 = vperm.xlu0 %3847, %v2155_v55  }
 0x890   :  { %v2158_v5 = vpop.permute.xlu0 %2157 }
 0x891   :  { %v2163_v8 = vrot.slane %v2158_v5, %v4531_v25 }
 0x893   :  { %v2220_v10 = vadd.f32 %v2163_v8, %v4521_v17 }
 0x894   :  { %v2166_v12 = vpop.permute.xlu0 %2165 }
 0x895   :  { %v2171_v13 = vrot.slane %v2166_v12, %v4531_v25  ;;  %vm2228_vm13 = vcmp.gt.f32.partialorder %v2220_v10, 0.0  ;;  %v2236_v14 = vmul.f32 0.01, %v2220_v10 }
 0x897   :  { %v2221_v15 = vadd.f32 %v2171_v13, %v4479_v7  ;;  %v2244_v59 = vsel %vm2228_vm13, %v2220_v10, %v2236_v14 }
 0x898   :  { %v2174_v22 = vpop.permute.xlu0 %2173  ;;  %v2253_v23 = vsel %vm2252_vm14, %v2244_v59, -inf }
 0x899   :  { %v2179_v28 = vrot.slane %v2174_v22, %v4531_v25  ;;  %2254 = vmax.xlane.f32.xlu0 %v2253_v23  ;;  %vm2229_vm15 = vcmp.gt.f32.partialorder %v2221_v15, 0.0  ;;  %v2237_v30 = vmul.f32 0.01, %v2221_v15 }
 0x89b   :  { %v2222_v62 = vadd.f32 %v2179_v28, %v4525_v20  ;;  %v2245_v17 = vsel %vm2229_vm15, %v2221_v15, %v2237_v30 }
 0x89c   :  { %v2190_v31 = vpop.permute.xlu0 %2189  ;;  %v2256_v32 = vsel %vm2252_vm14, %v2245_v17, -inf }
 0x89d   :  { %v2195_v33 = vrot.slane %v2190_v31, %v4531_v25  ;;  %2257 = vmax.xlane.f32.xlu1 %v2256_v32  ;;  %vm2230_vm9 = vcmp.gt.f32.partialorder %v2222_v62, 0.0  ;;  %v2238_v7 = vmul.f32 0.01, %v2222_v62 }
 0x89f   :  { %v2224_v36 = vadd.f32 %v2195_v33, %v4529_v21  ;;  %v2246_v2 = vsel %vm2230_vm9, %v2222_v62, %v2238_v7 }
 0x8a0   :  { %v2182_v37 = vpop.permute.xlu0 %2181  ;;  %v2259_v39 = vsel %vm2252_vm14, %v2246_v2, -inf }
 0x8a1   :  { %v2187_v40 = vrot.slane %v2182_v37, %v4531_v25  ;;  %2260 = vmax.xlane.f32.xlu1 %v2259_v39  ;;  %vm2232_vm11 = vcmp.gt.f32.partialorder %v2224_v36, 0.0  ;;  %v2240_v20 = vmul.f32 0.01, %v2224_v36 }
 0x8a3   :  { %v2223_v41 = vadd.f32 %v2187_v40, %v4523_v19  ;;  %v2248_v6 = vsel %vm2232_vm11, %v2224_v36, %v2240_v20 }
 0x8a4   :  { %v2198_v42 = vpop.permute.xlu0 %2197  ;;  %v2265_v43 = vsel %vm2252_vm14, %v2248_v6, -inf }
 0x8a5   :  { %v2203_v26 = vrot.slane %v2198_v42, %v4531_v25  ;;  %2266 = vmax.xlane.f32.xlu1 %v2265_v43  ;;  %vm2231_vm12 = vcmp.gt.f32.partialorder %v2223_v41, 0.0  ;;  %v2239_v21 = vmul.f32 0.01, %v2223_v41 }
 0x8a7   :  { %v2225_v44 = vadd.f32 %v2203_v26, %v4527_v24  ;;  %v2247_v27 = vsel %vm2231_vm12, %v2223_v41, %v2239_v21  ;;  %v3438_v21 = vld [vmem:[%s4910_s8 + $0x1] ss:$0 sm:$0xff] }
 0x8a8   :  { %v2206_v46 = vpop.permute.xlu0 %2205  ;;  %v2262_v47 = vsel %vm2252_vm14, %v2247_v27, -inf }
 0x8a9   :  { %v2211_v48 = vrot.slane %v2206_v46, %v4531_v25  ;;  %2263 = vmax.xlane.f32.xlu1 %v2262_v47  ;;  %vm2233_vm13 = vcmp.gt.f32.partialorder %v2225_v44, 0.0  ;;  %v2241_v19 = vmul.f32 0.01, %v2225_v44 }
 0x8ab   :  { %v2226_v9 = vadd.f32 %v2211_v48, %v4557_v35  ;;  %v2249_v49 = vsel %vm2233_vm13, %v2225_v44, %v2241_v19 }
 0x8ac   :  { %v2214_v51 = vpop.permute.xlu0 %2213  ;;  %v2268_v52 = vsel %vm2252_vm14, %v2249_v49, -inf }
 0x8ad   :  { %v2219_v38 = vrot.slane %v2214_v51, %v4531_v25  ;;  %2269 = vmax.xlane.f32.xlu1 %v2268_v52  ;;  %vm2234_vm15 = vcmp.gt.f32.partialorder %v2226_v9, 0.0  ;;  %v2242_v24 = vmul.f32 0.01, %v2226_v9 }
 0x8af   :  { %v2227_v50 = vadd.f32 %v2219_v38, %v4552_v29  ;;  %v2250_v55 = vsel %vm2234_vm15, %v2226_v9, %v2242_v24 }
 0x8b0   :  { %v2271_v56 = vsel %vm2252_vm14, %v2250_v55, -inf }
 0x8b1   :  { %2272 = vmax.xlane.f32.xlu1 %v2271_v56  ;;  %vm2235_vm9 = vcmp.gt.f32.partialorder %v2227_v50, 0.0  ;;  %v2243_v57 = vmul.f32 0.01, %v2227_v50 }
 0x8b3   :  { %v2251_v60 = vsel %vm2235_vm9, %v2227_v50, %v2243_v57 }
 0x8b4   :  { %v2274_v35 = vsel %vm2252_vm14, %v2251_v60, -inf }
 0x8b5   :  { %2275 = vmax.xlane.f32.xlu1 %v2274_v35 }
 0x8ed   :  { %v3694_v26 = vpop.f32.mrb[20].mxu0 }
 0x8ee   :  { %v2426_v44 = vadd.f32 %v3694_v26, %v3438_v21 }
 0x8f0   :  { %vm2460_vm12 = vcmp.gt.f32.partialorder %v2426_v44, 0.0 }
 0x926   :  { %v2255_v61 = vpop.xlane.xlu0 %2254 }
 0x927   :  { %v2277_v11 = vsub.f32 %v2244_v59, %v2255_v61 }
 0x929   :  { %v2285_v63 = vmul.f32 1.442695, %v2277_v11 }
 0x92a   :  { %v2258_v45 = vpop.xlane.xlu1 %2257 }
 0x92b   :  { %3887 = vpow2.f32 %v2285_v63  ;;  %v2278_v25 = vsub.f32 %v2245_v17, %v2258_v45 }
 0x92d   :  { %v2287_v58 = vmul.f32 1.442695, %v2278_v25  ;;  %v2468_v25 = vmul.f32 0.01, %v2426_v44 }
 0x92e   :  { %v2261_v3 = vpop.xlane.xlu1 %2260 }
 0x92f   :  { %3889 = vpow2.f32 %v2287_v58  ;;  %v2279_v29 = vsub.f32 %v2246_v2, %v2261_v3 }
 0x931   :  { %v2289_v18 = vmul.f32 1.442695, %v2279_v29 }
 0x932   :  { %v2267_v4 = vpop.xlane.xlu1 %2266 }
 0x933   :  { %3891 = vpow2.f32 %v2289_v18  ;;  %v2281_v16 = vsub.f32 %v2248_v6, %v2267_v4 }
 0x935   :  { %v4749_v54 = vpop.eup %3887  ;;  %v2293_v5 = vmul.f32 1.442695, %v2281_v16  ;;  %v2476_v16 = vsel %vm2460_vm12, %v2426_v44, %v2468_v25 }
 0x936   :  { %v2264_v8 = vpop.xlane.xlu1 %2263  ;;  %v2301_v10 = vsel %vm2252_vm14, %v4749_v54, 0.0 }
 0x937   :  { %3893 = vpow2.f32 %v2293_v5  ;;  %v2280_v12 = vsub.f32 %v2247_v27, %v2264_v8  ;;  %2302 = vadd.xlane.f32.xlu1 %v2301_v10  ;;  %v2420_v27 = vpop.f32.mrb[21].mxu0 }
 0x938   :  { %v2421_v46 = vadd.f32 %v3438_v21, %v2420_v27  ;;  %v3697_v47 = vpop.f32.mrb[22].mxu0 }
 0x939   :  { %v4753_v13 = vpop.eup %3889  ;;  %v2291_v14 = vmul.f32 1.442695, %v2280_v12  ;;  %v2436_v48 = vadd.f32 %v3697_v47, %v3438_v21  ;;  %v2430_v19 = vpop.f32.mrb[23].mxu0 }
 0x93a   :  { %v2270_v15 = vpop.xlane.xlu1 %2269  ;;  %v2304_v59 = vsel %vm2252_vm14, %v4753_v13, 0.0  ;;  %vm2459_vm11 = vcmp.gt.f32.partialorder %v2421_v46, 0.0  ;;  %v2467_v9 = vmul.f32 0.01, %v2421_v46  ;;  %v3700_v51 = vpop.f32.mrb[24].mxu0 }
 0x93b   :  { %3895 = vpow2.f32 %v2291_v14  ;;  %v2282_v22 = vsub.f32 %v2249_v49, %v2270_v15  ;;  %2305 = vadd.xlane.f32.xlu0 %v2304_v59  ;;  %v2431_v49 = vadd.f32 %v3438_v21, %v2430_v19  ;;  %v2446_v52 = vadd.f32 %v3700_v51, %v3438_v21  ;;  %v2440_v50 = vpop.f32.mrb[25].mxu0 }
 0x93c   :  { %v2475_v38 = vsel %vm2459_vm11, %v2421_v46, %v2467_v9  ;;  %v3703_v57 = vpop.f32.mrb[26].mxu0  ;;  %v2470_v12 = vmul.f32 0.01, %v2436_v48  ;;  %vm2462_vm15 = vcmp.gt.f32.partialorder %v2436_v48, 0.0 }
 0x93d   :  { %v4757_v23 = vpop.eup %3891  ;;  %v2295_v28 = vmul.f32 1.442695, %v2282_v22  ;;  %3705 = vmatpush3.msra.mxu1 %v2475_v38  ;;  %v2472_v24 = vmul.f32 0.01, %v2446_v52  ;;  %v2450_v35 = vpop.f32.mrb[27].mxu0  ;;  %vm2461_vm13 = vcmp.gt.f32.partialorder %v2431_v49, 0.0 }
 0x93e   :  { %v2273_v30 = vpop.xlane.xlu1 %2272  ;;  %v2307_v62 = vsel %vm2252_vm14, %v4757_v23, 0.0  ;;  %3709 = vmatprep.subr.mxu1 %v4156_v1  ;;  %v4792_v61 = vadd.f32 %v3438_v21, %v2450_v35  ;;  %v2469_v18 = vmul.f32 0.01, %v2431_v49 }
 0x93f   :  { %3897 = vpow2.f32 %v2295_v28  ;;  %v2283_v17 = vsub.f32 %v2250_v55, %v2273_v30  ;;  %2308 = vadd.xlane.f32.xlu1 %v2307_v62  ;;  %v4787_v55 = vadd.f32 %v3438_v21, %v2440_v50  ;;  %v2478_v62 = vsel %vm2462_vm15, %v2436_v48, %v2470_v12  ;;  %v3208_v50 = vld [vmem:[#allocation13 + $0x28] sm:$0xff] }
 0x940   :  { %v2477_v14 = vsel %vm2461_vm13, %v2431_v49, %v2469_v18  ;;  %v2473_v26 = vmul.f32 0.01, %v4792_v61 }
 0x941   :  { %v4761_v31 = vpop.eup %3893  ;;  %v2297_v32 = vmul.f32 1.442695, %v2283_v17  ;;  %vm2463_vm9 = vcmp.gt.f32.partialorder %v4787_v55, 0.0 }
 0x942   :  { %v2276_v33 = vpop.xlane.xlu1 %2275  ;;  %v2313_v7 = vsel %vm2252_vm14, %v4761_v31, 0.0 }
 0x943   :  { %3899 = vpow2.f32 %v2297_v32  ;;  %v2284_v36 = vsub.f32 %v2251_v60, %v2276_v33  ;;  %2314 = vadd.xlane.f32.xlu1 %v2313_v7  ;;  %v4790_v60 = vadd.f32 %v3703_v57, %v3438_v21 }
 0x945   :  { %v4765_v2 = vpop.eup %3895  ;;  %v2299_v37 = vmul.f32 1.442695, %v2284_v36  ;;  %vm2466_vm11 = vcmp.gt.f32.partialorder %v4790_v60, 0.0 }
 0x946   :  { %v2310_v39 = vsel %vm2252_vm14, %v4765_v2, 0.0 }
 0x947   :  { %3901 = vpow2.f32 %v2299_v37  ;;  %2311 = vadd.xlane.f32.xlu0 %v2310_v39 }
 0x949   :  { %v4769_v40 = vpop.eup %3897 }
 0x94a   :  { %v2316_v20 = vsel %vm2252_vm14, %v4769_v40, 0.0 }
 0x94b   :  { %2317 = vadd.xlane.f32.xlu0 %v2316_v20  ;;  %v2474_v20 = vmul.f32 0.01, %v4790_v60 }
 0x94d   :  { %v4773_v41 = vpop.eup %3899  ;;  %v2482_v46 = vsel %vm2466_vm11, %v4790_v60, %v2474_v20 }
 0x94e   :  { %v2319_v6 = vsel %vm2252_vm14, %v4773_v41, 0.0 }
 0x94f   :  { %2320 = vadd.xlane.f32.xlu1 %v2319_v6 }
 0x951   :  { %v4777_v42 = vpop.eup %3901 }
 0x952   :  { %v2322_v43 = vsel %vm2252_vm14, %v4777_v42, 0.0  ;;  %vm2464_vm14 = vcmp.gt.f32.partialorder %v2446_v52, 0.0 }
 0x953   :  { %2323 = vadd.xlane.f32.xlu0 %v2322_v43  ;;  %v2480_v56 = vsel %vm2464_vm14, %v2446_v52, %v2472_v24  ;;  %vm2465_vm14 = vcmp.gt.f32.partialorder %v4792_v61, 0.0  ;;  %v3207_v24 = vld [vmem:[#allocation13 + $0x20] sm:$0xff] }
 0x954   :  { %3730 = vmatpush3.msra.mxu0 %v2480_v56  ;;  %v2481_v9 = vsel %vm2465_vm14, %v4792_v61, %v2473_v26  ;;  %v3821_v60 = vpack.c.bf16 %v3208_v50, %v3207_v24  ;;  %v3209_v61 = vld [vmem:[#allocation13 + $0x30] sm:$0xff] }
 0x955   :  { %3739 = vmatprep.subr.mxu0 %v4156_v1 }
 0x960   :  { %3220 = vrot.lane.b32.xlu1 %v4687_v34, %s4161_s22 }
 0x9c4   :  { %v2303_v11 = vpop.xlane.xlu1 %2302 }
 0x9c5   :  { %3903 = vrcp.f32 %v2303_v11  ;;  %v3210_v11 = vld [vmem:[#allocation13 + $0x38] sm:$0xff] }
 0x9c6   :  { %v3824_v25 = vpack.c.bf16 %v3210_v11, %v3209_v61 }
 0x9c8   :  { %v2306_v63 = vpop.xlane.xlu0 %2305 }
 0x9c9   :  { %3905 = vrcp.f32 %v2306_v63 }
 0x9cc   :  { %v2309_v45 = vpop.xlane.xlu1 %2308 }
 0x9cd   :  { %3907 = vrcp.f32 %v2309_v45 }
 0x9cf   :  { %v3904_v58 = vpop.eup %3903 }
 0x9d0   :  { %v2326_v3 = vmul.f32 %v3904_v58, %v4749_v54  ;;  %v2315_v29 = vpop.xlane.xlu1 %2314  ;;  %v3100_v58 = vld [vmem:[#allocation11 + $0x20] sm:$0xff] }
 0x9d1   :  { %3909 = vrcp.f32 %v2315_v29  ;;  %v3102_v29 = vld [vmem:[#allocation11 + $0x30] sm:$0xff] }
 0x9d2   :  { %v2484_v4 = vrot.slane %v2326_v3, 1  ;;  %v3101_v3 = vld [vmem:[#allocation11 + $0x28] sm:$0xff] }
 0x9d3   :  { %v3906_v5 = vpop.eup %3905  ;;  %v3815_v18 = vpack.c.bf16 %v3101_v3, %v3100_v58 }
 0x9d4   :  { %v2328_v8 = vmul.f32 %v3906_v5, %v4753_v13  ;;  %v2312_v10 = vpop.xlane.xlu0 %2311  ;;  %3707 = vmatmul.mubr.msk.f32.vlgmr.msra.gmra.mrb[20].mxu1 %vm1245_vm10, %v2484_v4 }
 0x9d5   :  { %3911 = vrcp.f32 %v2312_v10  ;;  %3710 = vmatpush3.msra.mxu1 %v2476_v16  ;;  %3711 = vmatprep.mubr.msk.f32.mxu1 %vm4155_vm0, %v4156_v1 }
 0x9d6   :  { %3714 = vmatprep.subr.mxu1 %v4156_v1  ;;  %v2558_v54 = vrot.slane %v2328_v8, 1  ;;  %v3344_v15 = vsel %vm278_vm2, %v2328_v8, %v2484_v4  ;;  %v3103_v4 = vld [vmem:[#allocation11 + $0x38] sm:$0xff] }
 0x9d7   :  { %v3908_v59 = vpop.eup %3907  ;;  %v3818_v16 = vpack.c.bf16 %v3103_v4, %v3102_v29 }
 0x9d8   :  { %v2330_v22 = vmul.f32 %v3908_v59, %v4757_v23  ;;  %v2318_v13 = vpop.xlane.xlu0 %2317  ;;  %3712 = vmatmul.mubr.msk.f32.vlgmr.msra.gmra.mrb[22].mxu1 %vm1245_vm10, %v2558_v54  ;;  %v2471_v23 = vmul.f32 0.01, %v4787_v55 }
 0x9d9   :  { %3913 = vrcp.f32 %v2318_v13  ;;  %3715 = vmatpush3.msra.mxu1 %v2477_v14  ;;  %3716 = vmatprep.mubr.msk.f32.mxu1 %vm4155_vm0, %v4156_v1 }
 0x9da   :  { %v3345_v28 = vrot.slane %v2330_v22, 7  ;;  %3719 = vmatprep.subr.mxu1 %v4156_v1  ;;  %v2632_v30 = vrot.slane %v2330_v22, 1  ;;  %v2479_v6 = vsel %vm2463_vm9, %v4787_v55, %v2471_v23 }
 0x9db   :  { %v3910_v17 = vpop.eup %3909 }
 0x9dc   :  { %v2321_v32 = vpop.xlane.xlu1 %2320  ;;  %3717 = vmatmul.mubr.msk.f32.vlgmr.msra.gmra.mrb[24].mxu1 %vm1245_vm10, %v2632_v30  ;;  %v3346_v33 = vsel %vm280_vm3, %v3345_v28, %v3344_v15  ;;  %v2334_v36 = vmul.f32 %v3910_v17, %v4761_v31 }
 0x9dd   :  { %3915 = vrcp.f32 %v2321_v32  ;;  %3720 = vmatpush3.msra.mxu1 %v2478_v62  ;;  %3721 = vmatprep.mubr.msk.f32.mxu1 %vm4155_vm0, %v4156_v1 }
 0x9de   :  { %3724 = vmatprep.subr.mxu1 %v4156_v1  ;;  %v3349_v27 = vrot.slane %v2334_v36, 5  ;;  %v2780_v19 = vrot.slane %v2334_v36, 1 }
 0x9df   :  { %v3912_v7 = vpop.eup %3911 }
 0x9e0   :  { %v2332_v37 = vmul.f32 %v3912_v7, %v4765_v2  ;;  %v2324_v39 = vpop.xlane.xlu0 %2323 }
 0x9e1   :  { %3917 = vrcp.f32 %v2324_v39 }
 0x9e2   :  { %v3347_v43 = vrot.slane %v2332_v37, 6  ;;  %v2706_v21 = vrot.slane %v2332_v37, 1 }
 0x9e3   :  { %v3914_v44 = vpop.eup %3913 }
 0x9e4   :  { %v2336_v31 = vmul.f32 %v3914_v44, %v4769_v40  ;;  %3722 = vmatmul.mubr.msk.f32.vlgmr.msra.gmra.mrb[26].mxu1 %vm1245_vm10, %v2706_v21  ;;  %v3348_v2 = vsel %vm282_vm4, %v3347_v43, %v3346_v33 }
 0x9e5   :  { %3725 = vmatpush3.msra.mxu1 %v2479_v6  ;;  %3726 = vmatprep.mubr.msk.f32.mxu1 %vm4155_vm0, %v4156_v1  ;;  %v3350_v47 = vsel %vm284_vm5, %v3349_v27, %v3348_v2 }
 0x9e6   :  { %v2854_v48 = vrot.slane %v2336_v31, 1  ;;  %3734 = vmatprep.subr.mxu1 %v4156_v1  ;;  %v3351_v49 = vrot.slane %v2336_v31, 4 }
 0x9e7   :  { %v3916_v40 = vpop.eup %3915 }
 0x9e8   :  { %v2338_v51 = vmul.f32 %v3916_v40, %v4773_v41  ;;  %3727 = vmatmul.mubr.msk.f32.vlgmr.msra.gmra.mrb[28].mxu1 %vm1245_vm10, %v2780_v19  ;;  %3732 = vmatmul.mubr.msk.f32.vlgmr.msra.gmra.mrb[28].mxu0 %vm1245_vm10, %v2854_v48  ;;  %v3352_v52 = vsel %vm286_vm6, %v3351_v49, %v3350_v47 }
 0x9e9   :  { %3735 = vmatpush3.msra.mxu1 %v2481_v9  ;;  %3740 = vmatpush3.msra.mxu0 %v2482_v46 }
 0x9ea   :  { %3736 = vmatprep.mubr.msk.f32.mxu1 %vm4155_vm0, %v4156_v1  ;;  %v2928_v38 = vrot.slane %v2338_v51, 1  ;;  %3741 = vmatprep.mubr.msk.f32.mxu0 %vm4155_vm0, %v4156_v1  ;;  %v3353_v55 = vrot.slane %v2338_v51, 3 }
 0x9eb   :  { %v3918_v56 = vpop.eup %3917  ;;  %3820 = vmatprep.subr.bf16.mxu0 %v4154_v0  ;;  %3814 = vmatprep.subr.bf16.mxu1 %v4154_v0 }
 0x9ec   :  { %v2340_v41 = vmul.f32 %v3918_v56, %v4777_v42  ;;  %3737 = vmatmul.mubr.msk.f32.vlgmr.msra.gmra.mrb[30].mxu1 %vm1245_vm10, %v2928_v38  ;;  %v3354_v57 = vsel %vm288_vm7, %v3353_v55, %v3352_v52  ;;  %v3221_v42 = vpop.permute.xlu1 %3220 }
 0x9ed   :  { %3752 = vmatprep.mubr.msk.f32.mxu1 %vm4155_vm0, %v4156_v1  ;;  %3816 = vmatpush3.bf16.msra.mxu1 %v3815_v18 }
 0x9ee   :  { %v3002_v35 = vrot.slane %v2340_v41, 1  ;;  %v3355_v63 = vrot.slane %v2340_v41, 2  ;;  %3817 = vmatprep.subr.bf16.mxu1 %v4154_v0  ;;  %v3459_v41 = vld [vmem:[%s4914_s12 + $0x1] ss:$0 sm:$0xff] }
 0x9f0   :  { %3742 = vmatmul.mubr.msk.f32.vlgmr.msra.gmra.mrb[30].mxu0 %vm1245_vm10, %v3002_v35  ;;  %v4846_v45 = vsel %vm290_vm8, %v3355_v63, %v3354_v57 }
 0x9f1   :  { %3822 = vmatpush3.bf16.msra.mxu0 %v3821_v60  ;;  %3763 = vmatprep.mubr.msk.f32.mxu0 %vm4155_vm0, %v4156_v1 }
 0x9f2   :  { %3823 = vmatprep.subr.bf16.mxu0 %v4154_v0  ;;  %3819 = vmatpush3.bf16.msra.mxu1 %v3818_v16 }
 0x9f5   :  { %3825 = vmatpush3.bf16.msra.mxu0 %v3824_v25  ;;  %v3456_v25 = vld [vmem:[%s4913_s11 + $0x1] ss:$0 sm:$0xff]  ;;  %s4162_s11 = smov [#allocation15]  }
 0x9f6   :  { %s3379_s12 = sshll.u32 %s4162_s11, 4  ;;  %s3380_s12 = int_to_ptr.vmem [resolvable:$true] %s3379_s12 }
 0x9f7   :  { %p4092_p1 = scmp.lt.s32.totalorder %s3380_s12, %s3380_s12 }
 0x9f8   :  { %3764 = vmatmul.mubr.msk.f32.vlgmr.msra.gmra.mrb[32].mxu0 %vm149_vm1, %v3221_v42 }
 0xaa7   :  { %v2553_v5 = vpop.f32.mrb[20].mxu1 }
 0xaa8   :  { %v3708_v8 = vpop.f32.mrb[21].mxu1  ;;  %v3083_v1 = vmul.f32 0.01, %v2553_v5  ;;  %vm3075_vm12 = vcmp.gt.f32.partialorder %v2553_v5, 0.0 }
 0xaaa   :  { %v3091_v22 = vsel %vm3075_vm12, %v2553_v5, %v3083_v1 }
 0xaab   :  { %v2627_v10 = vpop.f32.mrb[22].mxu1 }
 0xaac   :  { %vm3076_vm0 = vcmp.gt.f32.partialorder %v2627_v10, 0.0  ;;  %v3084_v12 = vmul.f32 0.01, %v2627_v10  ;;  %v3713_v54 = vpop.f32.mrb[23].mxu1 }
 0xaae   :  { %v3092_v14 = vsel %vm3076_vm0, %v2627_v10, %v3084_v12 }
 0xaaf   :  { %v3120_v15 = vrot.slane %v3092_v14, 7  ;;  %v2701_v59 = vpop.f32.mrb[24].mxu1 }
 0xab0   :  { %vm3077_vm13 = vcmp.gt.f32.partialorder %v2701_v59, 0.0  ;;  %v3085_v13 = vmul.f32 0.01, %v2701_v59  ;;  %v3718_v28 = vpop.f32.mrb[25].mxu1 }
 0xab1   :  { %v3121_v30 = vsel %vm278_vm2, %v3120_v15, %v3091_v22 }
 0xab2   :  { %v3093_v62 = vsel %vm3077_vm13, %v2701_v59, %v3085_v13 }
 0xab3   :  { %v3122_v0 = vrot.slane %v3093_v62, 6 }
 0xab5   :  { %v3123_v17 = vsel %vm280_vm3, %v3122_v0, %v3121_v30 }
 0xab7   :  { %v2775_v32 = vpop.f32.mrb[26].mxu1 }
 0xab8   :  { %vm3078_vm15 = vcmp.gt.f32.partialorder %v2775_v32, 0.0  ;;  %v3086_v33 = vmul.f32 0.01, %v2775_v32  ;;  %v3723_v23 = vpop.f32.mrb[27].mxu1 }
 0xaba   :  { %v3094_v7 = vsel %vm3078_vm15, %v2775_v32, %v3086_v33 }
 0xabb   :  { %v3124_v36 = vrot.slane %v3094_v7, 5  ;;  %v2849_v37 = vpop.f32.mrb[28].mxu1  ;;  %v2923_v39 = vpop.f32.mrb[28].mxu0 }
 0xabc   :  { %vm3079_vm9 = vcmp.gt.f32.partialorder %v2849_v37, 0.0  ;;  %v3087_v20 = vmul.f32 0.01, %v2849_v37  ;;  %vm3080_vm11 = vcmp.gt.f32.partialorder %v2923_v39, 0.0  ;;  %v3088_v6 = vmul.f32 0.01, %v2923_v39 }
 0xabd   :  { %v3125_v43 = vsel %vm282_vm4, %v3124_v36, %v3123_v17  ;;  %v3728_v26 = vpop.f32.mrb[29].mxu1  ;;  %v3733_v21 = vpop.f32.mrb[29].mxu0  ;;  %vm3361_vm4 = vcmask 130048  }
 0xabe   :  { %v3095_v44 = vsel %vm3079_vm9, %v2849_v37, %v3087_v20  ;;  %v3096_v27 = vsel %vm3080_vm11, %v2923_v39, %v3088_v6 }
 0xabf   :  { %v3126_v31 = vrot.slane %v3095_v44, 4  ;;  %v3128_v2 = vrot.slane %v3096_v27, 3  ;;  %v2997_v46 = vpop.f32.mrb[30].mxu1 }
 0xac0   :  { %vm3081_vm2 = vcmp.gt.f32.partialorder %v2997_v46, 0.0  ;;  %v3089_v47 = vmul.f32 0.01, %v2997_v46  ;;  %v3738_v48 = vpop.f32.mrb[31].mxu1 }
 0xac1   :  { %v3127_v19 = vsel %vm284_vm5, %v3126_v31, %v3125_v43 }
 0xac2   :  { %v3129_v9 = vsel %vm286_vm6, %v3128_v2, %v3127_v19  ;;  %v3097_v49 = vsel %vm3081_vm2, %v2997_v46, %v3089_v47 }
 0xac3   :  { %v3130_v40 = vrot.slane %v3097_v49, 2  ;;  %v3071_v51 = vpop.f32.mrb[30].mxu0 }
 0xac4   :  { %vm3082_vm3 = vcmp.gt.f32.partialorder %v3071_v51, 0.0  ;;  %v3090_v52 = vmul.f32 0.01, %v3071_v51  ;;  %v3743_v38 = vpop.f32.mrb[31].mxu0 }
 0xac5   :  { %v3131_v24 = vsel %vm288_vm7, %v3130_v40, %v3129_v9 }
 0xac6   :  { %v3098_v50 = vsel %vm3082_vm3, %v3071_v51, %v3090_v52 }
 0xac7   :  { %v3132_v55 = vrot.slane %v3098_v50, 1 }
 0xac9   :  { %v3133_v56 = vsel %vm290_vm8, %v3132_v55, %v3131_v24 }
 0xaca   :  { %3753 = vmatmul.mubr.msk.f32.vlgmr.msra.gmra.mrb[32].mxu1 %vm149_vm1, %v3133_v56 }
 0xacb   :  { %v3290_v57 = vpop.f32.mrb[32].mxu0 }
 0xacc   :  { %v3291_v60 = vadd.f32 %v3459_v41, %v3290_v57  ;;  %v3765_v35 = vpop.f32.mrb[33].mxu0 }
 0xace   :  { %3302 = vrot.lane.b32.xlu0 %v3291_v60, %s4159_s3 }
 0xad2   :  { %3357 = vrot.lane.b32.xlu0 %v4846_v45, %s4146_s26  ;;  %s4087_s26 = scalar_lea.vmem %s3380_s12, 128 }
 0xad3   :  { %p4088_p0 = scmp.ne.s32.totalorder %s3380_s12, %s4087_s26  ;;  %p4093_p2 = scmp.lt.s32.totalorder %s4087_s26, %s4087_s26 }
 0xad5   :  { %p4094_p3 = por %p4093_p2, %p4092_p1 }
 0xad7   :  { %p4095_p4 = pnand %p4094_p3, %p4088_p0 }
 0xb40   :  { %v3303_v61 = vpop.permute.xlu0 %3302 }
 0xb44   :  { %v3358_v11 = vpop.permute.xlu0 %3357 }
 0xb45   :  { %v3360_v63 = vsel %vm1245_vm10, %v4663_v53, %v3358_v11 }
 0xb46   :  { %3362 = vst.msk [vmem:[#allocation15] sm:$0xff] %vm3361_vm4, %v3360_v63 }
 0xb9d   :  { %v3202_v42 = vpop.f32.mrb[32].mxu1 }
 0xb9e   :  { %v3203_v58 = vadd.f32 %v3456_v25, %v3202_v42  ;;  %v3754_v3 = vpop.f32.mrb[33].mxu1 }
 0xba0   :  { %v3294_v29 = vadd.f32 %v3291_v60, %v3203_v58 }
 0xba2   :  { %v3461_v18 = vmul.f32 -1.442695, %v3294_v29 }
 0xba4   :  { %3919 = vpow2.f32 %v3461_v18 }
 0xbae   :  { %v3920_v4 = vpop.eup %3919 }
 0xbaf   :  { %v3298_v16 = vadd.f32 1.0, %v3920_v4 }
 0xbb1   :  { %3921 = vrcp.f32 %v3298_v16 }
 0xbbb   :  { %v3922_v45 = vpop.eup %3921 }
 0xbbc   :  { %v3305_v5 = vmul.f32 %v3922_v45, %v3303_v61  ;;  %v3312_v1 = vsub.f32 1.0, %v3922_v45  ;;  %v3318_v54 = vmul.f32 %v3922_v45, %v4687_v34 }
 0xbbe   :  { %3307 = vrot.lane.b32.xlu1 %v3305_v5, %s4159_s3 }
 0xc30   :  { %v3308_v8 = vpop.permute.xlu1 %3307 }
 0xc31   :  { %v3310_v53 = vadd.f32 %v3308_v8, %v3203_v58 }
 0xc33   :  { %3923 = vtanh.f32 %v3310_v53 }
 0xc3d   :  { %v3924_v10 = vpop.eup %3923 }
 0xc3e   :  { %3314 = vrot.lane.b32.xlu1 %v3924_v10, %s4161_s22 }
 0xcb0   :  { %v3315_v12 = vpop.permute.xlu1 %3314 }
 0xcb1   :  { %v3317_v14 = vmul.f32 %v3315_v12, %v3312_v1 }
 0xcb2   :  { %4098 = shalt.err (!%p4095_p4)
}
 0xcb3   :  { %s4099_s9 = scalar_lea.hbm %s4916_s14, 128 }
 0xcb4   :  { %p4100_p5 = scmp.ne.s32.totalorder %s4916_s14, %s4099_s9  ;;  %p4103_p6 = scmp.lt.u32.totalorder %s4099_s9, %s4916_s14 }
 0xcb6   :  { %p4105_p7 = pnand %p4103_p6, %p4100_p5 }
 0xcb8   :  { %4108 = shalt.err (!%p4105_p7)
}
 0xcb9   :  { %3382 = dma.vmem_to_hbm [thread:$0]  %s3380_s12, 128, %s4916_s14, [#allocation16]   ;;  %v3319_v15 = vadd.f32 %v3318_v54, %v3317_v14 }
 0xcba   :  { %s4163_s16 = smov [#allocation14]  }
 0xcbb   :  { %vm3320_vm5 = vcmp.gt.f32.partialorder %v3319_v15, 0.0  ;;  %v3321_v59 = vmul.f32 0.01, %v3319_v15  ;;  %s3369_s1 = sshll.u32 %s4163_s16, 4  ;;  %s3370_s1 = int_to_ptr.vmem [resolvable:$true] %s3369_s1 }
 0xcbc   :  { %s4109_s6 = scalar_lea.vmem %s3370_s1, 128  ;;  %p4114_p9 = scmp.lt.s32.totalorder %s3370_s1, %s3370_s1 }
 0xcbd   :  { %v3322_v22 = vsel %vm3320_vm5, %v3319_v15, %v3321_v59  ;;  %p4110_p8 = scmp.ne.s32.totalorder %s3370_s1, %s4109_s6  ;;  %p4115_p10 = scmp.lt.s32.totalorder %s4109_s6, %s4109_s6 }
 0xcbe   :  { %v3323_v13 = vadd.f32 %v3322_v22, %v4687_v34 }
 0xcbf   :  { %p4116_p11 = por %p4115_p10, %p4114_p9 }
 0xcc0   :  { %3325 = vrot.lane.b32.xlu1 %v3323_v13, %s4161_s22 }
 0xcc1   :  { %p4117_p12 = pnand %p4116_p11, %p4110_p8 }
 0xd32   :  { %v3326_v28 = vpop.permute.xlu1 %3325 }
 0xd33   :  { %3328 = vst.msk [vmem:[#allocation14] sm:$0xff] %vm149_vm1, %v3326_v28 }
 0xd34   :  { %4120 = shalt.err (!%p4117_p12)
}
 0xd35   :  { %s4121_s21 = scalar_lea.hbm %s4915_s13, 128 }
 0xd36   :  { %p4122_p13 = scmp.ne.s32.totalorder %s4915_s13, %s4121_s21  ;;  %p4125_p0 = scmp.lt.u32.totalorder %s4121_s21, %s4915_s13 }
 0xd38   :  { %p4127_p1 = pnand %p4125_p0, %p4122_p13 }
 0xd3a   :  { %4130 = shalt.err (!%p4127_p1)
}
 0xd3b   :  { %3372 = dma.vmem_to_hbm [thread:$0]  %s3370_s1, 128, %s4915_s13, [#allocation4]  }
 0xd3c   :  { %4139 = dma.done.wait [#allocation4], 128  }
 0xd3d   :  { %4140 = vsyncadd [#allocation4], 4294967168 }
 0xd3e   :  { %4141 = dma.done.wait [#allocation16], 128  }
 0xd3f   :  { %4142 = vsyncadd [#allocation16], 4294967168 }
 0xd40   :  { %3389 = vsyncpa [#allocation3], 1 }
 0xd41   :  { %3390 = vsyncpa [#allocation6], 1 }
 0xd42   :  { %3391 = vsyncpa [#allocation9], 1 }
 0xd43   :  { %3392 = vsyncpa [#allocation12], 1 }
 0xd44   :  { %3393 = vsyncpa [#allocation4], 1 }
 0xd45   :  { %3394 = vsyncpa [#allocation16], 1 }

// kernel: tpu_custom_call.1
= control target key start
LH: loop header
LB: loop body
LE: loop exit
PB: predicated region body
PF: predicated region fallthrough
CT: control target
= control target key end

     0   :  { %20 = vsyncpa [#allocation3], 0  ;;  %s4902_s0 = inlined_call_operand.hbm [shape: f32[8,8,32], index: 0, kind: input, shape index: {}]   ;;  %s4903_s1 = inlined_call_operand.hbm [shape: f32[32,32], index: 1, kind: input, shape index: {}]   ;;  %s4904_s2 = inlined_call_operand.hbm [shape: f32[32,32], index: 2, kind: input, shape index: {}]   ;;  %s4905_s3 = inlined_call_operand.hbm [shape: f32[1,32], index: 3, kind: input, shape index: {}]   ;;  %s4906_s4 = inlined_call_operand.vmem [shape: f32[32,2], index: 4, kind: input, shape index: {}]   ;;  %s4907_s5 = inlined_call_operand.hbm [shape: f32[2,1,32], index: 5, kind: input, shape index: {}]   ;;  %s4908_s6 = inlined_call_operand.vmem [shape: f32[2,1,1], index: 6, kind: input, shape index: {}]   ;;  %s4909_s7 = inlined_call_operand.vmem [shape: f32[2,32,32], index: 7, kind: input, shape index: {}]   ;;  %s4910_s8 = inlined_call_operand.vmem [shape: f32[2,1,32], index: 8, kind: input, shape index: {}]   ;;  %s4911_s9 = inlined_call_operand.hbm [shape: f32[2,32,96], index: 9, kind: input, shape index: {}]   ;;  %s4912_s10 = inlined_call_operand.hbm [shape: f32[2,32,96], index: 10, kind: input, shape index: {}]   ;;  %s4913_s11 = inlined_call_operand.vmem [shape: f32[2,1,96], index: 11, kind: input, shape index: {}]   ;;  %s4914_s12 = inlined_call_operand.vmem [shape: f32[2,1,96], index: 12, kind: input, shape index: {}]   ;;  %s4915_s13 = inlined_call_operand.hbm [shape: f32[8,32], index: 13, kind: output, shape index: {0}]   ;;  %s4916_s14 = inlined_call_operand.hbm [shape: f32[8,16], index: 14, kind: output, shape index: {1}]  }
   0x1   :  { %21 = vsyncpa [#allocation6], 0 }
   0x2   :  { %22 = vsyncpa [#allocation9], 0 }
   0x3   :  { %23 = vsyncpa [#allocation12], 0 }
   0x4   :  { %24 = vsyncpa [#allocation4], 0 }
   0x5   :  { %25 = vsyncpa [#allocation16], 0  ;;  %s4143_s29 = smov [#allocation5]   ;;  %s4144_s15 = smov [#allocation8]  }
   0x6   :  { %s43_s30 = sshll.u32 %s4143_s29, 4  ;;  %s68_s16 = sshll.u32 %s4144_s15, 4  ;;  %s44_s30 = int_to_ptr.vmem [resolvable:$true] %s43_s30  ;;  %s4239_s16 = int_to_ptr.vmem [resolvable:$true] %s68_s16 }
   0x7   :  { %s3933_s19 = scalar_lea.hbm %s4903_s1, 512 }
   0x8   :  { %p3934_p0 = scmp.ne.s32.totalorder %s4903_s1, %s3933_s19  ;;  %p3937_p1 = scmp.lt.u32.totalorder %s3933_s19, %s4903_s1 }
   0xa   :  { %p3939_p2 = pnand %p3937_p1, %p3934_p0 }
   0xc   :  { %3942 = shalt.err (!%p3939_p2)
}
   0xd   :  { %s3943_s24 = scalar_lea.vmem %s44_s30, 512  ;;  %p3948_p4 = scmp.lt.s32.totalorder %s44_s30, %s44_s30 }
   0xe   :  { %p3944_p3 = scmp.ne.s32.totalorder %s44_s30, %s3943_s24  ;;  %p3949_p5 = scmp.lt.s32.totalorder %s3943_s24, %s3943_s24 }
  0x10   :  { %p3950_p6 = por %p3949_p5, %p3948_p4 }
  0x12   :  { %p3951_p7 = pnand %p3950_p6, %p3944_p3 }
  0x14   :  { %3954 = shalt.err (!%p3951_p7)
}
  0x15   :  { %s4145_s25 = smov 128   ;;  %s4146_s26 = smov 8  }
  0x16   :  { %49 = dma.hbm_to_vmem [thread:$0]  %s4903_s1, 512, %s44_s30, [#allocation6], %s4145_s25, %s4145_s25, %s4146_s26  }
  0x17   :  { %s3955_s17 = scalar_lea.hbm %s4905_s3, 16 }
  0x18   :  { %p3956_p8 = scmp.ne.s32.totalorder %s4905_s3, %s3955_s17  ;;  %p3959_p9 = scmp.lt.u32.totalorder %s3955_s17, %s4905_s3 }
  0x1a   :  { %p3961_p10 = pnand %p3959_p9, %p3956_p8 }
  0x1c   :  { %3964 = shalt.err (!%p3961_p10)
}
  0x1d   :  { %s3965_s22 = scalar_lea.vmem %s4239_s16, 16  ;;  %s3969_s1 = scalar_lea.vmem %s4239_s16, 32 }
  0x1e   :  { %p3966_p11 = scmp.ne.s32.totalorder %s4239_s16, %s3965_s22  ;;  %p3970_p12 = scmp.lt.s32.totalorder %s4239_s16, %s4239_s16 }
  0x1f   :  { %p3971_p13 = scmp.lt.s32.totalorder %s3969_s1, %s3965_s22 }
  0x21   :  { %p3972_p0 = por %p3971_p13, %p3970_p12 }
  0x23   :  { %p3973_p1 = pnand %p3972_p0, %p3966_p11 }
  0x25   :  { %3976 = shalt.err (!%p3973_p1)
}
  0x26   :  { %71 = dma.hbm_to_vmem [thread:$0]  %s4905_s3, 16, %s4239_s16, [#allocation9]  }
  0x27   :  { %s4147_s24 = smov [#allocation11]   ;;  %s4148_s28 = smov [#allocation2]  }
  0x28   :  { %s97_s27 = sshll.u32 %s4147_s24, 4  ;;  %s31_s29 = sshll.u32 %s4148_s28, 4  ;;  %s98_s27 = int_to_ptr.vmem [resolvable:$true] %s97_s27  ;;  %s4274_s29 = int_to_ptr.vmem [resolvable:$true] %s31_s29 }
  0x29   :  { %s3977_s18 = scalar_lea.hbm %s4911_s9, 1024 }
  0x2a   :  { %p3978_p2 = scmp.ne.s32.totalorder %s4911_s9, %s3977_s18  ;;  %p3981_p3 = scmp.lt.u32.totalorder %s3977_s18, %s4911_s9 }
  0x2c   :  { %p3983_p4 = pnand %p3981_p3, %p3978_p2 }
  0x2e   :  { %3986 = shalt.err (!%p3983_p4)
}
  0x2f   :  { %s3987_s3 = scalar_lea.vmem %s98_s27, 1024  ;;  %p3992_p6 = scmp.lt.s32.totalorder %s98_s27, %s98_s27 }
  0x30   :  { %p3988_p5 = scmp.ne.s32.totalorder %s98_s27, %s3987_s3  ;;  %p3993_p7 = scmp.lt.s32.totalorder %s3987_s3, %s3987_s3 }
  0x32   :  { %p3994_p8 = por %p3993_p7, %p3992_p6 }
  0x34   :  { %p3995_p9 = pnand %p3994_p8, %p3988_p5 }
  0x36   :  { %3998 = shalt.err (!%p3995_p9)
}
  0x37   :  { %103 = dma.hbm_to_vmem [thread:$0]  %s4911_s9, 1024, %s98_s27, [#allocation12], %s4145_s25, %s4145_s25, %s4146_s26  }
  0x38   :  { %s3999_s24 = scalar_lea.hbm %s4902_s0, 1024 }
  0x39   :  { %p4000_p10 = scmp.ne.s32.totalorder %s4902_s0, %s3999_s24  ;;  %p4003_p11 = scmp.lt.u32.totalorder %s3999_s24, %s4902_s0 }
  0x3b   :  { %p4005_p12 = pnand %p4003_p11, %p4000_p10 }
  0x3d   :  { %4008 = shalt.err (!%p4005_p12)
}
  0x3e   :  { %s4009_s19 = scalar_lea.vmem %s4274_s29, 1024  ;;  %p4014_p0 = scmp.lt.s32.totalorder %s4274_s29, %s4274_s29 }
  0x3f   :  { %p4010_p13 = scmp.ne.s32.totalorder %s4274_s29, %s4009_s19  ;;  %p4015_p1 = scmp.lt.s32.totalorder %s4009_s19, %s4009_s19 }
  0x41   :  { %p4016_p2 = por %p4015_p1, %p4014_p0 }
  0x43   :  { %p4017_p3 = pnand %p4016_p2, %p4010_p13 }
  0x45   :  { %4020 = shalt.err (!%p4017_p3)
}
  0x46   :  { %37 = dma.hbm_to_vmem [thread:$0]  %s4902_s0, 1024, %s4274_s29, [#allocation3], %s4145_s25, %s4145_s25, %s4146_s26  }
  0x47   :  { %s4149_s20 = smov [#allocation7]   ;;  %s4150_s22 = smov [#allocation10]  }
  0x48   :  { %s55_s21 = sshll.u32 %s4149_s20, 4  ;;  %s79_s3 = sshll.u32 %s4150_s22, 4  ;;  %s56_s21 = int_to_ptr.vmem [resolvable:$true] %s55_s21  ;;  %s4311_s3 = int_to_ptr.vmem [resolvable:$true] %s79_s3 }
  0x49   :  { %s4021_s30 = scalar_lea.hbm %s4904_s2, 512 }
  0x4a   :  { %p4022_p4 = scmp.ne.s32.totalorder %s4904_s2, %s4021_s30  ;;  %p4025_p5 = scmp.lt.u32.totalorder %s4021_s30, %s4904_s2 }
  0x4c   :  { %p4027_p6 = pnand %p4025_p5, %p4022_p4 }
  0x4e   :  { %4030 = shalt.err (!%p4027_p6)
}
  0x4f   :  { %s4031_s0 = scalar_lea.vmem %s56_s21, 512  ;;  %p4036_p8 = scmp.lt.s32.totalorder %s56_s21, %s56_s21 }
  0x50   :  { %p4032_p7 = scmp.ne.s32.totalorder %s56_s21, %s4031_s0  ;;  %p4037_p9 = scmp.lt.s32.totalorder %s4031_s0, %s4031_s0 }
  0x52   :  { %p4038_p10 = por %p4037_p9, %p4036_p8 }
  0x54   :  { %p4039_p11 = pnand %p4038_p10, %p4032_p7 }
  0x56   :  { %4042 = shalt.err (!%p4039_p11)
}
  0x57   :  { %61 = dma.hbm_to_vmem [thread:$0]  %s4904_s2, 512, %s56_s21, [#allocation6], %s4145_s25, %s4145_s25, %s4146_s26  }
  0x58   :  { %s4043_s9 = scalar_lea.hbm %s4907_s5, 32 }
  0x59   :  { %p4044_p12 = scmp.ne.s32.totalorder %s4907_s5, %s4043_s9  ;;  %p4047_p13 = scmp.lt.u32.totalorder %s4043_s9, %s4907_s5 }
  0x5b   :  { %p4049_p0 = pnand %p4047_p13, %p4044_p12 }
  0x5d   :  { %4052 = shalt.err (!%p4049_p0)
}
  0x5e   :  { %s4053_s1 = scalar_lea.vmem %s4311_s3, 32  ;;  %p4058_p2 = scmp.lt.s32.totalorder %s4311_s3, %s4311_s3 }
  0x5f   :  { %p4054_p1 = scmp.ne.s32.totalorder %s4311_s3, %s4053_s1  ;;  %p4059_p3 = scmp.lt.s32.totalorder %s4053_s1, %s4053_s1 }
  0x61   :  { %p4060_p4 = por %p4059_p3, %p4058_p2 }
  0x63   :  { %p4061_p5 = pnand %p4060_p4, %p4054_p1 }
  0x65   :  { %4064 = shalt.err (!%p4061_p5)
}
  0x66   :  { %s4151_s2 = smov 16   ;;  %s4152_s21 = smov 1  }
  0x67   :  { %85 = dma.hbm_to_vmem [thread:$0]  %s4907_s5, 32, %s4311_s3, [#allocation9], %s4151_s2, %s4151_s2, %s4152_s21  }
  0x68   :  { %s4153_s24 = smov [#allocation13]   ;;  %s4065_s29 = scalar_lea.hbm %s4912_s10, 1024 }
  0x69   :  { %s109_s28 = sshll.u32 %s4153_s24, 4  ;;  %p4066_p6 = scmp.ne.s32.totalorder %s4912_s10, %s4065_s29  ;;  %s110_s28 = int_to_ptr.vmem [resolvable:$true] %s109_s28 }
  0x6a   :  { %p4069_p7 = scmp.lt.u32.totalorder %s4065_s29, %s4912_s10 }
  0x6c   :  { %p4071_p8 = pnand %p4069_p7, %p4066_p6 }
  0x6e   :  { %4074 = shalt.err (!%p4071_p8)
}
  0x6f   :  { %s4075_s27 = scalar_lea.vmem %s110_s28, 1024  ;;  %p4080_p10 = scmp.lt.s32.totalorder %s110_s28, %s110_s28 }
  0x70   :  { %p4076_p9 = scmp.ne.s32.totalorder %s110_s28, %s4075_s27  ;;  %p4081_p11 = scmp.lt.s32.totalorder %s4075_s27, %s4075_s27 }
  0x72   :  { %p4082_p12 = por %p4081_p11, %p4080_p10 }
  0x74   :  { %p4083_p13 = pnand %p4082_p12, %p4076_p9 }
  0x76   :  { %4086 = shalt.err (!%p4083_p13)
}
  0x77   :  { %115 = dma.hbm_to_vmem [thread:$0]  %s4912_s10, 1024, %s110_s28, [#allocation12], %s4145_s25, %s4145_s25, %s4146_s26  }
  0x78   :  { %4131 = dma.done.wait [#allocation3], 1024  }
  0x79   :  { %4132 = vsyncadd [#allocation3], 4294966272 }
  0x7a   :  { %4133 = dma.done.wait [#allocation6], 1024  }
  0x7b   :  { %4134 = vsyncadd [#allocation6], 4294966272 }
  0x7c   :  { %4135 = dma.done.wait [#allocation9], 48  }
  0x7d   :  { %4136 = vsyncadd [#allocation9], 4294967248 }
  0x7e   :  { %4137 = dma.done.wait [#allocation12], 2048  }
  0x7f   :  { %4138 = vsyncadd [#allocation12], 4294965248  ;;  %v4154_v0 = vmov 0.0|0.0   ;;  %vm4155_vm0 = vmmov 0   ;;  %v4156_v1 = vmov 0.0   ;;  %v266_v2 = vld [vmem:[#allocation7] sm:$0xff] }
  0x80   :  { %3766 = vmatprep.subr.bf16.mxu0 %v4154_v0  ;;  %3772 = vmatprep.subr.bf16.mxu1 %v4154_v0  ;;  %v267_v3 = vld [vmem:[#allocation7 + $0x8] sm:$0xff]  ;;  %v262_v4 = vld [vmem:[#allocation5] sm:$0xff]  ;;  %v268_v7 = vld [vmem:[#allocation7 + $0x10] sm:$0xff]  ;;  %vm149_vm1 = vcmask 261120   ;;  %vm278_vm2 = vcmask 1041409   ;;  %vm280_vm3 = vcmask 1042434  }
  0x81   :  { %3568 = vmatprep.mubr.msk.f32.mxu0 %vm4155_vm0, %v4156_v1  ;;  %3579 = vmatprep.mubr.msk.f32.mxu1 %vm4155_vm0, %v4156_v1  ;;  %v3767_v5 = vpack.c.bf16 %v267_v3, %v266_v2  ;;  %v263_v6 = vld [vmem:[#allocation5 + $0x8] sm:$0xff]  ;;  %v269_v8 = vld [vmem:[#allocation7 + $0x18] sm:$0xff]  ;;  %v264_v10 = vld [vmem:[#allocation5 + $0x10] sm:$0xff]  ;;  %vm282_vm4 = vcmask 1043459   ;;  %vm284_vm5 = vcmask 1044484   ;;  %vm286_vm6 = vcmask 1045509  }
  0x82   :  { %v3773_v9 = vpack.c.bf16 %v263_v6, %v262_v4  ;;  %v265_v11 = vld [vmem:[#allocation5 + $0x18] sm:$0xff]  ;;  %v459_v12 = vld [vmem:[%s4906_s4] sm:$0xff]  ;;  %v3770_v13 = vpack.c.bf16 %v269_v8, %v268_v7  ;;  %v460_v15 = vld [vmem:[%s4906_s4 + $0x8] sm:$0xff]  ;;  %vm288_vm7 = vcmask 1046534   ;;  %vm290_vm8 = vcmask 1047559   ;;  %s4159_s3 = smov 64  }
  0x83   :  { %3768 = vmatpush3.bf16.msra.mxu0 %v3767_v5  ;;  %v3776_v14 = vpack.c.bf16 %v265_v11, %v264_v10  ;;  %v4372_v16 = vld [vmem:[#allocation2] sm:$0xff]  ;;  %v4374_v17 = vld [vmem:[#allocation2 + $0x8] sm:$0xff]  ;;  %v4377_v18 = vpack.c.bf16 %v460_v15, %v459_v12  ;;  %v4379_v19 = vld [vmem:[#allocation2 + $0x10] sm:$0xff]  ;;  %vm1016_vm11 = vcmask 57344   ;;  %s4160_s10 = smov 32   ;;  %s4161_s22 = smov 96  }
  0x84   :  { %3774 = vmatpush3.bf16.msra.mxu1 %v3773_v9  ;;  %3769 = vmatprep.subr.bf16.mxu0 %v4154_v0  ;;  %v4381_v20 = vld [vmem:[#allocation2 + $0x18] sm:$0xff]  ;;  %v4383_v21 = vld [vmem:[#allocation2 + $0x20] sm:$0xff]  ;;  %v206_v22 = vsel %vm149_vm1, %v4372_v16, -inf  ;;  %v213_v23 = vsel %vm149_vm1, %v4374_v17, -inf  ;;  %v4391_v24 = vsel %vm149_vm1, %v4372_v16, 0.0  ;;  %v4394_v25 = vld [vmem:[#allocation2 + $0x28] sm:$0xff] }
  0x85   :  { %3775 = vmatprep.subr.bf16.mxu1 %v4154_v0  ;;  %v4396_v26 = vld [vmem:[#allocation2 + $0x30] sm:$0xff]  ;;  %v4398_v27 = vld [vmem:[#allocation2 + $0x38] sm:$0xff]  ;;  %v207_v28 = vrot.slane %v206_v22, 4  ;;  %v214_v29 = vrot.slane %v213_v23, 4  ;;  %v220_v30 = vsel %vm149_vm1, %v4379_v19, -inf  ;;  %v227_v32 = vsel %vm149_vm1, %v4381_v20, -inf }
  0x86   :  { %v221_v31 = vrot.slane %v220_v30, 4  ;;  %v234_v33 = vsel %vm149_vm1, %v4383_v21, -inf  ;;  %v241_v34 = vsel %vm149_vm1, %v4394_v25, -inf  ;;  %v228_v37 = vrot.slane %v227_v32, 4 }
  0x87   :  { %3771 = vmatpush3.bf16.msra.mxu0 %v3770_v13  ;;  %v208_v35 = vmax.f32 %v206_v22, %v207_v28  ;;  %v215_v36 = vmax.f32 %v213_v23, %v214_v29  ;;  %v235_v38 = vrot.slane %v234_v33, 4  ;;  %v242_v40 = vrot.slane %v241_v34, 4 }
  0x88   :  { %3777 = vmatpush3.bf16.msra.mxu1 %v3776_v14  ;;  %3779 = vmatprep.subr.bf16.mxu0 %v4377_v18  ;;  %v222_v39 = vmax.f32 %v220_v30, %v221_v31  ;;  %v248_v41 = vsel %vm149_vm1, %v4396_v26, -inf  ;;  %v255_v42 = vsel %vm149_vm1, %v4398_v27, -inf  ;;  %v229_v45 = vmax.f32 %v227_v32, %v228_v37 }
  0x89   :  { %v209_v43 = vrot.slane %v208_v35, 2  ;;  %v216_v44 = vrot.slane %v215_v36, 2  ;;  %v236_v46 = vmax.f32 %v234_v33, %v235_v38  ;;  %v243_v48 = vmax.f32 %v241_v34, %v242_v40 }
  0x8a   :  { %v223_v47 = vrot.slane %v222_v39, 2  ;;  %v249_v49 = vrot.slane %v248_v41, 4  ;;  %v256_v50 = vrot.slane %v255_v42, 4  ;;  %v230_v53 = vrot.slane %v229_v45, 2 }
  0x8b   :  { %v210_v51 = vmax.f32 %v208_v35, %v209_v43  ;;  %v217_v52 = vmax.f32 %v215_v36, %v216_v44  ;;  %v237_v54 = vrot.slane %v236_v46, 2  ;;  %v244_v56 = vrot.slane %v243_v48, 2 }
  0x8c   :  { %v224_v55 = vmax.f32 %v222_v39, %v223_v47  ;;  %v250_v57 = vmax.f32 %v248_v41, %v249_v49  ;;  %v257_v58 = vmax.f32 %v255_v42, %v256_v50  ;;  %v231_v61 = vmax.f32 %v229_v45, %v230_v53 }
  0x8d   :  { %v211_v59 = vrot.slane %v210_v51, 1  ;;  %v218_v60 = vrot.slane %v217_v52, 1  ;;  %v238_v62 = vmax.f32 %v236_v46, %v237_v54  ;;  %v245_v2 = vmax.f32 %v243_v48, %v244_v56 }
  0x8e   :  { %v225_v63 = vrot.slane %v224_v55, 1  ;;  %v251_v3 = vrot.slane %v250_v57, 2  ;;  %v258_v4 = vrot.slane %v257_v58, 2  ;;  %v232_v7 = vrot.slane %v231_v61, 1 }
  0x8f   :  { %v212_v5 = vmax.f32 %v210_v51, %v211_v59  ;;  %v219_v6 = vmax.f32 %v217_v52, %v218_v60  ;;  %v239_v8 = vrot.slane %v238_v62, 1  ;;  %v246_v10 = vrot.slane %v245_v2, 1 }
  0x90   :  { %v226_v9 = vmax.f32 %v224_v55, %v225_v63  ;;  %v252_v11 = vmax.f32 %v250_v57, %v251_v3  ;;  %v259_v12 = vmax.f32 %v257_v58, %v258_v4  ;;  %v233_v13 = vmax.f32 %v231_v61, %v232_v7  ;;  %v462_v63 = vld [vmem:[%s4906_s4 + $0x18] sm:$0xff] }
  0x91   :  { %v240_v14 = vmax.f32 %v238_v62, %v239_v8  ;;  %v279_v15 = vsel %vm278_vm2, %v219_v6, %v212_v5  ;;  %v151_v22 = vrot.slane %v4391_v24, 4  ;;  %v247_v23 = vmax.f32 %v245_v2, %v246_v10  ;;  %v461_v62 = vld [vmem:[%s4906_s4 + $0x10] sm:$0xff] }
  0x92   :  { %v253_v28 = vrot.slane %v252_v11, 1  ;;  %v260_v29 = vrot.slane %v259_v12, 1  ;;  %v281_v30 = vsel %vm280_vm3, %v226_v9, %v279_v15  ;;  %v157_v33 = vsel %vm149_vm1, %v4374_v17, 0.0 }
  0x93   :  { %v283_v31 = vsel %vm282_vm4, %v233_v13, %v281_v30  ;;  %v152_v32 = vadd.f32 %v151_v22, %v4391_v24  ;;  %v164_v34 = vsel %vm149_vm1, %v4379_v19, 0.0  ;;  %v158_v38 = vrot.slane %v157_v33, 4 }
  0x94   :  { %v254_v35 = vmax.f32 %v252_v11, %v253_v28  ;;  %v261_v36 = vmax.f32 %v259_v12, %v260_v29  ;;  %v285_v37 = vsel %vm284_vm5, %v240_v14, %v283_v31  ;;  %v165_v41 = vrot.slane %v164_v34, 4 }
  0x95   :  { %v287_v39 = vsel %vm286_vm6, %v247_v23, %v285_v37  ;;  %v153_v40 = vrot.slane %v152_v32, 2  ;;  %v171_v42 = vsel %vm149_vm1, %v4381_v20, 0.0  ;;  %v159_v43 = vadd.f32 %v158_v38, %v157_v33 }
  0x96   :  { %v289_v24 = vsel %vm288_vm7, %v254_v35, %v287_v39  ;;  %v172_v44 = vrot.slane %v171_v42, 4  ;;  %v178_v45 = vsel %vm149_vm1, %v4383_v21, 0.0  ;;  %v166_v48 = vadd.f32 %v165_v41, %v164_v34 }
  0x97   :  { %v291_v46 = vsel %vm290_vm8, %v261_v36, %v289_v24  ;;  %v154_v47 = vadd.f32 %v153_v40, %v152_v32  ;;  %v179_v49 = vrot.slane %v178_v45, 4  ;;  %v160_v50 = vrot.slane %v159_v43, 2 }
  0x98   :  { %3569 = vmatmul.mubr.msk.f32.vlgmr.msra.gmra.mrb[0].mxu0 %vm149_vm1, %v291_v46  ;;  %v173_v51 = vadd.f32 %v172_v44, %v171_v42  ;;  %v185_v52 = vsel %vm149_vm1, %v4394_v25, 0.0  ;;  %v192_v53 = vsel %vm149_vm1, %v4396_v26, 0.0  ;;  %v167_v55 = vrot.slane %v166_v48, 2 }
  0x99   :  { %v155_v54 = vrot.slane %v154_v47, 1  ;;  %v180_v56 = vadd.f32 %v179_v49, %v178_v45  ;;  %v186_v57 = vrot.slane %v185_v52, 4  ;;  %3781 = vmatpush3.bf16.msra.mxu0 %v4377_v18  ;;  %3590 = vmatprep.mubr.msk.f32.mxu0 %vm149_vm1, %v4372_v16  ;;  %v161_v58 = vadd.f32 %v160_v50, %v159_v43 }
  0x9a   :  { %v174_v59 = vrot.slane %v173_v51, 2  ;;  %v193_v60 = vrot.slane %v192_v53, 4  ;;  %v199_v61 = vsel %vm149_vm1, %v4398_v27, 0.0  ;;  %v168_v3 = vadd.f32 %v167_v55, %v166_v48 }
  0x9b   :  { %v156_v2 = vadd.f32 %v155_v54, %v154_v47  ;;  %v181_v18 = vrot.slane %v180_v56, 2  ;;  %v187_v4 = vadd.f32 %v186_v57, %v185_v52  ;;  %v162_v5 = vrot.slane %v161_v58, 1  ;;  %v3397_v57 = vld [vmem:[#allocation8] ss:$0 sm:$0xff] }
  0x9c   :  { %v175_v6 = vadd.f32 %v174_v59, %v173_v51  ;;  %v194_v7 = vadd.f32 %v193_v60, %v192_v53  ;;  %v200_v8 = vrot.slane %v199_v61, 4  ;;  %v169_v9 = vrot.slane %v168_v3, 1 }
  0x9d   :  { %v182_v10 = vadd.f32 %v181_v18, %v180_v56  ;;  %v188_v11 = vrot.slane %v187_v4, 2  ;;  %v3782_v12 = vpack.c.bf16 %v462_v63, %v461_v62  ;;  %v163_v13 = vadd.f32 %v162_v5, %v161_v58 }
  0x9e   :  { %v176_v14 = vrot.slane %v175_v6, 1  ;;  %v195_v15 = vrot.slane %v194_v7, 2  ;;  %v201_v22 = vadd.f32 %v200_v8, %v199_v61  ;;  %v170_v23 = vadd.f32 %v169_v9, %v168_v3  ;;  %v3406_v61 = vld [vmem:[#allocation10] ss:$0 sm:$0xff] }
  0x9f   :  { %v183_v28 = vrot.slane %v182_v10, 1  ;;  %v189_v29 = vadd.f32 %v188_v11, %v187_v4  ;;  %3783 = vmatprep.subr.bf16.mxu0 %v3782_v12  ;;  %v372_v33 = vsel %vm278_vm2, %v163_v13, %v156_v2  ;;  %v4157_v2 = vmov 0  }
  0xa0   :  { %v177_v30 = vadd.f32 %v176_v14, %v175_v6  ;;  %v196_v31 = vadd.f32 %v195_v15, %v194_v7  ;;  %v202_v32 = vrot.slane %v201_v22, 2  ;;  %3785 = vmatpush3.bf16.msra.mxu0 %v3782_v12  ;;  %v373_v36 = vsel %vm280_vm3, %v170_v23, %v372_v33 }
  0xa1   :  { %v184_v34 = vadd.f32 %v183_v28, %v182_v10  ;;  %v190_v35 = vrot.slane %v189_v29, 1  ;;  %3622 = vmatprep.subr.mxu0 %v4156_v1  ;;  %v4158_v4 = vmov 1966171168   ;;  %v875_v6 = vlaneseq  ;;  %v3407_v10 = vld [vmem:[%s4908_s6] ss:$0 sm:$0xff] }
  0xa2   :  { %v197_v37 = vrot.slane %v196_v31, 1  ;;  %v203_v38 = vadd.f32 %v202_v32, %v201_v22  ;;  %v374_v39 = vsel %vm282_vm4, %v177_v30, %v373_v36  ;;  %v873_v5 = vunpack.c.l.s4 %v4158_v4 }
  0xa3   :  { %v191_v40 = vadd.f32 %v190_v35, %v189_v29  ;;  %v375_v41 = vsel %vm284_vm5, %v184_v34, %v374_v39  ;;  %3591 = vmatmul.mubr.msk.f32.vlgmr.msra.gmra.mrb[2].mxu0 %vm149_vm1, %v4374_v17  ;;  %v876_v9 = vshrl.u32 %v875_v6, 7  ;;  %v1107_v39 = vld [vmem:[%s4909_s7 + $0x10] sm:$0xff] }
  0xa4   :  { %v198_v42 = vadd.f32 %v197_v37, %v196_v31  ;;  %v204_v24 = vrot.slane %v203_v38, 1  ;;  %3593 = vmatprep.mubr.msk.f32.mxu0 %vm149_vm1, %v4379_v19  ;;  %v874_v8 = vunpack.c.0.s8 %v873_v5  ;;  %v1105_v37 = vld [vmem:[%s4909_s7] sm:$0xff] }
  0xa5   :  { %v376_v43 = vsel %vm286_vm6, %v191_v40, %v375_v41  ;;  %v1108_v41 = vld [vmem:[%s4909_s7 + $0x18] sm:$0xff] }
  0xa6   :  { %v205_v44 = vadd.f32 %v204_v24, %v203_v38  ;;  %v377_v45 = vsel %vm288_vm7, %v198_v42, %v376_v43  ;;  %v4484_v11 = vsub.s32 %v874_v8, %v876_v9  ;;  %v1106_v38 = vld [vmem:[%s4909_s7 + $0x8] sm:$0xff]  ;;  %v3790_v42 = vpack.c.bf16 %v1108_v41, %v1107_v39 }
  0xa7   :  { %3594 = vmatmul.mubr.msk.f32.gmra.mrb[4].mxu0 %vm149_vm1, %v4381_v20  ;;  %v3786_v40 = vpack.c.bf16 %v1106_v38, %v1105_v37 }
  0xa8   :  { %v378_v46 = vsel %vm290_vm8, %v205_v44, %v377_v45  ;;  %3596 = vmatprep.mubr.msk.f32.mxu0 %vm149_vm1, %v4383_v21 }
  0xa9   :  { %3580 = vmatmul.mubr.msk.f32.vlgmr.msra.gmra.mrb[0].mxu1 %vm149_vm1, %v378_v46  ;;  %3787 = vmatprep.subr.bf16.mxu1 %v3786_v40 }
  0xaa   :  { %3610 = vmatprep.mubr.msk.f32.mxu1 %vm149_vm1, %v4372_v16  ;;  %3789 = vmatpush3.bf16.msra.mxu1 %v3786_v40 }
  0xab   :  { %3597 = vmatmul.mubr.msk.f32.gmra.mrb[6].mxu0 %vm149_vm1, %v4394_v25  ;;  %3791 = vmatprep.subr.bf16.mxu1 %v3790_v42 }
  0xac   :  { %3599 = vmatprep.mubr.msk.f32.mxu0 %vm149_vm1, %v4396_v26 }
  0xae   :  { %3793 = vmatpush3.bf16.msra.mxu1 %v3790_v42 }
  0xaf   :  { %3600 = vmatmul.mubr.msk.f32.gmra.mrb[8].mxu0 %vm149_vm1, %v4398_v27  ;;  %3627 = vmatprep.subr.mxu1 %v4156_v1 }
  0xb0   :  { %3624 = vmatprep.mubr.msk.f32.mxu0 %vm4155_vm0, %v4156_v1 }
  0xb1   :  { %3611 = vmatmul.mubr.msk.f32.vlgmr.msra.gmra.mrb[2].mxu1 %vm149_vm1, %v4374_v17 }
  0xb2   :  { %3613 = vmatprep.mubr.msk.f32.mxu1 %vm149_vm1, %v4379_v19 }
  0xb5   :  { %3614 = vmatmul.mubr.msk.f32.gmra.mrb[4].mxu1 %vm149_vm1, %v4381_v20 }
  0xb6   :  { %3616 = vmatprep.mubr.msk.f32.mxu1 %vm149_vm1, %v4383_v21 }
  0xb9   :  { %3617 = vmatmul.mubr.msk.f32.gmra.mrb[6].mxu1 %vm149_vm1, %v4394_v25  ;;  %v4531_v25 = vsub.s32 0, %v876_v9 }
  0xba   :  { %3619 = vmatprep.mubr.msk.f32.mxu1 %vm149_vm1, %v4396_v26 }
  0xbd   :  { %3620 = vmatmul.mubr.msk.f32.gmra.mrb[8].mxu1 %vm149_vm1, %v4398_v27 }
  0xbe   :  { %3629 = vmatprep.mubr.msk.f32.mxu1 %vm4155_vm0, %v4156_v1 }
 0x16b   :  { %v360_v47 = vpop.f32.mrb[0].mxu0 }
 0x16c   :  { %v3570_v48 = vpop.f32.mrb[1].mxu0 }
 0x176   :  { %v3592_v49 = vpop.f32.mrb[2].mxu0 }
 0x177   :  { %624 = vxpose.xlu0.b32.start.end [1/1] (short) (narrow) %v3592_v49, 8  ;;  %v553_v50 = vpop.f32.mrb[3].mxu0 }
 0x178   :  { %592 = vxpose.xlu1.b32.start.end [1/1] (short) (narrow) %v553_v50, 8 }
 0x17a   :  { %v3595_v51 = vpop.f32.mrb[4].mxu0 }
 0x17b   :  { %v563_v16 = vpop.f32.mrb[5].mxu0 }
 0x17c   :  { %v447_v52 = vpop.f32.mrb[0].mxu1  ;;  %688 = vxpose.xlu1.b32.start.end [1/1] (short) (narrow) %v3595_v51, 8 }
 0x17d   :  { %v448_v53 = vadd.f32 %v447_v52, %v360_v47  ;;  %v3581_v54 = vpop.f32.mrb[1].mxu1 }
 0x17e   :  { %v3598_v55 = vpop.f32.mrb[6].mxu0 }
 0x17f   :  { %v573_v56 = vpop.f32.mrb[7].mxu0  ;;  %v4473_v58 = vadd.f32 %v3397_v57, %v448_v53 }
 0x180   :  { %656 = vxpose.xlu1.b32.start.end [1/1] (short) (narrow) %v563_v16, 8 }
 0x181   :  { %v849_v59 = vmul.f32 0.01, %v4473_v58  ;;  %vm848_vm9 = vcmp.gt.f32.partialorder %v4473_v58, 0.0 }
 0x182   :  { %v3601_v3 = vpop.f32.mrb[8].mxu0 }
 0x183   :  { %v850_v60 = vsel %vm848_vm9, %v4473_v58, %v849_v59  ;;  %v583_v18 = vpop.f32.mrb[9].mxu0 }
 0x184   :  { %720 = vxpose.xlu1.b32.start.end [1/1] (short) (narrow) %v573_v56, 8  ;;  %v858_v62 = vmul.f32 %v3406_v61, %v850_v60 }
 0x186   :  { %v859_v63 = vsel %vm149_vm1, %v858_v62, 0.0 }
 0x1a2   :  { %3848 = vset.pattern.permute.xlu1 %v4157_v2 }
 0x1a4   :  { %860 = vadd.xlane.f32.xlu0 %v859_v63 }
 0x1d1   :  { %752 = vxpose.xlu0.b32.start.end [1/1] (short) (narrow) %v3598_v55, 8 }
 0x1f7   :  { %v4479_v7 = vpop.trf.xlu0 }
 0x1f8   :  { %v4521_v17 = vpop.trf.xlu1 }
 0x1fa   :  { %3847 = vset.pattern.permute.xlu0 %v4157_v2 }
 0x1fc   :  { %v4523_v19 = vpop.trf.xlu1 }
 0x200   :  { %v4525_v20 = vpop.trf.xlu1 }
 0x204   :  { %v4529_v21 = vpop.trf.xlu1 }
 0x231   :  { %v861_v12 = vpop.xlane.xlu0 %860 }
 0x232   :  { %v869_v13 = vadd.f32 %v3407_v10, %v861_v12 }
 0x234   :  { %v878_v14 = vrot.slane %v869_v13, %v4484_v11  ;;  %v871_v23 = vcombine.high %v869_v13, %v869_v13 }
 0x236   :  { %v886_v15 = vcombine.high %v878_v14, %v878_v14  ;;  %v894_v22 = vrot.slane %v878_v14, %v4484_v11  ;;  %v885_v29 = vrot.slane %v871_v23, %v4484_v11 }
 0x238   :  { %921 = vperm.xlu0 %3847, %v894_v22   ;;  %v908_v28 = vrot.slane %v886_v15, %v4484_v11  ;;  %v916_v30 = vcombine.high %v894_v22, %v894_v22  ;;  %v901_v31 = vrot.slane %v885_v29, %v4484_v11  ;;  %v887_v33 = vcombine.high %v885_v29, %v885_v29 }
 0x23a   :  { %929 = vperm.xlu1 %3848, %v908_v28   ;;  %v918_v32 = vcombine.high %v908_v28, %v908_v28  ;;  %v915_v34 = vrot.slane %v887_v33, %v4484_v11  ;;  %v917_v35 = vcombine.high %v901_v31, %v901_v31 }
 0x23c   :  { %v919_v36 = vcombine.high %v915_v34, %v915_v34 }
 0x23e   :  { %937 = vperm.xlu1 %3848, %v916_v30  }
 0x242   :  { %953 = vperm.xlu1 %3848, %v901_v31  }
 0x246   :  { %945 = vperm.xlu1 %3848, %v918_v32  }
 0x24a   :  { %961 = vperm.xlu1 %3848, %v915_v34  }
 0x24e   :  { %969 = vperm.xlu1 %3848, %v917_v35  }
 0x251   :  { %v4527_v24 = vpop.trf.xlu0 }
 0x252   :  { %977 = vperm.xlu1 %3848, %v919_v36  }
 0x256   :  { %816 = vxpose.xlu0.b32.start.end [1/1] (short) (narrow) %v3601_v3, 8 }
 0x27b   :  { %784 = vxpose.xlu1.b32.start.end [1/1] (short) (narrow) %v583_v18, 8 }
 0x2b7   :  { %v922_v43 = vpop.permute.xlu0 %921 }
 0x2b8   :  { %v927_v26 = vrot.slane %v922_v43, %v4531_v25 }
 0x2b9   :  { %v930_v44 = vpop.permute.xlu1 %929 }
 0x2ba   :  { %v984_v27 = vadd.f32 %v927_v26, %v4521_v17  ;;  %v935_v45 = vrot.slane %v930_v44, %v4531_v25 }
 0x2bc   :  { %v985_v46 = vadd.f32 %v935_v45, %v4479_v7  ;;  %vm992_vm10 = vcmp.gt.f32.partialorder %v984_v27, 0.0  ;;  %v1000_v47 = vmul.f32 0.01, %v984_v27 }
 0x2bd   :  { %v938_v48 = vpop.permute.xlu1 %937 }
 0x2be   :  { %v943_v49 = vrot.slane %v938_v48, %v4531_v25  ;;  %v1008_v50 = vsel %vm992_vm10, %v984_v27, %v1000_v47  ;;  %vm993_vm12 = vcmp.gt.f32.partialorder %v985_v46, 0.0  ;;  %v1001_v51 = vmul.f32 0.01, %v985_v46 }
 0x2bf   :  { %v1017_v16 = vsel %vm1016_vm11, %v1008_v50, -inf }
 0x2c0   :  { %v986_v52 = vadd.f32 %v943_v49, %v4525_v20  ;;  %1018 = vmax.xlane.f32.xlu1 %v1017_v16  ;;  %v1009_v53 = vsel %vm993_vm12, %v985_v46, %v1001_v51 }
 0x2c1   :  { %v954_v54 = vpop.permute.xlu1 %953  ;;  %v1020_v55 = vsel %vm1016_vm11, %v1009_v53, -inf }
 0x2c2   :  { %v959_v56 = vrot.slane %v954_v54, %v4531_v25  ;;  %1021 = vmax.xlane.f32.xlu0 %v1020_v55  ;;  %vm994_vm13 = vcmp.gt.f32.partialorder %v986_v52, 0.0  ;;  %v1002_v57 = vmul.f32 0.01, %v986_v52 }
 0x2c4   :  { %v988_v59 = vadd.f32 %v959_v56, %v4529_v21  ;;  %v1010_v60 = vsel %vm994_vm13, %v986_v52, %v1002_v57 }
 0x2c5   :  { %v946_v61 = vpop.permute.xlu1 %945  ;;  %v1023_v62 = vsel %vm1016_vm11, %v1010_v60, -inf }
 0x2c6   :  { %v951_v63 = vrot.slane %v946_v61, %v4531_v25  ;;  %1024 = vmax.xlane.f32.xlu1 %v1023_v62  ;;  %vm996_vm14 = vcmp.gt.f32.partialorder %v988_v59, 0.0  ;;  %v1004_v2 = vmul.f32 0.01, %v988_v59 }
 0x2c8   :  { %v987_v3 = vadd.f32 %v951_v63, %v4523_v19  ;;  %v1012_v18 = vsel %vm996_vm14, %v988_v59, %v1004_v2 }
 0x2c9   :  { %v962_v4 = vpop.permute.xlu1 %961  ;;  %v1029_v5 = vsel %vm1016_vm11, %v1012_v18, -inf }
 0x2ca   :  { %v967_v6 = vrot.slane %v962_v4, %v4531_v25  ;;  %1030 = vmax.xlane.f32.xlu0 %v1029_v5  ;;  %vm995_vm15 = vcmp.gt.f32.partialorder %v987_v3, 0.0  ;;  %v1003_v8 = vmul.f32 0.01, %v987_v3 }
 0x2cc   :  { %v989_v9 = vadd.f32 %v967_v6, %v4527_v24  ;;  %v1011_v10 = vsel %vm995_vm15, %v987_v3, %v1003_v8 }
 0x2cd   :  { %v970_v12 = vpop.permute.xlu1 %969  ;;  %v1026_v13 = vsel %vm1016_vm11, %v1011_v10, -inf }
 0x2ce   :  { %1027 = vmax.xlane.f32.xlu1 %v1026_v13  ;;  %vm997_vm9 = vcmp.gt.f32.partialorder %v989_v9, 0.0  ;;  %v1005_v14 = vmul.f32 0.01, %v989_v9  ;;  %v975_v34 = vrot.slane %v970_v12, %v4531_v25  ;;  %v3612_v12 = vpop.f32.mrb[2].mxu1  ;;  %v3408_v13 = vld [vmem:[%s4910_s8] ss:$0 sm:$0xff] }
 0x2d0   :  { %v1013_v15 = vsel %vm997_vm9, %v989_v9, %v1005_v14  ;;  %v1182_v14 = vpop.f32.mrb[3].mxu1 }
 0x2d1   :  { %v1032_v22 = vsel %vm1016_vm11, %v1013_v15, -inf  ;;  %v978_v23 = vpop.permute.xlu1 %977 }
 0x2d2   :  { %1033 = vmax.xlane.f32.xlu1 %v1032_v22  ;;  %v983_v28 = vrot.slane %v978_v23, %v4531_v25  ;;  %v1183_v22 = vadd.f32 %v3408_v13, %v1182_v14 }
 0x2d4   :  { %vm1221_vm13 = vcmp.gt.f32.partialorder %v1183_v22, 0.0 }
 0x2d6   :  { %v4552_v29 = vpop.trf.xlu0 }
 0x2d7   :  { %v991_v30 = vadd.f32 %v983_v28, %v4552_v29  ;;  %v1229_v28 = vmul.f32 0.01, %v1183_v22 }
 0x2d9   :  { %vm999_vm10 = vcmp.gt.f32.partialorder %v991_v30, 0.0  ;;  %v1007_v31 = vmul.f32 0.01, %v991_v30 }
 0x2db   :  { %v1015_v32 = vsel %vm999_vm10, %v991_v30, %v1007_v31  ;;  %v3615_v30 = vpop.f32.mrb[4].mxu1  ;;  %vm1245_vm10 = vcmask 64512  }
 0x2dc   :  { %v1038_v33 = vsel %vm1016_vm11, %v1015_v32, -inf  ;;  %v1198_v31 = vadd.f32 %v3615_v30, %v3408_v13 }
 0x2dd   :  { %1039 = vmax.xlane.f32.xlu1 %v1038_v33  ;;  %v1237_v33 = vsel %vm1221_vm13, %v1183_v22, %v1229_v28 }
 0x2de   :  { %3623 = vmatpush3.msra.mxu0 %v1237_v33  ;;  %vm1224_vm9 = vcmp.gt.f32.partialorder %v1198_v31, 0.0 }
 0x2df   :  { %3632 = vmatprep.subr.mxu0 %v4156_v1 }
 0x2fb   :  { %v4557_v35 = vpop.trf.xlu1 }
 0x2fc   :  { %v990_v36 = vadd.f32 %v975_v34, %v4557_v35 }
 0x2fe   :  { %vm998_vm12 = vcmp.gt.f32.partialorder %v990_v36, 0.0  ;;  %v1006_v37 = vmul.f32 0.01, %v990_v36 }
 0x300   :  { %v4560_v38 = vsel %vm998_vm12, %v990_v36, %v1006_v37 }
 0x301   :  { %v1035_v39 = vsel %vm1016_vm11, %v4560_v38, -inf }
 0x302   :  { %1036 = vmax.xlane.f32.xlu0 %v1035_v39 }
 0x34d   :  { %v1019_v40 = vpop.xlane.xlu1 %1018 }
 0x34e   :  { %v1041_v41 = vsub.f32 %v1008_v50, %v1019_v40 }
 0x34f   :  { %v1022_v42 = vpop.xlane.xlu0 %1021 }
 0x350   :  { %v1049_v43 = vmul.f32 1.442695, %v1041_v41  ;;  %v1042_v26 = vsub.f32 %v1009_v53, %v1022_v42 }
 0x352   :  { %3849 = vpow2.f32 %v1049_v43  ;;  %v1051_v44 = vmul.f32 1.442695, %v1042_v26 }
 0x353   :  { %v1025_v27 = vpop.xlane.xlu1 %1024 }
 0x354   :  { %3851 = vpow2.f32 %v1051_v44  ;;  %v1043_v45 = vsub.f32 %v1010_v60, %v1025_v27 }
 0x356   :  { %v1053_v46 = vmul.f32 1.442695, %v1043_v45 }
 0x357   :  { %v1031_v47 = vpop.xlane.xlu0 %1030 }
 0x358   :  { %3853 = vpow2.f32 %v1053_v46  ;;  %v1045_v48 = vsub.f32 %v1012_v18, %v1031_v47 }
 0x35a   :  { %v1057_v49 = vmul.f32 1.442695, %v1045_v48 }
 0x35b   :  { %v1028_v51 = vpop.xlane.xlu1 %1027 }
 0x35c   :  { %v4564_v16 = vpop.eup %3849  ;;  %3855 = vpow2.f32 %v1057_v49  ;;  %v1044_v52 = vsub.f32 %v1011_v10, %v1028_v51 }
 0x35d   :  { %v1065_v50 = vsel %vm1016_vm11, %v4564_v16, 0.0 }
 0x35e   :  { %v4568_v54 = vpop.eup %3851  ;;  %v1055_v53 = vmul.f32 1.442695, %v1044_v52  ;;  %1066 = vadd.xlane.f32.xlu0 %v1065_v50 }
 0x35f   :  { %v1034_v55 = vpop.xlane.xlu1 %1033  ;;  %v1068_v56 = vsel %vm1016_vm11, %v4568_v54, 0.0 }
 0x360   :  { %3857 = vpow2.f32 %v1055_v53  ;;  %v1046_v57 = vsub.f32 %v1013_v15, %v1034_v55  ;;  %1069 = vadd.xlane.f32.xlu1 %v1068_v56  ;;  %v1188_v15 = vadd.f32 %v3612_v12, %v3408_v13  ;;  %v1232_v53 = vmul.f32 0.01, %v1198_v31 }
 0x362   :  { %v4572_v59 = vpop.eup %3853  ;;  %v1059_v60 = vmul.f32 1.442695, %v1046_v57  ;;  %v1230_v23 = vmul.f32 0.01, %v1188_v15  ;;  %vm1222_vm14 = vcmp.gt.f32.partialorder %v1188_v15, 0.0 }
 0x363   :  { %v1071_v61 = vsel %vm1016_vm11, %v4572_v59, 0.0 }
 0x364   :  { %3859 = vpow2.f32 %v1059_v60  ;;  %1072 = vadd.xlane.f32.xlu0 %v1071_v61  ;;  %v1238_v36 = vsel %vm1222_vm14, %v1188_v15, %v1230_v23 }
 0x365   :  { %3628 = vmatpush3.msra.mxu1 %v1238_v36 }
 0x366   :  { %v4576_v62 = vpop.eup %3855  ;;  %3637 = vmatprep.subr.mxu1 %v4156_v1 }
 0x367   :  { %v1077_v63 = vsel %vm1016_vm11, %v4576_v62, 0.0 }
 0x368   :  { %1078 = vadd.xlane.f32.xlu0 %v1077_v63 }
 0x36a   :  { %v4580_v2 = vpop.eup %3857  ;;  %v1040_v3 = vpop.xlane.xlu1 %1039 }
 0x36b   :  { %v1048_v18 = vsub.f32 %v1015_v32, %v1040_v3  ;;  %v1074_v4 = vsel %vm1016_vm11, %v4580_v2, 0.0  ;;  %v1192_v32 = vpop.f32.mrb[5].mxu1 }
 0x36c   :  { %1075 = vadd.xlane.f32.xlu1 %v1074_v4  ;;  %v1193_v34 = vadd.f32 %v3408_v13, %v1192_v32  ;;  %v3618_v37 = vpop.f32.mrb[6].mxu1 }
 0x36d   :  { %v1063_v5 = vmul.f32 1.442695, %v1048_v18  ;;  %v4596_v39 = vadd.f32 %v3618_v37, %v3408_v13  ;;  %v1202_v40 = vpop.f32.mrb[7].mxu1  ;;  %v1240_v18 = vsel %vm1224_vm9, %v1198_v31, %v1232_v53 }
 0x36e   :  { %v4584_v6 = vpop.eup %3859  ;;  %v1203_v41 = vadd.f32 %v3408_v13, %v1202_v40  ;;  %v3621_v44 = vpop.f32.mrb[8].mxu1  ;;  %vm1223_vm15 = vcmp.gt.f32.partialorder %v1193_v34, 0.0 }
 0x36f   :  { %3861 = vpow2.f32 %v1063_v5  ;;  %v1080_v8 = vsel %vm1016_vm11, %v4584_v6, 0.0  ;;  %v4600_v27 = vadd.f32 %v3621_v44, %v3408_v13  ;;  %v1212_v47 = vpop.f32.mrb[9].mxu1  ;;  %vm1226_vm13 = vcmp.gt.f32.partialorder %v4596_v39, 0.0 }
 0x370   :  { %1081 = vadd.xlane.f32.xlu1 %v1080_v8  ;;  %v1213_v48 = vadd.f32 %v3408_v13, %v1212_v47  ;;  %v1233_v3 = vmul.f32 0.01, %v1203_v41  ;;  %v1962_v47 = vld [vmem:[#allocation13 + $0x18] sm:$0xff] }
 0x371   :  { %v1236_v31 = vmul.f32 0.01, %v4600_v27  ;;  %vm1228_vm14 = vcmp.gt.f32.partialorder %v4600_v27, 0.0 }
 0x372   :  { %vm1227_vm12 = vcmp.gt.f32.partialorder %v1213_v48, 0.0 }
 0x373   :  { %v1244_v37 = vsel %vm1228_vm14, %v4600_v27, %v1236_v31 }
 0x379   :  { %v4588_v9 = vpop.eup %3861 }
 0x37a   :  { %v1086_v10 = vsel %vm1016_vm11, %v4588_v9, 0.0 }
 0x37b   :  { %1087 = vadd.xlane.f32.xlu1 %v1086_v10  ;;  %v1235_v10 = vmul.f32 0.01, %v1213_v48 }
 0x37d   :  { %v1243_v22 = vsel %vm1227_vm12, %v1213_v48, %v1235_v10 }
 0x38f   :  { %v1037_v42 = vpop.xlane.xlu0 %1036 }
 0x390   :  { %v1047_v43 = vsub.f32 %v4560_v38, %v1037_v42  ;;  %v1231_v38 = vmul.f32 0.01, %v1193_v34  ;;  %v1959_v42 = vld [vmem:[#allocation13] sm:$0xff] }
 0x392   :  { %v1061_v26 = vmul.f32 1.442695, %v1047_v43  ;;  %v1239_v57 = vsel %vm1223_vm15, %v1193_v34, %v1231_v38  ;;  %v1960_v43 = vld [vmem:[#allocation13 + $0x8] sm:$0xff] }
 0x393   :  { %v3801_v44 = vpack.c.bf16 %v1960_v43, %v1959_v42 }
 0x394   :  { %3863 = vpow2.f32 %v1061_v26 }
 0x39e   :  { %v4602_v45 = vpop.eup %3863 }
 0x39f   :  { %v1083_v46 = vsel %vm1016_vm11, %v4602_v45, 0.0  ;;  %vm1225_vm11 = vcmp.gt.f32.partialorder %v1203_v41, 0.0 }
 0x3a0   :  { %1084 = vadd.xlane.f32.xlu0 %v1083_v46  ;;  %v1241_v8 = vsel %vm1225_vm11, %v1203_v41, %v1233_v3  ;;  %v1961_v46 = vld [vmem:[#allocation13 + $0x10] sm:$0xff] }
 0x3a1   :  { %v3804_v48 = vpack.c.bf16 %v1962_v47, %v1961_v46  ;;  %v3427_v47 = vld [vmem:[%s4914_s12] ss:$0 sm:$0xff] }
 0x3eb   :  { %v1067_v49 = vpop.xlane.xlu0 %1066 }
 0x3ec   :  { %3865 = vrcp.f32 %v1067_v49 }
 0x3ed   :  { %v1070_v51 = vpop.xlane.xlu1 %1069 }
 0x3ee   :  { %3867 = vrcp.f32 %v1070_v51 }
 0x3f1   :  { %v1073_v52 = vpop.xlane.xlu0 %1072 }
 0x3f2   :  { %3869 = vrcp.f32 %v1073_v52 }
 0x3f5   :  { %v1079_v50 = vpop.xlane.xlu0 %1078 }
 0x3f6   :  { %v3866_v55 = vpop.eup %3865  ;;  %3871 = vrcp.f32 %v1079_v50 }
 0x3f7   :  { %v1090_v56 = vmul.f32 %v3866_v55, %v4564_v16  ;;  %v1854_v55 = vld [vmem:[#allocation11] sm:$0xff] }
 0x3f8   :  { %v3868_v60 = vpop.eup %3867 }
 0x3f9   :  { %v1092_v61 = vmul.f32 %v3868_v60, %v4568_v54  ;;  %v1076_v63 = vpop.xlane.xlu1 %1075  ;;  %3625 = vmatmul.mubr.msk.f32.vlgmr.msra.gmra.mrb[10].mxu0 %vm1245_vm10, %v1090_v56 }
 0x3fa   :  { %3873 = vrcp.f32 %v1076_v63  ;;  %3633 = vmatpush3.msra.mxu0 %v1239_v57  ;;  %3634 = vmatprep.mubr.msk.f32.mxu0 %vm4155_vm0, %v4156_v1  ;;  %v1856_v57 = vld [vmem:[#allocation11 + $0x10] sm:$0xff] }
 0x3fb   :  { %v3329_v4 = vrot.slane %v1092_v61, 7  ;;  %3630 = vmatmul.mubr.msk.f32.vlgmr.msra.gmra.mrb[10].mxu1 %vm1245_vm10, %v1092_v61  ;;  %3642 = vmatprep.subr.mxu0 %v4156_v1  ;;  %v1857_v61 = vld [vmem:[#allocation11 + $0x18] sm:$0xff] }
 0x3fc   :  { %v3870_v16 = vpop.eup %3869  ;;  %3638 = vmatpush3.msra.mxu1 %v1240_v18  ;;  %3639 = vmatprep.mubr.msk.f32.mxu1 %vm4155_vm0, %v4156_v1  ;;  %v3798_v63 = vpack.c.bf16 %v1857_v61, %v1856_v57 }
 0x3fd   :  { %v1094_v54 = vmul.f32 %v3870_v16, %v4572_v59  ;;  %v1082_v5 = vpop.xlane.xlu1 %1081  ;;  %3647 = vmatprep.subr.mxu1 %v4156_v1  ;;  %v3330_v12 = vsel %vm278_vm2, %v3329_v4, %v1090_v56  ;;  %v1234_v59 = vmul.f32 0.01, %v4596_v39  ;;  %v1855_v56 = vld [vmem:[#allocation11 + $0x8] sm:$0xff] }
 0x3fe   :  { %3875 = vrcp.f32 %v1082_v5  ;;  %v3795_v60 = vpack.c.bf16 %v1855_v56, %v1854_v55 }
 0x3ff   :  { %v3331_v13 = vrot.slane %v1094_v54, 6  ;;  %3635 = vmatmul.mubr.msk.f32.vlgmr.msra.gmra.mrb[12].mxu0 %vm1245_vm10, %v1094_v54 }
 0x400   :  { %v3872_v14 = vpop.eup %3871  ;;  %3643 = vmatpush3.msra.mxu0 %v1241_v8  ;;  %3644 = vmatprep.mubr.msk.f32.mxu0 %vm4155_vm0, %v4156_v1 }
 0x401   :  { %v1098_v15 = vmul.f32 %v3872_v14, %v4576_v62  ;;  %3652 = vmatprep.subr.mxu0 %v4156_v1  ;;  %v3332_v23 = vsel %vm280_vm3, %v3331_v13, %v3330_v12  ;;  %v1242_v62 = vsel %vm1226_vm13, %v4596_v39, %v1234_v59 }
 0x403   :  { %3645 = vmatmul.mubr.msk.f32.vlgmr.msra.gmra.mrb[14].mxu0 %vm1245_vm10, %v1098_v15  ;;  %v3335_v34 = vrot.slane %v1098_v15, 4 }
 0x404   :  { %v3874_v28 = vpop.eup %3873  ;;  %3653 = vmatpush3.msra.mxu0 %v1243_v22  ;;  %3654 = vmatprep.mubr.msk.f32.mxu0 %vm4155_vm0, %v4156_v1 }
 0x405   :  { %v1096_v30 = vmul.f32 %v3874_v28, %v4580_v2  ;;  %3794 = vmatprep.subr.bf16.mxu0 %v4154_v0 }
 0x407   :  { %v3333_v32 = vrot.slane %v1096_v30, 5  ;;  %3640 = vmatmul.mubr.msk.f32.vlgmr.msra.gmra.mrb[12].mxu1 %vm1245_vm10, %v1096_v30 }
 0x408   :  { %v3876_v33 = vpop.eup %3875  ;;  %v1088_v36 = vpop.xlane.xlu1 %1087  ;;  %3648 = vmatpush3.msra.mxu1 %v1242_v62  ;;  %3649 = vmatprep.mubr.msk.f32.mxu1 %vm4155_vm0, %v4156_v1 }
 0x409   :  { %v1100_v2 = vmul.f32 %v3876_v33, %v4584_v6  ;;  %3877 = vrcp.f32 %v1088_v36  ;;  %3657 = vmatprep.subr.mxu1 %v4156_v1  ;;  %v3334_v39 = vsel %vm282_vm4, %v3333_v32, %v3332_v23 }
 0x40a   :  { %v3336_v40 = vsel %vm284_vm5, %v3335_v34, %v3334_v39 }
 0x40b   :  { %3650 = vmatmul.mubr.msk.f32.vlgmr.msra.gmra.mrb[14].mxu1 %vm1245_vm10, %v1100_v2  ;;  %v3337_v41 = vrot.slane %v1100_v2, 3 }
 0x40c   :  { %3658 = vmatpush3.msra.mxu1 %v1244_v37  ;;  %3659 = vmatprep.mubr.msk.f32.mxu1 %vm4155_vm0, %v4156_v1 }
 0x40d   :  { %3800 = vmatprep.subr.bf16.mxu1 %v4154_v0  ;;  %v3338_v6 = vsel %vm286_vm6, %v3337_v41, %v3336_v40 }
 0x413   :  { %v3878_v26 = vpop.eup %3877 }
 0x414   :  { %v1104_v27 = vmul.f32 %v3878_v26, %v4588_v9 }
 0x416   :  { %3660 = vmatmul.mubr.msk.f32.vlgmr.msra.gmra.mrb[16].mxu1 %vm1245_vm10, %v1104_v27  ;;  %v3341_v38 = vrot.slane %v1104_v27, 1 }
 0x417   :  { %3802 = vmatpush3.bf16.msra.mxu1 %v3801_v44  ;;  %3681 = vmatprep.mubr.msk.f32.mxu1 %vm4155_vm0, %v4156_v1 }
 0x418   :  { %3803 = vmatprep.subr.bf16.mxu1 %v4154_v0 }
 0x41b   :  { %3805 = vmatpush3.bf16.msra.mxu1 %v3804_v48 }
 0x41c   :  { %3704 = vmatprep.subr.mxu1 %v4156_v1 }
 0x41e   :  { %3682 = vmatmul.mubr.msk.f32.vlgmr.msra.gmra.mrb[18].mxu1 %vm149_vm1, %v4473_v58 }
 0x41f   :  { %3706 = vmatprep.mubr.msk.f32.mxu1 %vm4155_vm0, %v4156_v1 }
 0x42d   :  { %v1085_v9 = vpop.xlane.xlu0 %1084 }
 0x42e   :  { %3879 = vrcp.f32 %v1085_v9 }
 0x438   :  { %v3880_v49 = vpop.eup %3879 }
 0x439   :  { %v1102_v51 = vmul.f32 %v3880_v49, %v4602_v45 }
 0x43b   :  { %3655 = vmatmul.mubr.msk.f32.vlgmr.msra.gmra.mrb[16].mxu0 %vm1245_vm10, %v1102_v51  ;;  %v3339_v52 = vrot.slane %v1102_v51, 2 }
 0x43c   :  { %3670 = vmatprep.mubr.msk.f32.mxu0 %vm4155_vm0, %v4156_v1  ;;  %3796 = vmatpush3.bf16.msra.mxu0 %v3795_v60 }
 0x43d   :  { %v3340_v50 = vsel %vm288_vm7, %v3339_v52, %v3338_v6  ;;  %3797 = vmatprep.subr.bf16.mxu0 %v4154_v0 }
 0x43e   :  { %v4663_v53 = vsel %vm290_vm8, %v3341_v38, %v3340_v50 }
 0x440   :  { %3799 = vmatpush3.bf16.msra.mxu0 %v3798_v63 }
 0x4cc   :  { %v1315_v45 = vpop.f32.mrb[10].mxu0 }
 0x4cd   :  { %v3626_v3 = vpop.f32.mrb[11].mxu0  ;;  %v1838_v4 = vmul.f32 0.01, %v1315_v45  ;;  %vm1830_vm9 = vcmp.gt.f32.partialorder %v1315_v45, 0.0 }
 0x4ce   :  { %v1388_v18 = vpop.f32.mrb[10].mxu1 }
 0x4cf   :  { %vm1831_vm15 = vcmp.gt.f32.partialorder %v1388_v18, 0.0  ;;  %v1839_v16 = vmul.f32 0.01, %v1388_v18  ;;  %v3631_v54 = vpop.f32.mrb[11].mxu1  ;;  %v1846_v12 = vsel %vm1830_vm9, %v1315_v45, %v1838_v4  ;;  %v3925_v45 = vld [vmem:[#allocation2] sm:$0xff] }
 0x4d1   :  { %v1847_v5 = vsel %vm1831_vm15, %v1388_v18, %v1839_v16 }
 0x4d2   :  { %v1873_v8 = vrot.slane %v1847_v5, 7  ;;  %v1461_v10 = vpop.f32.mrb[12].mxu0 }
 0x4d3   :  { %vm1832_vm11 = vcmp.gt.f32.partialorder %v1461_v10, 0.0  ;;  %v1840_v13 = vmul.f32 0.01, %v1461_v10  ;;  %v3636_v14 = vpop.f32.mrb[13].mxu0 }
 0x4d4   :  { %v1874_v15 = vsel %vm278_vm2, %v1873_v8, %v1846_v12 }
 0x4d5   :  { %v1848_v59 = vsel %vm1832_vm11, %v1461_v10, %v1840_v13 }
 0x4d6   :  { %v1875_v22 = vrot.slane %v1848_v59, 6  ;;  %v1607_v23 = vpop.f32.mrb[14].mxu0 }
 0x4d7   :  { %v3646_v28 = vpop.f32.mrb[15].mxu0  ;;  %v1842_v62 = vmul.f32 0.01, %v1607_v23  ;;  %vm1834_vm12 = vcmp.gt.f32.partialorder %v1607_v23, 0.0 }
 0x4d8   :  { %v1876_v30 = vsel %vm280_vm3, %v1875_v22, %v1874_v15  ;;  %v3430_v22 = vld [vmem:[#allocation10 + $0x1] ss:$0 sm:$0xff] }
 0x4d9   :  { %v1850_v34 = vsel %vm1834_vm12, %v1607_v23, %v1842_v62 }
 0x4da   :  { %v1534_v31 = vpop.f32.mrb[12].mxu1  ;;  %v1879_v39 = vrot.slane %v1850_v34, 4 }
 0x4db   :  { %vm1833_vm13 = vcmp.gt.f32.partialorder %v1534_v31, 0.0  ;;  %v1841_v32 = vmul.f32 0.01, %v1534_v31  ;;  %v3641_v33 = vpop.f32.mrb[13].mxu1 }
 0x4dd   :  { %v1849_v36 = vsel %vm1833_vm13, %v1534_v31, %v1841_v32 }
 0x4de   :  { %v1877_v2 = vrot.slane %v1849_v36, 5  ;;  %v1680_v37 = vpop.f32.mrb[14].mxu1 }
 0x4df   :  { %vm1835_vm14 = vcmp.gt.f32.partialorder %v1680_v37, 0.0  ;;  %v1843_v40 = vmul.f32 0.01, %v1680_v37  ;;  %v3651_v41 = vpop.f32.mrb[15].mxu1 }
 0x4e0   :  { %v1878_v6 = vsel %vm282_vm4, %v1877_v2, %v1876_v30 }
 0x4e1   :  { %v1851_v42 = vsel %vm1835_vm14, %v1680_v37, %v1843_v40  ;;  %v1880_v43 = vsel %vm284_vm5, %v1879_v39, %v1878_v6  ;;  %v3432_v6 = vld [vmem:[%s4908_s6 + $0x1] ss:$0 sm:$0xff]  ;;  %vm2252_vm14 = vcmask 58369  }
 0x4e2   :  { %v1881_v26 = vrot.slane %v1851_v42, 3 }
 0x4e4   :  { %v1882_v44 = vsel %vm286_vm6, %v1881_v26, %v1880_v43 }
 0x4e9   :  { %v1826_v27 = vpop.f32.mrb[16].mxu1 }
 0x4ea   :  { %v3661_v46 = vpop.f32.mrb[17].mxu1  ;;  %v1845_v51 = vmul.f32 0.01, %v1826_v27  ;;  %vm1837_vm15 = vcmp.gt.f32.partialorder %v1826_v27, 0.0 }
 0x4ec   :  { %v1853_v55 = vsel %vm1837_vm15, %v1826_v27, %v1845_v51 }
 0x4ed   :  { %v1885_v60 = vrot.slane %v1853_v55, 1 }
 0x4f1   :  { %v2039_v48 = vpop.f32.mrb[18].mxu1 }
 0x4f2   :  { %v2040_v9 = vadd.f32 %v3427_v47, %v2039_v48  ;;  %v3683_v49 = vpop.f32.mrb[19].mxu1 }
 0x4f4   :  { %2051 = vrot.lane.b32.xlu0 %v2040_v9, %s4159_s3 }
 0x4f8   :  { %2067 = vrot.lane.b32.xlu0 %v4473_v58, %s4160_s10  ;;  %v3425_v58 = vld [vmem:[%s4913_s11] ss:$0 sm:$0xff] }
 0x50e   :  { %v1753_v52 = vpop.f32.mrb[16].mxu0 }
 0x50f   :  { %vm1836_vm9 = vcmp.gt.f32.partialorder %v1753_v52, 0.0  ;;  %v1844_v38 = vmul.f32 0.01, %v1753_v52  ;;  %v3656_v50 = vpop.f32.mrb[17].mxu0 }
 0x511   :  { %v1852_v56 = vsel %vm1836_vm9, %v1753_v52, %v1844_v38 }
 0x512   :  { %v1883_v57 = vrot.slane %v1852_v56, 2  ;;  %v3433_v56 = vld [vmem:[%s4909_s7 + $0x20] sm:$0xff] }
 0x514   :  { %v1884_v61 = vsel %vm288_vm7, %v1883_v57, %v1882_v44  ;;  %v3434_v57 = vld [vmem:[%s4909_s7 + $0x28] sm:$0xff] }
 0x515   :  { %v1886_v63 = vsel %vm290_vm8, %v1885_v60, %v1884_v61  ;;  %v3435_v60 = vld [vmem:[%s4909_s7 + $0x30] sm:$0xff]  ;;  %v3806_v61 = vpack.c.bf16 %v3434_v57, %v3433_v56 }
 0x516   :  { %3671 = vmatmul.mubr.msk.f32.vlgmr.msra.gmra.mrb[18].mxu0 %vm149_vm1, %v1886_v63 }
 0x517   :  { %3692 = vmatprep.mubr.msk.f32.mxu0 %vm149_vm1, %v3925_v45  ;;  %3807 = vmatprep.subr.bf16.mxu0 %v3806_v61  ;;  %v3926_v45 = vld [vmem:[#allocation2 + $0x8] sm:$0xff] }
 0x518   :  { %3809 = vmatpush3.bf16.msra.mxu0 %v3806_v61 }
 0x566   :  { %v2052_v12 = vpop.permute.xlu0 %2051 }
 0x56a   :  { %v2068_v28 = vpop.permute.xlu0 %2067 }
 0x5e9   :  { %v1955_v3 = vpop.f32.mrb[18].mxu0 }
 0x5ea   :  { %v1956_v18 = vadd.f32 %v3425_v58, %v1955_v3  ;;  %v3672_v4 = vpop.f32.mrb[19].mxu0  ;;  %v3927_v58 = vld [vmem:[#allocation2 + $0x10] sm:$0xff]  ;;  %v3928_v3 = vld [vmem:[#allocation2 + $0x18] sm:$0xff] }
 0x5eb   :  { %v3930_v4 = vld [vmem:[#allocation2 + $0x28] sm:$0xff] }
 0x5ec   :  { %v2043_v16 = vadd.f32 %v2040_v9, %v1956_v18 }
 0x5ee   :  { %v3429_v54 = vmul.f32 -1.442695, %v2043_v16  ;;  %v3931_v16 = vld [vmem:[#allocation2 + $0x30] sm:$0xff] }
 0x5f0   :  { %3881 = vpow2.f32 %v3429_v54  ;;  %v3932_v54 = vld [vmem:[#allocation2 + $0x38] sm:$0xff] }
 0x5fa   :  { %v3882_v5 = vpop.eup %3881 }
 0x5fb   :  { %v2047_v8 = vadd.f32 1.0, %v3882_v5 }
 0x5fd   :  { %3883 = vrcp.f32 %v2047_v8 }
 0x607   :  { %v3884_v10 = vpop.eup %3883 }
 0x608   :  { %v2054_v13 = vmul.f32 %v3884_v10, %v2052_v12  ;;  %v2061_v23 = vsub.f32 1.0, %v3884_v10  ;;  %v2070_v62 = vmul.f32 %v3884_v10, %v2068_v28 }
 0x60a   :  { %2056 = vrot.lane.b32.xlu1 %v2054_v13, %s4159_s3 }
 0x67c   :  { %v2057_v14 = vpop.permute.xlu1 %2056 }
 0x67d   :  { %v2059_v15 = vadd.f32 %v2057_v14, %v1956_v18  ;;  %v3929_v18 = vld [vmem:[#allocation2 + $0x20] sm:$0xff] }
 0x67f   :  { %3885 = vtanh.f32 %v2059_v15 }
 0x689   :  { %v3886_v59 = vpop.eup %3885 }
 0x68a   :  { %2063 = vrot.lane.b32.xlu1 %v3886_v59, %s4161_s22 }
 0x68e   :  { %2086 = vrot.lane.b32.xlu1 %v3430_v22, %s4160_s10 }
 0x6fc   :  { %v2064_v30 = vpop.permute.xlu1 %2063 }
 0x6fd   :  { %v2066_v31 = vmul.f32 %v2064_v30, %v2061_v23 }
 0x6ff   :  { %v2071_v32 = vadd.f32 %v2070_v62, %v2066_v31 }
 0x700   :  { %v2087_v2 = vpop.permute.xlu1 %2086 }
 0x701   :  { %vm2072_vm11 = vcmp.gt.f32.partialorder %v2071_v32, 0.0  ;;  %v2073_v33 = vmul.f32 0.01, %v2071_v32 }
 0x703   :  { %v4687_v34 = vsel %vm2072_vm11, %v2071_v32, %v2073_v33 }
 0x704   :  { %vm2076_vm12 = vcmp.gt.f32.partialorder %v4687_v34, 0.0  ;;  %v2077_v36 = vmul.f32 0.01, %v4687_v34 }
 0x706   :  { %v2078_v37 = vsel %vm2076_vm12, %v4687_v34, %v2077_v36 }
 0x707   :  { %v2089_v39 = vmul.f32 %v2087_v2, %v2078_v37 }
 0x709   :  { %2091 = vrot.lane.b32.xlu0 %v2089_v39, %s4161_s22 }
 0x77b   :  { %v2092_v40 = vpop.permute.xlu0 %2091 }
 0x77c   :  { %v2094_v41 = vsel %vm149_vm1, %v2092_v40, 0.0 }
 0x77d   :  { %2095 = vadd.xlane.f32.xlu1 %v2094_v41 }
 0x80a   :  { %v2096_v42 = vpop.xlane.xlu1 %2095 }
 0x80b   :  { %v2105_v43 = vadd.f32 %v3432_v6, %v2096_v42 }
 0x80d   :  { %v2114_v26 = vrot.slane %v2105_v43, %v4484_v11  ;;  %v2107_v46 = vcombine.high %v2105_v43, %v2105_v43 }
 0x80f   :  { %v2122_v44 = vcombine.high %v2114_v26, %v2114_v26  ;;  %v2130_v27 = vrot.slane %v2114_v26, %v4484_v11  ;;  %v2121_v48 = vrot.slane %v2107_v46, %v4484_v11 }
 0x811   :  { %2157 = vperm.xlu0 %3847, %v2130_v27   ;;  %v2144_v47 = vrot.slane %v2122_v44, %v4484_v11  ;;  %v2152_v9 = vcombine.high %v2130_v27, %v2130_v27  ;;  %v2137_v49 = vrot.slane %v2121_v48, %v4484_v11  ;;  %v2123_v52 = vcombine.high %v2121_v48, %v2121_v48 }
 0x813   :  { %v2154_v51 = vcombine.high %v2144_v47, %v2144_v47  ;;  %v2151_v38 = vrot.slane %v2123_v52, %v4484_v11  ;;  %v2153_v50 = vcombine.high %v2137_v49, %v2137_v49  ;;  %v3436_v11 = vld [vmem:[%s4909_s7 + $0x38] sm:$0xff] }
 0x814   :  { %v3810_v63 = vpack.c.bf16 %v3436_v11, %v3435_v60 }
 0x815   :  { %2165 = vperm.xlu0 %3847, %v2144_v47   ;;  %v2155_v55 = vcombine.high %v2151_v38, %v2151_v38 }
 0x816   :  { %3811 = vmatprep.subr.bf16.mxu0 %v3810_v63 }
 0x817   :  { %3813 = vmatpush3.bf16.msra.mxu0 %v3810_v63 }
 0x818   :  { %3729 = vmatprep.subr.mxu0 %v4156_v1 }
 0x819   :  { %2173 = vperm.xlu0 %3847, %v2152_v9  }
 0x81a   :  { %3693 = vmatmul.mubr.msk.f32.vlgmr.msra.gmra.mrb[20].mxu0 %vm149_vm1, %v3926_v45 }
 0x81b   :  { %3695 = vmatprep.mubr.msk.f32.mxu0 %vm149_vm1, %v3927_v58 }
 0x81d   :  { %2189 = vperm.xlu0 %3847, %v2137_v49  }
 0x81e   :  { %3696 = vmatmul.mubr.msk.f32.gmra.mrb[22].mxu0 %vm149_vm1, %v3928_v3 }
 0x81f   :  { %3698 = vmatprep.mubr.msk.f32.mxu0 %vm149_vm1, %v3929_v18 }
 0x821   :  { %2181 = vperm.xlu0 %3847, %v2154_v51  }
 0x822   :  { %3699 = vmatmul.mubr.msk.f32.gmra.mrb[24].mxu0 %vm149_vm1, %v3930_v4 }
 0x823   :  { %3701 = vmatprep.mubr.msk.f32.mxu0 %vm149_vm1, %v3931_v16 }
 0x825   :  { %2197 = vperm.xlu0 %3847, %v2151_v38  }
 0x826   :  { %3702 = vmatmul.mubr.msk.f32.gmra.mrb[26].mxu0 %vm149_vm1, %v3932_v54 }
 0x827   :  { %3731 = vmatprep.mubr.msk.f32.mxu0 %vm4155_vm0, %v4156_v1 }
 0x829   :  { %2205 = vperm.xlu0 %3847, %v2153_v50  }
 0x82d   :  { %2213 = vperm.xlu0 %3847, %v2155_v55  }
 0x890   :  { %v2158_v5 = vpop.permute.xlu0 %2157 }
 0x891   :  { %v2163_v8 = vrot.slane %v2158_v5, %v4531_v25 }
 0x893   :  { %v2220_v10 = vadd.f32 %v2163_v8, %v4521_v17 }
 0x894   :  { %v2166_v12 = vpop.permute.xlu0 %2165 }
 0x895   :  { %v2171_v13 = vrot.slane %v2166_v12, %v4531_v25  ;;  %vm2228_vm13 = vcmp.gt.f32.partialorder %v2220_v10, 0.0  ;;  %v2236_v14 = vmul.f32 0.01, %v2220_v10 }
 0x897   :  { %v2221_v15 = vadd.f32 %v2171_v13, %v4479_v7  ;;  %v2244_v59 = vsel %vm2228_vm13, %v2220_v10, %v2236_v14 }
 0x898   :  { %v2174_v22 = vpop.permute.xlu0 %2173  ;;  %v2253_v23 = vsel %vm2252_vm14, %v2244_v59, -inf }
 0x899   :  { %v2179_v28 = vrot.slane %v2174_v22, %v4531_v25  ;;  %2254 = vmax.xlane.f32.xlu0 %v2253_v23  ;;  %vm2229_vm15 = vcmp.gt.f32.partialorder %v2221_v15, 0.0  ;;  %v2237_v30 = vmul.f32 0.01, %v2221_v15 }
 0x89b   :  { %v2222_v62 = vadd.f32 %v2179_v28, %v4525_v20  ;;  %v2245_v17 = vsel %vm2229_vm15, %v2221_v15, %v2237_v30 }
 0x89c   :  { %v2190_v31 = vpop.permute.xlu0 %2189  ;;  %v2256_v32 = vsel %vm2252_vm14, %v2245_v17, -inf }
 0x89d   :  { %v2195_v33 = vrot.slane %v2190_v31, %v4531_v25  ;;  %2257 = vmax.xlane.f32.xlu1 %v2256_v32  ;;  %vm2230_vm9 = vcmp.gt.f32.partialorder %v2222_v62, 0.0  ;;  %v2238_v7 = vmul.f32 0.01, %v2222_v62 }
 0x89f   :  { %v2224_v36 = vadd.f32 %v2195_v33, %v4529_v21  ;;  %v2246_v2 = vsel %vm2230_vm9, %v2222_v62, %v2238_v7 }
 0x8a0   :  { %v2182_v37 = vpop.permute.xlu0 %2181  ;;  %v2259_v39 = vsel %vm2252_vm14, %v2246_v2, -inf }
 0x8a1   :  { %v2187_v40 = vrot.slane %v2182_v37, %v4531_v25  ;;  %2260 = vmax.xlane.f32.xlu1 %v2259_v39  ;;  %vm2232_vm11 = vcmp.gt.f32.partialorder %v2224_v36, 0.0  ;;  %v2240_v20 = vmul.f32 0.01, %v2224_v36 }
 0x8a3   :  { %v2223_v41 = vadd.f32 %v2187_v40, %v4523_v19  ;;  %v2248_v6 = vsel %vm2232_vm11, %v2224_v36, %v2240_v20 }
 0x8a4   :  { %v2198_v42 = vpop.permute.xlu0 %2197  ;;  %v2265_v43 = vsel %vm2252_vm14, %v2248_v6, -inf }
 0x8a5   :  { %v2203_v26 = vrot.slane %v2198_v42, %v4531_v25  ;;  %2266 = vmax.xlane.f32.xlu1 %v2265_v43  ;;  %vm2231_vm12 = vcmp.gt.f32.partialorder %v2223_v41, 0.0  ;;  %v2239_v21 = vmul.f32 0.01, %v2223_v41 }
 0x8a7   :  { %v2225_v44 = vadd.f32 %v2203_v26, %v4527_v24  ;;  %v2247_v27 = vsel %vm2231_vm12, %v2223_v41, %v2239_v21  ;;  %v3438_v21 = vld [vmem:[%s4910_s8 + $0x1] ss:$0 sm:$0xff] }
 0x8a8   :  { %v2206_v46 = vpop.permute.xlu0 %2205  ;;  %v2262_v47 = vsel %vm2252_vm14, %v2247_v27, -inf }
 0x8a9   :  { %v2211_v48 = vrot.slane %v2206_v46, %v4531_v25  ;;  %2263 = vmax.xlane.f32.xlu1 %v2262_v47  ;;  %vm2233_vm13 = vcmp.gt.f32.partialorder %v2225_v44, 0.0  ;;  %v2241_v19 = vmul.f32 0.01, %v2225_v44 }
 0x8ab   :  { %v2226_v9 = vadd.f32 %v2211_v48, %v4557_v35  ;;  %v2249_v49 = vsel %vm2233_vm13, %v2225_v44, %v2241_v19 }
 0x8ac   :  { %v2214_v51 = vpop.permute.xlu0 %2213  ;;  %v2268_v52 = vsel %vm2252_vm14, %v2249_v49, -inf }
 0x8ad   :  { %v2219_v38 = vrot.slane %v2214_v51, %v4531_v25  ;;  %2269 = vmax.xlane.f32.xlu1 %v2268_v52  ;;  %vm2234_vm15 = vcmp.gt.f32.partialorder %v2226_v9, 0.0  ;;  %v2242_v24 = vmul.f32 0.01, %v2226_v9 }
 0x8af   :  { %v2227_v50 = vadd.f32 %v2219_v38, %v4552_v29  ;;  %v2250_v55 = vsel %vm2234_vm15, %v2226_v9, %v2242_v24 }
 0x8b0   :  { %v2271_v56 = vsel %vm2252_vm14, %v2250_v55, -inf }
 0x8b1   :  { %2272 = vmax.xlane.f32.xlu1 %v2271_v56  ;;  %vm2235_vm9 = vcmp.gt.f32.partialorder %v2227_v50, 0.0  ;;  %v2243_v57 = vmul.f32 0.01, %v2227_v50 }
 0x8b3   :  { %v2251_v60 = vsel %vm2235_vm9, %v2227_v50, %v2243_v57 }
 0x8b4   :  { %v2274_v35 = vsel %vm2252_vm14, %v2251_v60, -inf }
 0x8b5   :  { %2275 = vmax.xlane.f32.xlu1 %v2274_v35 }
 0x8ed   :  { %v3694_v26 = vpop.f32.mrb[20].mxu0 }
 0x8ee   :  { %v2426_v44 = vadd.f32 %v3694_v26, %v3438_v21 }
 0x8f0   :  { %vm2460_vm12 = vcmp.gt.f32.partialorder %v2426_v44, 0.0 }
 0x926   :  { %v2255_v61 = vpop.xlane.xlu0 %2254 }
 0x927   :  { %v2277_v11 = vsub.f32 %v2244_v59, %v2255_v61 }
 0x929   :  { %v2285_v63 = vmul.f32 1.442695, %v2277_v11 }
 0x92a   :  { %v2258_v45 = vpop.xlane.xlu1 %2257 }
 0x92b   :  { %3887 = vpow2.f32 %v2285_v63  ;;  %v2278_v25 = vsub.f32 %v2245_v17, %v2258_v45 }
 0x92d   :  { %v2287_v58 = vmul.f32 1.442695, %v2278_v25  ;;  %v2468_v25 = vmul.f32 0.01, %v2426_v44 }
 0x92e   :  { %v2261_v3 = vpop.xlane.xlu1 %2260 }
 0x92f   :  { %3889 = vpow2.f32 %v2287_v58  ;;  %v2279_v29 = vsub.f32 %v2246_v2, %v2261_v3 }
 0x931   :  { %v2289_v18 = vmul.f32 1.442695, %v2279_v29 }
 0x932   :  { %v2267_v4 = vpop.xlane.xlu1 %2266 }
 0x933   :  { %3891 = vpow2.f32 %v2289_v18  ;;  %v2281_v16 = vsub.f32 %v2248_v6, %v2267_v4 }
 0x935   :  { %v4749_v54 = vpop.eup %3887  ;;  %v2293_v5 = vmul.f32 1.442695, %v2281_v16  ;;  %v2476_v16 = vsel %vm2460_vm12, %v2426_v44, %v2468_v25 }
 0x936   :  { %v2264_v8 = vpop.xlane.xlu1 %2263  ;;  %v2301_v10 = vsel %vm2252_vm14, %v4749_v54, 0.0 }
 0x937   :  { %3893 = vpow2.f32 %v2293_v5  ;;  %v2280_v12 = vsub.f32 %v2247_v27, %v2264_v8  ;;  %2302 = vadd.xlane.f32.xlu1 %v2301_v10  ;;  %v2420_v27 = vpop.f32.mrb[21].mxu0 }
 0x938   :  { %v2421_v46 = vadd.f32 %v3438_v21, %v2420_v27  ;;  %v3697_v47 = vpop.f32.mrb[22].mxu0 }
 0x939   :  { %v4753_v13 = vpop.eup %3889  ;;  %v2291_v14 = vmul.f32 1.442695, %v2280_v12  ;;  %v2436_v48 = vadd.f32 %v3697_v47, %v3438_v21  ;;  %v2430_v19 = vpop.f32.mrb[23].mxu0 }
 0x93a   :  { %v2270_v15 = vpop.xlane.xlu1 %2269  ;;  %v2304_v59 = vsel %vm2252_vm14, %v4753_v13, 0.0  ;;  %vm2459_vm11 = vcmp.gt.f32.partialorder %v2421_v46, 0.0  ;;  %v2467_v9 = vmul.f32 0.01, %v2421_v46  ;;  %v3700_v51 = vpop.f32.mrb[24].mxu0 }
 0x93b   :  { %3895 = vpow2.f32 %v2291_v14  ;;  %v2282_v22 = vsub.f32 %v2249_v49, %v2270_v15  ;;  %2305 = vadd.xlane.f32.xlu0 %v2304_v59  ;;  %v2431_v49 = vadd.f32 %v3438_v21, %v2430_v19  ;;  %v2446_v52 = vadd.f32 %v3700_v51, %v3438_v21  ;;  %v2440_v50 = vpop.f32.mrb[25].mxu0 }
 0x93c   :  { %v2475_v38 = vsel %vm2459_vm11, %v2421_v46, %v2467_v9  ;;  %v3703_v57 = vpop.f32.mrb[26].mxu0  ;;  %v2470_v12 = vmul.f32 0.01, %v2436_v48  ;;  %vm2462_vm15 = vcmp.gt.f32.partialorder %v2436_v48, 0.0 }
 0x93d   :  { %v4757_v23 = vpop.eup %3891  ;;  %v2295_v28 = vmul.f32 1.442695, %v2282_v22  ;;  %3705 = vmatpush3.msra.mxu1 %v2475_v38  ;;  %v2472_v24 = vmul.f32 0.01, %v2446_v52  ;;  %v2450_v35 = vpop.f32.mrb[27].mxu0  ;;  %vm2461_vm13 = vcmp.gt.f32.partialorder %v2431_v49, 0.0 }
 0x93e   :  { %v2273_v30 = vpop.xlane.xlu1 %2272  ;;  %v2307_v62 = vsel %vm2252_vm14, %v4757_v23, 0.0  ;;  %3709 = vmatprep.subr.mxu1 %v4156_v1  ;;  %v4792_v61 = vadd.f32 %v3438_v21, %v2450_v35  ;;  %v2469_v18 = vmul.f32 0.01, %v2431_v49 }
 0x93f   :  { %3897 = vpow2.f32 %v2295_v28  ;;  %v2283_v17 = vsub.f32 %v2250_v55, %v2273_v30  ;;  %2308 = vadd.xlane.f32.xlu1 %v2307_v62  ;;  %v4787_v55 = vadd.f32 %v3438_v21, %v2440_v50  ;;  %v2478_v62 = vsel %vm2462_vm15, %v2436_v48, %v2470_v12  ;;  %v3208_v50 = vld [vmem:[#allocation13 + $0x28] sm:$0xff] }
 0x940   :  { %v2477_v14 = vsel %vm2461_vm13, %v2431_v49, %v2469_v18  ;;  %v2473_v26 = vmul.f32 0.01, %v4792_v61 }
 0x941   :  { %v4761_v31 = vpop.eup %3893  ;;  %v2297_v32 = vmul.f32 1.442695, %v2283_v17  ;;  %vm2463_vm9 = vcmp.gt.f32.partialorder %v4787_v55, 0.0 }
 0x942   :  { %v2276_v33 = vpop.xlane.xlu1 %2275  ;;  %v2313_v7 = vsel %vm2252_vm14, %v4761_v31, 0.0 }
 0x943   :  { %3899 = vpow2.f32 %v2297_v32  ;;  %v2284_v36 = vsub.f32 %v2251_v60, %v2276_v33  ;;  %2314 = vadd.xlane.f32.xlu1 %v2313_v7  ;;  %v4790_v60 = vadd.f32 %v3703_v57, %v3438_v21 }
 0x945   :  { %v4765_v2 = vpop.eup %3895  ;;  %v2299_v37 = vmul.f32 1.442695, %v2284_v36  ;;  %vm2466_vm11 = vcmp.gt.f32.partialorder %v4790_v60, 0.0 }
 0x946   :  { %v2310_v39 = vsel %vm2252_vm14, %v4765_v2, 0.0 }
 0x947   :  { %3901 = vpow2.f32 %v2299_v37  ;;  %2311 = vadd.xlane.f32.xlu0 %v2310_v39 }
 0x949   :  { %v4769_v40 = vpop.eup %3897 }
 0x94a   :  { %v2316_v20 = vsel %vm2252_vm14, %v4769_v40, 0.0 }
 0x94b   :  { %2317 = vadd.xlane.f32.xlu0 %v2316_v20  ;;  %v2474_v20 = vmul.f32 0.01, %v4790_v60 }
 0x94d   :  { %v4773_v41 = vpop.eup %3899  ;;  %v2482_v46 = vsel %vm2466_vm11, %v4790_v60, %v2474_v20 }
 0x94e   :  { %v2319_v6 = vsel %vm2252_vm14, %v4773_v41, 0.0 }
 0x94f   :  { %2320 = vadd.xlane.f32.xlu1 %v2319_v6 }
 0x951   :  { %v4777_v42 = vpop.eup %3901 }
 0x952   :  { %v2322_v43 = vsel %vm2252_vm14, %v4777_v42, 0.0  ;;  %vm2464_vm14 = vcmp.gt.f32.partialorder %v2446_v52, 0.0 }
 0x953   :  { %2323 = vadd.xlane.f32.xlu0 %v2322_v43  ;;  %v2480_v56 = vsel %vm2464_vm14, %v2446_v52, %v2472_v24  ;;  %vm2465_vm14 = vcmp.gt.f32.partialorder %v4792_v61, 0.0  ;;  %v3207_v24 = vld [vmem:[#allocation13 + $0x20] sm:$0xff] }
 0x954   :  { %3730 = vmatpush3.msra.mxu0 %v2480_v56  ;;  %v2481_v9 = vsel %vm2465_vm14, %v4792_v61, %v2473_v26  ;;  %v3821_v60 = vpack.c.bf16 %v3208_v50, %v3207_v24  ;;  %v3209_v61 = vld [vmem:[#allocation13 + $0x30] sm:$0xff] }
 0x955   :  { %3739 = vmatprep.subr.mxu0 %v4156_v1 }
 0x960   :  { %3220 = vrot.lane.b32.xlu1 %v4687_v34, %s4161_s22 }
 0x9c4   :  { %v2303_v11 = vpop.xlane.xlu1 %2302 }
 0x9c5   :  { %3903 = vrcp.f32 %v2303_v11  ;;  %v3210_v11 = vld [vmem:[#allocation13 + $0x38] sm:$0xff] }
 0x9c6   :  { %v3824_v25 = vpack.c.bf16 %v3210_v11, %v3209_v61 }
 0x9c8   :  { %v2306_v63 = vpop.xlane.xlu0 %2305 }
 0x9c9   :  { %3905 = vrcp.f32 %v2306_v63 }
 0x9cc   :  { %v2309_v45 = vpop.xlane.xlu1 %2308 }
 0x9cd   :  { %3907 = vrcp.f32 %v2309_v45 }
 0x9cf   :  { %v3904_v58 = vpop.eup %3903 }
 0x9d0   :  { %v2326_v3 = vmul.f32 %v3904_v58, %v4749_v54  ;;  %v2315_v29 = vpop.xlane.xlu1 %2314  ;;  %v3100_v58 = vld [vmem:[#allocation11 + $0x20] sm:$0xff] }
 0x9d1   :  { %3909 = vrcp.f32 %v2315_v29  ;;  %v3102_v29 = vld [vmem:[#allocation11 + $0x30] sm:$0xff] }
 0x9d2   :  { %v2484_v4 = vrot.slane %v2326_v3, 1  ;;  %v3101_v3 = vld [vmem:[#allocation11 + $0x28] sm:$0xff] }
 0x9d3   :  { %v3906_v5 = vpop.eup %3905  ;;  %v3815_v18 = vpack.c.bf16 %v3101_v3, %v3100_v58 }
 0x9d4   :  { %v2328_v8 = vmul.f32 %v3906_v5, %v4753_v13  ;;  %v2312_v10 = vpop.xlane.xlu0 %2311  ;;  %3707 = vmatmul.mubr.msk.f32.vlgmr.msra.gmra.mrb[20].mxu1 %vm1245_vm10, %v2484_v4 }
 0x9d5   :  { %3911 = vrcp.f32 %v2312_v10  ;;  %3710 = vmatpush3.msra.mxu1 %v2476_v16  ;;  %3711 = vmatprep.mubr.msk.f32.mxu1 %vm4155_vm0, %v4156_v1 }
 0x9d6   :  { %3714 = vmatprep.subr.mxu1 %v4156_v1  ;;  %v2558_v54 = vrot.slane %v2328_v8, 1  ;;  %v3344_v15 = vsel %vm278_vm2, %v2328_v8, %v2484_v4  ;;  %v3103_v4 = vld [vmem:[#allocation11 + $0x38] sm:$0xff] }
 0x9d7   :  { %v3908_v59 = vpop.eup %3907  ;;  %v3818_v16 = vpack.c.bf16 %v3103_v4, %v3102_v29 }
 0x9d8   :  { %v2330_v22 = vmul.f32 %v3908_v59, %v4757_v23  ;;  %v2318_v13 = vpop.xlane.xlu0 %2317  ;;  %3712 = vmatmul.mubr.msk.f32.vlgmr.msra.gmra.mrb[22].mxu1 %vm1245_vm10, %v2558_v54  ;;  %v2471_v23 = vmul.f32 0.01, %v4787_v55 }
 0x9d9   :  { %3913 = vrcp.f32 %v2318_v13  ;;  %3715 = vmatpush3.msra.mxu1 %v2477_v14  ;;  %3716 = vmatprep.mubr.msk.f32.mxu1 %vm4155_vm0, %v4156_v1 }
 0x9da   :  { %v3345_v28 = vrot.slane %v2330_v22, 7  ;;  %3719 = vmatprep.subr.mxu1 %v4156_v1  ;;  %v2632_v30 = vrot.slane %v2330_v22, 1  ;;  %v2479_v6 = vsel %vm2463_vm9, %v4787_v55, %v2471_v23 }
 0x9db   :  { %v3910_v17 = vpop.eup %3909 }
 0x9dc   :  { %v2321_v32 = vpop.xlane.xlu1 %2320  ;;  %3717 = vmatmul.mubr.msk.f32.vlgmr.msra.gmra.mrb[24].mxu1 %vm1245_vm10, %v2632_v30  ;;  %v3346_v33 = vsel %vm280_vm3, %v3345_v28, %v3344_v15  ;;  %v2334_v36 = vmul.f32 %v3910_v17, %v4761_v31 }
 0x9dd   :  { %3915 = vrcp.f32 %v2321_v32  ;;  %3720 = vmatpush3.msra.mxu1 %v2478_v62  ;;  %3721 = vmatprep.mubr.msk.f32.mxu1 %vm4155_vm0, %v4156_v1 }
 0x9de   :  { %3724 = vmatprep.subr.mxu1 %v4156_v1  ;;  %v3349_v27 = vrot.slane %v2334_v36, 5  ;;  %v2780_v19 = vrot.slane %v2334_v36, 1 }
 0x9df   :  { %v3912_v7 = vpop.eup %3911 }
 0x9e0   :  { %v2332_v37 = vmul.f32 %v3912_v7, %v4765_v2  ;;  %v2324_v39 = vpop.xlane.xlu0 %2323 }
 0x9e1   :  { %3917 = vrcp.f32 %v2324_v39 }
 0x9e2   :  { %v3347_v43 = vrot.slane %v2332_v37, 6  ;;  %v2706_v21 = vrot.slane %v2332_v37, 1 }
 0x9e3   :  { %v3914_v44 = vpop.eup %3913 }
 0x9e4   :  { %v2336_v31 = vmul.f32 %v3914_v44, %v4769_v40  ;;  %3722 = vmatmul.mubr.msk.f32.vlgmr.msra.gmra.mrb[26].mxu1 %vm1245_vm10, %v2706_v21  ;;  %v3348_v2 = vsel %vm282_vm4, %v3347_v43, %v3346_v33 }
 0x9e5   :  { %3725 = vmatpush3.msra.mxu1 %v2479_v6  ;;  %3726 = vmatprep.mubr.msk.f32.mxu1 %vm4155_vm0, %v4156_v1  ;;  %v3350_v47 = vsel %vm284_vm5, %v3349_v27, %v3348_v2 }
 0x9e6   :  { %v2854_v48 = vrot.slane %v2336_v31, 1  ;;  %3734 = vmatprep.subr.mxu1 %v4156_v1  ;;  %v3351_v49 = vrot.slane %v2336_v31, 4 }
 0x9e7   :  { %v3916_v40 = vpop.eup %3915 }
 0x9e8   :  { %v2338_v51 = vmul.f32 %v3916_v40, %v4773_v41  ;;  %3727 = vmatmul.mubr.msk.f32.vlgmr.msra.gmra.mrb[28].mxu1 %vm1245_vm10, %v2780_v19  ;;  %3732 = vmatmul.mubr.msk.f32.vlgmr.msra.gmra.mrb[28].mxu0 %vm1245_vm10, %v2854_v48  ;;  %v3352_v52 = vsel %vm286_vm6, %v3351_v49, %v3350_v47 }
 0x9e9   :  { %3735 = vmatpush3.msra.mxu1 %v2481_v9  ;;  %3740 = vmatpush3.msra.mxu0 %v2482_v46 }
 0x9ea   :  { %3736 = vmatprep.mubr.msk.f32.mxu1 %vm4155_vm0, %v4156_v1  ;;  %v2928_v38 = vrot.slane %v2338_v51, 1  ;;  %3741 = vmatprep.mubr.msk.f32.mxu0 %vm4155_vm0, %v4156_v1  ;;  %v3353_v55 = vrot.slane %v2338_v51, 3 }
 0x9eb   :  { %v3918_v56 = vpop.eup %3917  ;;  %3820 = vmatprep.subr.bf16.mxu0 %v4154_v0  ;;  %3814 = vmatprep.subr.bf16.mxu1 %v4154_v0 }
 0x9ec   :  { %v2340_v41 = vmul.f32 %v3918_v56, %v4777_v42  ;;  %3737 = vmatmul.mubr.msk.f32.vlgmr.msra.gmra.mrb[30].mxu1 %vm1245_vm10, %v2928_v38  ;;  %v3354_v57 = vsel %vm288_vm7, %v3353_v55, %v3352_v52  ;;  %v3221_v42 = vpop.permute.xlu1 %3220 }
 0x9ed   :  { %3752 = vmatprep.mubr.msk.f32.mxu1 %vm4155_vm0, %v4156_v1  ;;  %3816 = vmatpush3.bf16.msra.mxu1 %v3815_v18 }
 0x9ee   :  { %v3002_v35 = vrot.slane %v2340_v41, 1  ;;  %v3355_v63 = vrot.slane %v2340_v41, 2  ;;  %3817 = vmatprep.subr.bf16.mxu1 %v4154_v0  ;;  %v3459_v41 = vld [vmem:[%s4914_s12 + $0x1] ss:$0 sm:$0xff] }
 0x9f0   :  { %3742 = vmatmul.mubr.msk.f32.vlgmr.msra.gmra.mrb[30].mxu0 %vm1245_vm10, %v3002_v35  ;;  %v4846_v45 = vsel %vm290_vm8, %v3355_v63, %v3354_v57 }
 0x9f1   :  { %3822 = vmatpush3.bf16.msra.mxu0 %v3821_v60  ;;  %3763 = vmatprep.mubr.msk.f32.mxu0 %vm4155_vm0, %v4156_v1 }
 0x9f2   :  { %3823 = vmatprep.subr.bf16.mxu0 %v4154_v0  ;;  %3819 = vmatpush3.bf16.msra.mxu1 %v3818_v16 }
 0x9f5   :  { %3825 = vmatpush3.bf16.msra.mxu0 %v3824_v25  ;;  %v3456_v25 = vld [vmem:[%s4913_s11 + $0x1] ss:$0 sm:$0xff]  ;;  %s4162_s11 = smov [#allocation15]  }
 0x9f6   :  { %s3379_s12 = sshll.u32 %s4162_s11, 4  ;;  %s3380_s12 = int_to_ptr.vmem [resolvable:$true] %s3379_s12 }
 0x9f7   :  { %p4092_p1 = scmp.lt.s32.totalorder %s3380_s12, %s3380_s12 }
 0x9f8   :  { %3764 = vmatmul.mubr.msk.f32.vlgmr.msra.gmra.mrb[32].mxu0 %vm149_vm1, %v3221_v42 }
 0xaa7   :  { %v2553_v5 = vpop.f32.mrb[20].mxu1 }
 0xaa8   :  { %v3708_v8 = vpop.f32.mrb[21].mxu1  ;;  %v3083_v1 = vmul.f32 0.01, %v2553_v5  ;;  %vm3075_vm12 = vcmp.gt.f32.partialorder %v2553_v5, 0.0 }
 0xaaa   :  { %v3091_v22 = vsel %vm3075_vm12, %v2553_v5, %v3083_v1 }
 0xaab   :  { %v2627_v10 = vpop.f32.mrb[22].mxu1 }
 0xaac   :  { %vm3076_vm0 = vcmp.gt.f32.partialorder %v2627_v10, 0.0  ;;  %v3084_v12 = vmul.f32 0.01, %v2627_v10  ;;  %v3713_v54 = vpop.f32.mrb[23].mxu1 }
 0xaae   :  { %v3092_v14 = vsel %vm3076_vm0, %v2627_v10, %v3084_v12 }
 0xaaf   :  { %v3120_v15 = vrot.slane %v3092_v14, 7  ;;  %v2701_v59 = vpop.f32.mrb[24].mxu1 }
 0xab0   :  { %vm3077_vm13 = vcmp.gt.f32.partialorder %v2701_v59, 0.0  ;;  %v3085_v13 = vmul.f32 0.01, %v2701_v59  ;;  %v3718_v28 = vpop.f32.mrb[25].mxu1 }
 0xab1   :  { %v3121_v30 = vsel %vm278_vm2, %v3120_v15, %v3091_v22 }
 0xab2   :  { %v3093_v62 = vsel %vm3077_vm13, %v2701_v59, %v3085_v13 }
 0xab3   :  { %v3122_v0 = vrot.slane %v3093_v62, 6 }
 0xab5   :  { %v3123_v17 = vsel %vm280_vm3, %v3122_v0, %v3121_v30 }
 0xab7   :  { %v2775_v32 = vpop.f32.mrb[26].mxu1 }
 0xab8   :  { %vm3078_vm15 = vcmp.gt.f32.partialorder %v2775_v32, 0.0  ;;  %v3086_v33 = vmul.f32 0.01, %v2775_v32  ;;  %v3723_v23 = vpop.f32.mrb[27].mxu1 }
 0xaba   :  { %v3094_v7 = vsel %vm3078_vm15, %v2775_v32, %v3086_v33 }
 0xabb   :  { %v3124_v36 = vrot.slane %v3094_v7, 5  ;;  %v2849_v37 = vpop.f32.mrb[28].mxu1  ;;  %v2923_v39 = vpop.f32.mrb[28].mxu0 }
 0xabc   :  { %vm3079_vm9 = vcmp.gt.f32.partialorder %v2849_v37, 0.0  ;;  %v3087_v20 = vmul.f32 0.01, %v2849_v37  ;;  %vm3080_vm11 = vcmp.gt.f32.partialorder %v2923_v39, 0.0  ;;  %v3088_v6 = vmul.f32 0.01, %v2923_v39 }
 0xabd   :  { %v3125_v43 = vsel %vm282_vm4, %v3124_v36, %v3123_v17  ;;  %v3728_v26 = vpop.f32.mrb[29].mxu1  ;;  %v3733_v21 = vpop.f32.mrb[29].mxu0  ;;  %vm3361_vm4 = vcmask 130048  }
 0xabe   :  { %v3095_v44 = vsel %vm3079_vm9, %v2849_v37, %v3087_v20  ;;  %v3096_v27 = vsel %vm3080_vm11, %v2923_v39, %v3088_v6 }
 0xabf   :  { %v3126_v31 = vrot.slane %v3095_v44, 4  ;;  %v3128_v2 = vrot.slane %v3096_v27, 3  ;;  %v2997_v46 = vpop.f32.mrb[30].mxu1 }
 0xac0   :  { %vm3081_vm2 = vcmp.gt.f32.partialorder %v2997_v46, 0.0  ;;  %v3089_v47 = vmul.f32 0.01, %v2997_v46  ;;  %v3738_v48 = vpop.f32.mrb[31].mxu1 }
 0xac1   :  { %v3127_v19 = vsel %vm284_vm5, %v3126_v31, %v3125_v43 }
 0xac2   :  { %v3129_v9 = vsel %vm286_vm6, %v3128_v2, %v3127_v19  ;;  %v3097_v49 = vsel %vm3081_vm2, %v2997_v46, %v3089_v47 }
 0xac3   :  { %v3130_v40 = vrot.slane %v3097_v49, 2  ;;  %v3071_v51 = vpop.f32.mrb[30].mxu0 }
 0xac4   :  { %vm3082_vm3 = vcmp.gt.f32.partialorder %v3071_v51, 0.0  ;;  %v3090_v52 = vmul.f32 0.01, %v3071_v51  ;;  %v3743_v38 = vpop.f32.mrb[31].mxu0 }
 0xac5   :  { %v3131_v24 = vsel %vm288_vm7, %v3130_v40, %v3129_v9 }
 0xac6   :  { %v3098_v50 = vsel %vm3082_vm3, %v3071_v51, %v3090_v52 }
 0xac7   :  { %v3132_v55 = vrot.slane %v3098_v50, 1 }
 0xac9   :  { %v3133_v56 = vsel %vm290_vm8, %v3132_v55, %v3131_v24 }
 0xaca   :  { %3753 = vmatmul.mubr.msk.f32.vlgmr.msra.gmra.mrb[32].mxu1 %vm149_vm1, %v3133_v56 }
 0xacb   :  { %v3290_v57 = vpop.f32.mrb[32].mxu0 }
 0xacc   :  { %v3291_v60 = vadd.f32 %v3459_v41, %v3290_v57  ;;  %v3765_v35 = vpop.f32.mrb[33].mxu0 }
 0xace   :  { %3302 = vrot.lane.b32.xlu0 %v3291_v60, %s4159_s3 }
 0xad2   :  { %3357 = vrot.lane.b32.xlu0 %v4846_v45, %s4146_s26  ;;  %s4087_s26 = scalar_lea.vmem %s3380_s12, 128 }
 0xad3   :  { %p4088_p0 = scmp.ne.s32.totalorder %s3380_s12, %s4087_s26  ;;  %p4093_p2 = scmp.lt.s32.totalorder %s4087_s26, %s4087_s26 }
 0xad5   :  { %p4094_p3 = por %p4093_p2, %p4092_p1 }
 0xad7   :  { %p4095_p4 = pnand %p4094_p3, %p4088_p0 }
 0xb40   :  { %v3303_v61 = vpop.permute.xlu0 %3302 }
 0xb44   :  { %v3358_v11 = vpop.permute.xlu0 %3357 }
 0xb45   :  { %v3360_v63 = vsel %vm1245_vm10, %v4663_v53, %v3358_v11 }
 0xb46   :  { %3362 = vst.msk [vmem:[#allocation15] sm:$0xff] %vm3361_vm4, %v3360_v63 }
 0xb9d   :  { %v3202_v42 = vpop.f32.mrb[32].mxu1 }
 0xb9e   :  { %v3203_v58 = vadd.f32 %v3456_v25, %v3202_v42  ;;  %v3754_v3 = vpop.f32.mrb[33].mxu1 }
 0xba0   :  { %v3294_v29 = vadd.f32 %v3291_v60, %v3203_v58 }
 0xba2   :  { %v3461_v18 = vmul.f32 -1.442695, %v3294_v29 }
 0xba4   :  { %3919 = vpow2.f32 %v3461_v18 }
 0xbae   :  { %v3920_v4 = vpop.eup %3919 }
 0xbaf   :  { %v3298_v16 = vadd.f32 1.0, %v3920_v4 }
 0xbb1   :  { %3921 = vrcp.f32 %v3298_v16 }
 0xbbb   :  { %v3922_v45 = vpop.eup %3921 }
 0xbbc   :  { %v3305_v5 = vmul.f32 %v3922_v45, %v3303_v61  ;;  %v3312_v1 = vsub.f32 1.0, %v3922_v45  ;;  %v3318_v54 = vmul.f32 %v3922_v45, %v4687_v34 }
 0xbbe   :  { %3307 = vrot.lane.b32.xlu1 %v3305_v5, %s4159_s3 }
 0xc30   :  { %v3308_v8 = vpop.permute.xlu1 %3307 }
 0xc31   :  { %v3310_v53 = vadd.f32 %v3308_v8, %v3203_v58 }
 0xc33   :  { %3923 = vtanh.f32 %v3310_v53 }
 0xc3d   :  { %v3924_v10 = vpop.eup %3923 }
 0xc3e   :  { %3314 = vrot.lane.b32.xlu1 %v3924_v10, %s4161_s22 }
 0xcb0   :  { %v3315_v12 = vpop.permute.xlu1 %3314 }
 0xcb1   :  { %v3317_v14 = vmul.f32 %v3315_v12, %v3312_v1 }
 0xcb2   :  { %4098 = shalt.err (!%p4095_p4)
}
 0xcb3   :  { %s4099_s9 = scalar_lea.hbm %s4916_s14, 128 }
 0xcb4   :  { %p4100_p5 = scmp.ne.s32.totalorder %s4916_s14, %s4099_s9  ;;  %p4103_p6 = scmp.lt.u32.totalorder %s4099_s9, %s4916_s14 }
 0xcb6   :  { %p4105_p7 = pnand %p4103_p6, %p4100_p5 }
 0xcb8   :  { %4108 = shalt.err (!%p4105_p7)
}
 0xcb9   :  { %3382 = dma.vmem_to_hbm [thread:$0]  %s3380_s12, 128, %s4916_s14, [#allocation16]   ;;  %v3319_v15 = vadd.f32 %v3318_v54, %v3317_v14 }
 0xcba   :  { %s4163_s16 = smov [#allocation14]  }
 0xcbb   :  { %vm3320_vm5 = vcmp.gt.f32.partialorder %v3319_v15, 0.0  ;;  %v3321_v59 = vmul.f32 0.01, %v3319_v15  ;;  %s3369_s1 = sshll.u32 %s4163_s16, 4  ;;  %s3370_s1 = int_to_ptr.vmem [resolvable:$true] %s3369_s1 }
 0xcbc   :  { %s4109_s6 = scalar_lea.vmem %s3370_s1, 128  ;;  %p4114_p9 = scmp.lt.s32.totalorder %s3370_s1, %s3370_s1 }
 0xcbd   :  { %v3322_v22 = vsel %vm3320_vm5, %v3319_v15, %v3321_v59  ;;  %p4110_p8 = scmp.ne.s32.totalorder %s3370_s1, %s4109_s6  ;;  %p4115_p10 = scmp.lt.s32.totalorder %s4109_s6, %s4109_s6 }
 0xcbe   :  { %v3323_v13 = vadd.f32 %v3322_v22, %v4687_v34 }
 0xcbf   :  { %p4116_p11 = por %p4115_p10, %p4114_p9 }
 0xcc0   :  { %3325 = vrot.lane.b32.xlu1 %v3323_v13, %s4161_s22 }
 0xcc1   :  { %p4117_p12 = pnand %p4116_p11, %p4110_p8 }
 0xd32   :  { %v3326_v28 = vpop.permute.xlu1 %3325 }
 0xd33   :  { %3328 = vst.msk [vmem:[#allocation14] sm:$0xff] %vm149_vm1, %v3326_v28 }
 0xd34   :  { %4120 = shalt.err (!%p4117_p12)
}
 0xd35   :  { %s4121_s21 = scalar_lea.hbm %s4915_s13, 128 }
 0xd36   :  { %p4122_p13 = scmp.ne.s32.totalorder %s4915_s13, %s4121_s21  ;;  %p4125_p0 = scmp.lt.u32.totalorder %s4121_s21, %s4915_s13 }
 0xd38   :  { %p4127_p1 = pnand %p4125_p0, %p4122_p13 }
 0xd3a   :  { %4130 = shalt.err (!%p4127_p1)
}
 0xd3b   :  { %3372 = dma.vmem_to_hbm [thread:$0]  %s3370_s1, 128, %s4915_s13, [#allocation4]  }
 0xd3c   :  { %4139 = dma.done.wait [#allocation4], 128  }
 0xd3d   :  { %4140 = vsyncadd [#allocation4], 4294967168 }
 0xd3e   :  { %4141 = dma.done.wait [#allocation16], 128  }
 0xd3f   :  { %4142 = vsyncadd [#allocation16], 4294967168 }
 0xd40   :  { %3389 = vsyncpa [#allocation3], 1 }
 0xd41   :  { %3390 = vsyncpa [#allocation6], 1 }
 0xd42   :  { %3391 = vsyncpa [#allocation9], 1 }
 0xd43   :  { %3392 = vsyncpa [#allocation12], 1 }
 0xd44   :  { %3393 = vsyncpa [#allocation4], 1 }
 0xd45   :  { %3394 = vsyncpa [#allocation16], 1 }

</bundles_post_ra>
